<compile_context>
chip_gen: v5e
topology: v5e:2x2
jax: 0.10.0
libtpu: 0.0.40
codegen_flags: <defaults>
</compile_context>

<pallas_src>
import jax
import jax.numpy as jnp
from jax.experimental import pallas as pl
from jax.experimental.pallas import tpu as pltpu

# ---------------- synthetic mini-config (scaled-down MobileSAM) ----------------
RS = 32          # resize target (stands in for 1024 in the real module)
PE1_C = 16       # patch-embed first conv channels
C0 = 32          # stage-0 embed dim
HID = 64         # MBConv expanded hidden dim
C1 = 32          # stage-1 embed dim
WS = 4           # window size of the TinyViT attention block
NUM_HEADS = 2
HEAD_DIM = 16    # NUM_HEADS * HEAD_DIM == C1
MLP_HID = 64     # TinyViT MLP hidden dim

H2 = W2 = 8      # spatial size after the two stride-2 patch-embed convs (RS // 4)
LHW = H2 * W2

F32 = jnp.float32
BF16 = jnp.bfloat16

_PARALLEL1 = pltpu.CompilerParams(dimension_semantics=("parallel",))


def _gelu(x):
    # TODO(synk): PyTorch nn.GELU defaults to the exact erf form; tanh
    # approximation is used here for robust Mosaic lowering.
    return jax.nn.gelu(x, approximate=True)


# ================================ Pallas kernels ================================

def _pe1_kernel(cols_ref, w_ref, b_ref, o_ref):
    """Patch-embed conv1 as an im2col matmul tile: gelu(cols @ W + b)."""
    y = jnp.dot(cols_ref[...], w_ref[...], preferred_element_type=F32)
    o_ref[...] = _gelu(y + b_ref[...])


def pe_conv1(cols, w, b, tile_m=128):
    M, K = cols.shape
    N = w.shape[1]
    tm = tile_m if M % tile_m == 0 else M
    return pl.pallas_call(
        _pe1_kernel,
        grid=(M // tm,),
        out_shape=jax.ShapeDtypeStruct((M, N), F32),
        in_specs=[pl.BlockSpec((tm, K), lambda i: (i, 0)),
                  pl.BlockSpec((K, N), lambda i: (0, 0)),
                  pl.BlockSpec((1, N), lambda i: (0, 0))],
        out_specs=pl.BlockSpec((tm, N), lambda i: (i, 0)),
        compiler_params=_PARALLEL1,
    )(cols, w, b.reshape(1, N))


def _stage0_kernel(cols_ref, pe2w_ref, pe2b_ref, c1w_ref, c1b_ref,
                   dww_ref, dwb_ref, c3w_ref, c3b_ref, dsw_ref, dsb_ref,
                   attn_ref, mlp_ref, block_ref, xds_ref, pad_ref):
    """Per-image: patch-embed conv2 + MBConv block + downsample, fully in VMEM."""
    cols = cols_ref[0]                                            # [LHW, 9*PE1_C] bf16
    # patch-embed conv2 (stride-2 3x3 via wrapper im2col)
    x0 = jnp.dot(cols, pe2w_ref[...], preferred_element_type=F32) + pe2b_ref[...]   # [LHW, C0]
    # MBConv conv1 (1x1) + act1
    h1 = _gelu(jnp.dot(x0.astype(BF16), c1w_ref[...],
                       preferred_element_type=F32) + c1b_ref[...])                  # [LHW, HID]
    # MBConv conv2: depthwise 3x3 (pad 1) + act2, padding via zeroed VMEM scratch
    pad_ref[...] = jnp.zeros_like(pad_ref)
    pad_ref[1:H2 + 1, 1:W2 + 1, :] = h1.reshape(H2, W2, HID)
    xp = pad_ref[...]
    w = dww_ref[...]
    acc = jnp.zeros((H2, W2, HID), F32)
    for dy in range(3):
        for dx in range(3):
            acc = acc + xp[dy:dy + H2, dx:dx + W2, :] * w[dy, dx][None, None, :]
    h2 = _gelu(acc + dwb_ref[...].reshape(1, 1, HID))
    h2f = h2.reshape(LHW, HID)
    attn_ref[0] = h2f                                             # attn_output (b h w c)
    # MBConv conv3 (1x1)
    x3 = jnp.dot(h2f.astype(BF16), c3w_ref[...], preferred_element_type=F32) + c3b_ref[...]
    mlp_ref[0] = x3                                               # mlp_output (b h w c)
    # residual + act3 (fused epilogue; shortcut = patch-embed output)
    xb = _gelu(x3 + x0)
    block_ref[0] = xb                                             # block_output (b h w c)
    # simplified PatchMerging downsample (1x1 channel projection)
    xds_ref[0] = jnp.dot(xb.astype(BF16), dsw_ref[...],
                         preferred_element_type=F32) + dsb_ref[...]


def stage0(cols2, p):
    B = cols2.shape[0]
    K = 9 * PE1_C
    full2 = lambda i: (0, 0)
    full3 = lambda i: (0, 0, 0)
    blk = lambda i: (i, 0, 0)
    return pl.pallas_call(
        _stage0_kernel,
        grid=(B,),
        out_shape=(jax.ShapeDtypeStruct((B, LHW, HID), F32),
                   jax.ShapeDtypeStruct((B, LHW, C0), F32),
                   jax.ShapeDtypeStruct((B, LHW, C0), F32),
                   jax.ShapeDtypeStruct((B, LHW, C1), F32)),
        in_specs=[pl.BlockSpec((1, LHW, K), blk),
                  pl.BlockSpec((K, C0), full2), pl.BlockSpec((1, C0), full2),
                  pl.BlockSpec((C0, HID), full2), pl.BlockSpec((1, HID), full2),
                  pl.BlockSpec((3, 3, HID), full3), pl.BlockSpec((1, HID), full2),
                  pl.BlockSpec((HID, C0), full2), pl.BlockSpec((1, C0), full2),
                  pl.BlockSpec((C0, C1), full2), pl.BlockSpec((1, C1), full2)],
        out_specs=(pl.BlockSpec((1, LHW, HID), blk),
                   pl.BlockSpec((1, LHW, C0), blk),
                   pl.BlockSpec((1, LHW, C0), blk),
                   pl.BlockSpec((1, LHW, C1), blk)),
        scratch_shapes=[pltpu.VMEM((H2 + 2, W2 + 2, HID), F32)],
        compiler_params=_PARALLEL1,
    )(cols2,
      p['pe2_w'], p['pe2_b'].reshape(1, C0),
      p['mb_c1_w'], p['mb_c1_b'].reshape(1, HID),
      p['mb_c2_w'], p['mb_c2_b'].reshape(1, HID),
      p['mb_c3_w'], p['mb_c3_b'].reshape(1, C0),
      p['ds_w'], p['ds_b'].reshape(1, C1))


def _wattn_kernel(xw_ref, lnw_ref, lnb_ref, qkvw_ref, qkvb_ref, abias_ref,
                  projw_ref, projb_ref, o_ref, o_scr):
    """TinyViT windowed attention: LN -> QKV -> batched-head attention -> one proj."""
    xw = xw_ref[...]                                              # [NWB, N, C] f32
    NWB, N, C = xw.shape
    D = HEAD_DIM
    # pre-norm (TinyViT Attention applies LayerNorm internally) -- f32 math
    mu = jnp.mean(xw, axis=-1, keepdims=True)
    var = jnp.mean((xw - mu) ** 2, axis=-1, keepdims=True)
    xn = (xw - mu) * jax.lax.rsqrt(var + 1e-5)
    xn = xn * lnw_ref[...] + lnb_ref[...]
    # single QKV projection (bf16 -> MXU, f32 accumulation)
    qkv = jnp.dot(xn.reshape(NWB * N, C).astype(BF16), qkvw_ref[...],
                  preferred_element_type=F32) + qkvb_ref[...]
    qkv = qkv.reshape(NWB, N, 3 * C)
    # stack heads along the batch axis -> one batched score einsum, one PV einsum
    q = jnp.concatenate([qkv[:, :, h * D:(h + 1) * D] for h in range(NUM_HEADS)], axis=0)
    k = jnp.concatenate([qkv[:, :, C + h * D:C + (h + 1) * D] for h in range(NUM_HEADS)], axis=0)
    v = jnp.concatenate([qkv[:, :, 2 * C + h * D:2 * C + (h + 1) * D] for h in range(NUM_HEADS)], axis=0)
    bias = jnp.concatenate(
        [jnp.broadcast_to(abias_ref[h][None], (NWB, N, N)) for h in range(NUM_HEADS)], axis=0)
    scale = 1.0 / float(D) ** 0.5
    s = jnp.einsum('bnd,bmd->bnm', q.astype(BF16), k.astype(BF16),
                   preferred_element_type=F32) * scale + bias
    s = s - jnp.max(s, axis=-1, keepdims=True)
    p = jnp.exp(s)
    p = p * pl.reciprocal(jnp.sum(p, axis=-1, keepdims=True), approx=True)
    oh = jnp.einsum('bnm,bmd->bnd', p.astype(BF16), v.astype(BF16),
                    preferred_element_type=F32)                   # [H*NWB, N, D]
    # gather heads back onto lanes (scratch acts as the concat), then ONE projection
    for h in range(NUM_HEADS):
        o_scr[:, :, h * D:(h + 1) * D] = oh[h * NWB:(h + 1) * NWB]
    o = o_scr[...].reshape(NWB * N, C)
    out = jnp.dot(o.astype(BF16), projw_ref[...], preferred_element_type=F32) + projb_ref[...]
    o_ref[...] = out.reshape(NWB, N, C)


def window_attention(xw, p):
    NW, N, C = xw.shape
    NWB = 4 if NW % 4 == 0 else NW                     # windows per grid step
    full2 = lambda i: (0, 0)
    return pl.pallas_call(
        _wattn_kernel,
        grid=(NW // NWB,),
        out_shape=jax.ShapeDtypeStruct((NW, N, C), F32),
        in_specs=[pl.BlockSpec((NWB, N, C), lambda i: (i, 0, 0)),
                  pl.BlockSpec((1, C), full2), pl.BlockSpec((1, C), full2),
                  pl.BlockSpec((C, 3 * C), full2), pl.BlockSpec((1, 3 * C), full2),
                  pl.BlockSpec((NUM_HEADS, N, N), lambda i: (0, 0, 0)),
                  pl.BlockSpec((C, C), full2), pl.BlockSpec((1, C), full2)],
        out_specs=pl.BlockSpec((NWB, N, C), lambda i: (i, 0, 0)),
        scratch_shapes=[pltpu.VMEM((NWB, N, C), F32)],
        compiler_params=_PARALLEL1,
    )(xw,
      p['attn_ln_w'].reshape(1, C), p['attn_ln_b'].reshape(1, C),
      p['attn_qkv_w'], p['attn_qkv_b'].reshape(1, 3 * C),
      p['attn_bias'], p['attn_proj_w'], p['attn_proj_b'].reshape(1, C))


def _tail_kernel(res_ref, attn_ref, lcw_ref, lcb_ref, lnw_ref, lnb_ref,
                 w1_ref, b1_ref, w2_ref, b2_ref, mlp_ref, blk_ref, pad_ref):
    """Per-image TinyViT tail: residual + local dw-conv + LN + MLP + residual."""
    xr = res_ref[0] + attn_ref[0]                                 # res_x + drop_path(attn)
    # local_conv: depthwise 3x3, pad 1
    pad_ref[...] = jnp.zeros_like(pad_ref)
    pad_ref[1:H2 + 1, 1:W2 + 1, :] = xr.reshape(H2, W2, C1)
    xp = pad_ref[...]
    w = lcw_ref[...]
    acc = jnp.zeros((H2, W2, C1), F32)
    for dy in range(3):
        for dx in range(3):
            acc = acc + xp[dy:dy + H2, dx:dx + W2, :] * w[dy, dx][None, None, :]
    xc = (acc + lcb_ref[...].reshape(1, 1, C1)).reshape(LHW, C1)
    # MLP: LayerNorm -> fc1 -> GELU -> fc2 (f32 norm, bf16 MXU operands)
    mu = jnp.mean(xc, axis=-1, keepdims=True)
    var = jnp.mean((xc - mu) ** 2, axis=-1, keepdims=True)
    xn = (xc - mu) * jax.lax.rsqrt(var + 1e-5)
    xn = xn * lnw_ref[...] + lnb_ref[...]
    h = _gelu(jnp.dot(xn.astype(BF16), w1_ref[...], preferred_element_type=F32) + b1_ref[...])
    m = jnp.dot(h.astype(BF16), w2_ref[...], preferred_element_type=F32) + b2_ref[...]
    mlp_ref[0] = m                                                # mlp_output (b h w c)
    blk_ref[0] = xc + m                                           # block_output (b h w c)


def tinyvit_tail(res_x, x_attn, p):
    B, L, C = res_x.shape
    HM = MLP_HID
    full2 = lambda i: (0, 0)
    blk = lambda i: (i, 0, 0)
    return pl.pallas_call(
        _tail_kernel,
        grid=(B,),
        out_shape=(jax.ShapeDtypeStruct((B, L, C), F32),
                   jax.ShapeDtypeStruct((B, L, C), F32)),
        in_specs=[pl.BlockSpec((1, L, C), blk),
                  pl.BlockSpec((1, L, C), blk),
                  pl.BlockSpec((3, 3, C), lambda i: (0, 0, 0)),
                  pl.BlockSpec((1, C), full2),
                  pl.BlockSpec((1, C), full2), pl.BlockSpec((1, C), full2),
                  pl.BlockSpec((C, HM), full2), pl.BlockSpec((1, HM), full2),
                  pl.BlockSpec((HM, C), full2), pl.BlockSpec((1, C), full2)],
        out_specs=(pl.BlockSpec((1, L, C), blk),
                   pl.BlockSpec((1, L, C), blk)),
        scratch_shapes=[pltpu.VMEM((H2 + 2, W2 + 2, C), F32)],
        compiler_params=_PARALLEL1,
    )(res_x, x_attn,
      p['lc_w'], p['lc_b'].reshape(1, C),
      p['mlp_ln_w'].reshape(1, C), p['mlp_ln_b'].reshape(1, C),
      p['mlp_w1'], p['mlp_b1'].reshape(1, HM),
      p['mlp_w2'], p['mlp_b2'].reshape(1, C))


# ================================ glue helpers ================================

def im2col_3x3_s2(x):
    """3x3 / stride-2 / pad-1 patches, NHWC -> [B, H//2, W//2, 9*C]."""
    B, H, W, C = x.shape
    xp = jnp.pad(x, ((0, 0), (1, 1), (1, 1), (0, 0)))
    Ho, Wo = H // 2, W // 2
    cols = []
    for dy in range(3):
        for dx in range(3):
            cols.append(xp[:, dy:dy + 2 * Ho:2, dx:dx + 2 * Wo:2, :])
    return jnp.concatenate(cols, axis=-1), Ho, Wo


def init_params(key):
    keys = iter(jax.random.split(key, 32))

    def w(shape, scale=0.05, dtype=F32):
        return (scale * jax.random.normal(next(keys), shape, F32)).astype(dtype)

    p = {}
    # patch embed: two 3x3 stride-2 convs (im2col weight layout); matmul weights bf16
    p['pe1_w'] = w((3 * 3 * 3, PE1_C), dtype=BF16);    p['pe1_b'] = w((PE1_C,))
    p['pe2_w'] = w((3 * 3 * PE1_C, C0), dtype=BF16);   p['pe2_b'] = w((C0,))
    # layer0/block0: MBConv (BN folded into biases)
    p['mb_c1_w'] = w((C0, HID), dtype=BF16);           p['mb_c1_b'] = w((HID,))
    p['mb_c2_w'] = w((3, 3, HID));                     p['mb_c2_b'] = w((HID,))
    p['mb_c3_w'] = w((HID, C0), dtype=BF16);           p['mb_c3_b'] = w((C0,))
    # simplified PatchMerging downsample (1x1 channel projection)
    p['ds_w'] = w((C0, C1), dtype=BF16);               p['ds_b'] = w((C1,))
    # layer1/block0: TinyViT windowed attention
    p['attn_ln_w'] = jnp.ones((C1,), F32)
    p['attn_ln_b'] = jnp.zeros((C1,), F32)
    p['attn_qkv_w'] = w((C1, 3 * C1), dtype=BF16);     p['attn_qkv_b'] = w((3 * C1,))
    p['attn_bias'] = w((NUM_HEADS, WS * WS, WS * WS))
    p['attn_proj_w'] = w((C1, C1), dtype=BF16);        p['attn_proj_b'] = w((C1,))
    p['lc_w'] = w((3, 3, C1));                         p['lc_b'] = w((C1,))
    p['mlp_ln_w'] = jnp.ones((C1,), F32)
    p['mlp_ln_b'] = jnp.zeros((C1,), F32)
    p['mlp_w1'] = w((C1, MLP_HID), dtype=BF16);        p['mlp_b1'] = w((MLP_HID,))
    p['mlp_w2'] = w((MLP_HID, C1), dtype=BF16);        p['mlp_b2'] = w((C1,))
    return p


def mobile_sam_forward(params, x_nchw):
    """Mirrors MobileSAM.forward: resize -> image_encoder -> collect per-block
    {'attn','mlp','block'} outputs in `b h w c` layout."""
    B, Cin, _, _ = x_nchw.shape
    # F.interpolate(x, size=(1024,1024), mode='bilinear') -> scaled-down RS
    x = jax.image.resize(x_nchw, (B, Cin, RS, RS), method='bilinear')
    x = jnp.transpose(x, (0, 2, 3, 1))                            # NCHW -> NHWC

    # ---- patch embed conv1: 3x3/s2 + GELU (M-tiled Pallas matmul)
    # TODO(synk): at the real 1024x1024 MobileSAM resolution the im2col should be
    # moved in-kernel (index_map over output row tiles) to avoid the 9x HBM inflation.
    cols1, H1, W1 = im2col_3x3_s2(x)
    x1 = pe_conv1(cols1.reshape(B * H1 * W1, -1).astype(BF16),
                  params['pe1_w'], params['pe1_b'])
    x1 = x1.reshape(B, H1, W1, PE1_C)

    # ---- fused stage-0 kernel: patch-embed conv2 + MBConv block + downsample
    cols2, Ho, Wo = im2col_3x3_s2(x1)
    cols2 = cols2.reshape(B, Ho * Wo, 9 * PE1_C).astype(BF16)
    attn0, mlp0, block0, xds = stage0(cols2, params)
    attn0 = attn0.reshape(B, Ho, Wo, HID)
    mlp0 = mlp0.reshape(B, Ho, Wo, C0)
    block0 = block0.reshape(B, Ho, Wo, C0)
    x = xds.reshape(B, Ho, Wo, C1)

    # ---- layer 1, block 0: TinyViT block (new_forward_fn2 semantics) ----
    Hs, Ws_, C = Ho, Wo, C1
    L = Hs * Ws_
    res_x = x
    # window partition (H != window_size path; H,W divisible by WS -> no pad)
    nH, nW = Hs // WS, Ws_ // WS
    xw = x.reshape(B, nH, WS, nW, WS, C).transpose(0, 1, 3, 2, 4, 5)
    xw = xw.reshape(B * nH * nW, WS * WS, C)
    aw = window_attention(xw, params)
    x_attn = aw.reshape(B, nH, nW, WS, WS, C).transpose(0, 1, 3, 2, 4, 5)
    x_attn = x_attn.reshape(B, Hs, Ws_, C)
    attn1 = x_attn                                                # b h w c
    # residual + local_conv + MLP + residual, all fused in one kernel
    mlp1, block1 = tinyvit_tail(res_x.reshape(B, L, C), x_attn.reshape(B, L, C), params)
    mlp1 = mlp1.reshape(B, Hs, Ws_, C)
    block1 = block1.reshape(B, Hs, Ws_, C)

    return {'attn': [attn0, attn1], 'mlp': [mlp0, mlp1], 'block': [block0, block1]}


if __name__ == "__main__":
    key = jax.random.PRNGKey(0)
    kx, kp = jax.random.split(key)
    x = jax.random.normal(kx, (2, 3, 16, 16), F32)    # NCHW, like PyTorch
    params = init_params(kp)

    forward = jax.jit(mobile_sam_forward)
    out = forward(params, x)
    out = jax.tree_util.tree_map(jax.block_until_ready, out)

    assert len(out['attn']) == 2 and len(out['mlp']) == 2 and len(out['block']) == 2
    assert out['attn'][0].shape == (2, 8, 8, HID)
    assert out['mlp'][0].shape == (2, 8, 8, C0)
    assert out['block'][0].shape == (2, 8, 8, C0)
    assert out['attn'][1].shape == (2, 8, 8, C1)
    assert out['mlp'][1].shape == (2, 8, 8, C1)
    assert out['block'][1].shape == (2, 8, 8, C1)
    assert all(jnp.all(jnp.isfinite(a)) for lst in out.values() for a in lst)
    print("KERNEL_OK")
</pallas_src>

<mosaic_0001>
module attributes {stable_mosaic.version = 11 : i64} {
  func.func @_pe1_kernel(%arg0: i32, %arg1: memref<128x27xbf16, #tpu.memory_space<vmem>>, %arg2: memref<27x16xbf16, #tpu.memory_space<vmem>>, %arg3: memref<1x16xf32, #tpu.memory_space<vmem>>, %arg4: memref<128x16xf32, #tpu.memory_space<vmem>>) attributes {dimension_semantics = [#tpu.dimension_semantics<parallel>], iteration_bounds = array<i64: 4>, scalar_prefetch = 0 : i64, scratch_operands = 0 : i64, tpu.core_type = #tpu.core_type<tc>, window_params = [{transform_indices = @transform_0, window_bounds = array<i64: 128, 27>}, {pipeline_mode = #tpu.pipeline_mode<synchronous>, transform_indices = @transform_1, window_bounds = array<i64: 27, 16>}, {pipeline_mode = #tpu.pipeline_mode<synchronous>, transform_indices = @transform_2, window_bounds = array<i64: 1, 16>}, {transform_indices = @transform_3, window_bounds = array<i64: 128, 16>}]} {
    %c0 = arith.constant 0 : index
    %c0_0 = arith.constant 0 : index
    %0 = vector.load %arg1[%c0, %c0_0] : memref<128x27xbf16, #tpu.memory_space<vmem>>, vector<128x27xbf16>
    %c0_1 = arith.constant 0 : index
    %c0_2 = arith.constant 0 : index
    %1 = vector.load %arg2[%c0_1, %c0_2] : memref<27x16xbf16, #tpu.memory_space<vmem>>, vector<27x16xbf16>
    %cst = arith.constant dense<0.000000e+00> : vector<128x16xf32>
    %2 = tpu.matmul %0, %1, %cst {dimension_numbers = #tpu.dot_dimension_numbers<[1], [0], [0], [1], [0, 0, 1, 1], [], []>} : vector<128x27xbf16>, vector<27x16xbf16>, vector<128x16xf32> -> vector<128x16xf32>
    %c0_3 = arith.constant 0 : index
    %c0_4 = arith.constant 0 : index
    %3 = vector.load %arg3[%c0_3, %c0_4] : memref<1x16xf32, #tpu.memory_space<vmem>>, vector<1x16xf32>
    %4 = vector.broadcast %3 : vector<1x16xf32> to vector<128x16xf32>
    %5 = arith.addf %2, %4 : vector<128x16xf32>
    %6 = arith.mulf %5, %5 : vector<128x16xf32>
    %7 = arith.mulf %5, %6 : vector<128x16xf32>
    %cst_5 = arith.constant 4.471500e-02 : f32
    %8 = vector.broadcast %cst_5 : f32 to vector<128x16xf32>
    %9 = arith.mulf %8, %7 : vector<128x16xf32>
    %10 = arith.addf %5, %9 : vector<128x16xf32>
    %cst_6 = arith.constant 0.797884583 : f32
    %11 = vector.broadcast %cst_6 : f32 to vector<128x16xf32>
    %12 = arith.mulf %11, %10 : vector<128x16xf32>
    %13 = math.tanh %12 : vector<128x16xf32>
    %cst_7 = arith.constant 1.000000e+00 : f32
    %14 = vector.broadcast %cst_7 : f32 to vector<128x16xf32>
    %15 = arith.addf %14, %13 : vector<128x16xf32>
    %cst_8 = arith.constant 5.000000e-01 : f32
    %16 = vector.broadcast %cst_8 : f32 to vector<128x16xf32>
    %17 = arith.mulf %16, %15 : vector<128x16xf32>
    %18 = arith.mulf %5, %17 : vector<128x16xf32>
    %c0_9 = arith.constant 0 : index
    %c0_10 = arith.constant 0 : index
    %19 = vector.load %arg4[%c0_9, %c0_10] : memref<128x16xf32, #tpu.memory_space<vmem>>, vector<128x16xf32>
    tpu.vector_store %arg4[%c0_9, %c0_10], %18 {strides = array<i32>} : memref<128x16xf32, #tpu.memory_space<vmem>>, vector<128x16xf32>,
    return
  }
  func.func @transform_0(%arg0: i32) -> (i32, i32) {
    %c0_i32 = arith.constant 0 : i32
    %c0_i32_0 = arith.constant 0 : i32
    return %arg0, %c0_i32 : i32, i32
  }
  func.func @transform_1(%arg0: i32) -> (i32, i32) {
    %c0_i32 = arith.constant 0 : i32
    %c0_i32_0 = arith.constant 0 : i32
    %c0_i32_1 = arith.constant 0 : i32
    return %c0_i32, %c0_i32_0 : i32, i32
  }
  func.func @transform_2(%arg0: i32) -> (i32, i32) {
    %c0_i32 = arith.constant 0 : i32
    %c0_i32_0 = arith.constant 0 : i32
    %c0_i32_1 = arith.constant 0 : i32
    return %c0_i32, %c0_i32_0 : i32, i32
  }
  func.func @transform_3(%arg0: i32) -> (i32, i32) {
    %c0_i32 = arith.constant 0 : i32
    %c0_i32_0 = arith.constant 0 : i32
    return %arg0, %c0_i32 : i32, i32
  }
}

module attributes {stable_mosaic.version = 11 : i64} {
  func.func @_stage0_kernel(%arg0: i32, %arg1: memref<1x64x144xbf16, #tpu.memory_space<vmem>>, %arg2: memref<144x32xbf16, #tpu.memory_space<vmem>>, %arg3: memref<1x32xf32, #tpu.memory_space<vmem>>, %arg4: memref<32x64xbf16, #tpu.memory_space<vmem>>, %arg5: memref<1x64xf32, #tpu.memory_space<vmem>>, %arg6: memref<3x3x64xf32, #tpu.memory_space<vmem>>, %arg7: memref<1x64xf32, #tpu.memory_space<vmem>>, %arg8: memref<64x32xbf16, #tpu.memory_space<vmem>>, %arg9: memref<1x32xf32, #tpu.memory_space<vmem>>, %arg10: memref<32x32xbf16, #tpu.memory_space<vmem>>, %arg11: memref<1x32xf32, #tpu.memory_space<vmem>>, %arg12: memref<1x64x64xf32, #tpu.memory_space<vmem>>, %arg13: memref<1x64x32xf32, #tpu.memory_space<vmem>>, %arg14: memref<1x64x32xf32, #tpu.memory_space<vmem>>, %arg15: memref<1x64x32xf32, #tpu.memory_space<vmem>>, %arg16: memref<10x10x64xf32, #tpu.memory_space<vmem>>) attributes {dimension_semantics = [#tpu.dimension_semantics<parallel>], iteration_bounds = array<i64: 2>, scalar_prefetch = 0 : i64, scratch_operands = 1 : i64, tpu.core_type = #tpu.core_type<tc>, window_params = [{transform_indices = @transform_0, window_bounds = array<i64: 1, 64, 144>}, {pipeline_mode = #tpu.pipeline_mode<synchronous>, transform_indices = @transform_1, window_bounds = array<i64: 144, 32>}, {pipeline_mode = #tpu.pipeline_mode<synchronous>, transform_indices = @transform_2, window_bounds = array<i64: 1, 32>}, {pipeline_mode = #tpu.pipeline_mode<synchronous>, transform_indices = @transform_3, window_bounds = array<i64: 32, 64>}, {pipeline_mode = #tpu.pipeline_mode<synchronous>, transform_indices = @transform_4, window_bounds = array<i64: 1, 64>}, {pipeline_mode = #tpu.pipeline_mode<synchronous>, transform_indices = @transform_5, window_bounds = array<i64: 3, 3, 64>}, {pipeline_mode = #tpu.pipeline_mode<synchronous>, transform_indices = @transform_6, window_bounds = array<i64: 1, 64>}, {pipeline_mode = #tpu.pipeline_mode<synchronous>, transform_indices = @transform_7, window_bounds = array<i64: 64, 32>}, {pipeline_mode = #tpu.pipeline_mode<synchronous>, transform_indices = @transform_8, window_bounds = array<i64: 1, 32>}, {pipeline_mode = #tpu.pipeline_mode<synchronous>, transform_indices = @transform_9, window_bounds = array<i64: 32, 32>}, {pipeline_mode = #tpu.pipeline_mode<synchronous>, transform_indices = @transform_10, window_bounds = array<i64: 1, 32>}, {transform_indices = @transform_11, window_bounds = array<i64: 1, 64, 64>}, {transform_indices = @transform_12, window_bounds = array<i64: 1, 64, 32>}, {transform_indices = @transform_13, window_bounds = array<i64: 1, 64, 32>}, {transform_indices = @transform_14, window_bounds = array<i64: 1, 64, 32>}]} {
    %c0 = arith.constant 0 : index
    %c0_0 = arith.constant 0 : index
    %c0_1 = arith.constant 0 : index
    %0 = vector.load %arg1[%c0, %c0_0, %c0_1] : memref<1x64x144xbf16, #tpu.memory_space<vmem>>, vector<1x64x144xbf16>
    %1 = vector.shape_cast %0 : vector<1x64x144xbf16> to vector<64x144xbf16>
    %c0_2 = arith.constant 0 : index
    %c0_3 = arith.constant 0 : index
    %2 = vector.load %arg2[%c0_2, %c0_3] : memref<144x32xbf16, #tpu.memory_space<vmem>>, vector<144x32xbf16>
    %cst = arith.constant dense<0.000000e+00> : vector<64x32xf32>
    %3 = tpu.matmul %1, %2, %cst {dimension_numbers = #tpu.dot_dimension_numbers<[1], [0], [0], [1], [0, 0, 1, 1], [], []>} : vector<64x144xbf16>, vector<144x32xbf16>, vector<64x32xf32> -> vector<64x32xf32>
    %c0_4 = arith.constant 0 : index
    %c0_5 = arith.constant 0 : index
    %4 = vector.load %arg3[%c0_4, %c0_5] : memref<1x32xf32, #tpu.memory_space<vmem>>, vector<1x32xf32>
    %5 = vector.broadcast %4 : vector<1x32xf32> to vector<64x32xf32>
    %6 = arith.addf %3, %5 : vector<64x32xf32>
    %7 = arith.truncf %6 : vector<64x32xf32> to vector<64x32xbf16>
    %c0_6 = arith.constant 0 : index
    %c0_7 = arith.constant 0 : index
    %8 = vector.load %arg4[%c0_6, %c0_7] : memref<32x64xbf16, #tpu.memory_space<vmem>>, vector<32x64xbf16>
    %cst_8 = arith.constant dense<0.000000e+00> : vector<64x64xf32>
    %9 = tpu.matmul %7, %8, %cst_8 {dimension_numbers = #tpu.dot_dimension_numbers<[1], [0], [0], [1], [0, 0, 1, 1], [], []>} : vector<64x32xbf16>, vector<32x64xbf16>, vector<64x64xf32> -> vector<64x64xf32>
    %c0_9 = arith.constant 0 : index
    %c0_10 = arith.constant 0 : index
    %10 = vector.load %arg5[%c0_9, %c0_10] : memref<1x64xf32, #tpu.memory_space<vmem>>, vector<1x64xf32>
    %11 = vector.broadcast %10 : vector<1x64xf32> to vector<64x64xf32>
    %12 = arith.addf %9, %11 : vector<64x64xf32>
    %13 = arith.mulf %12, %12 : vector<64x64xf32>
    %14 = arith.mulf %12, %13 : vector<64x64xf32>
    %cst_11 = arith.constant 4.471500e-02 : f32
    %15 = vector.broadcast %cst_11 : f32 to vector<64x64xf32>
    %16 = arith.mulf %15, %14 : vector<64x64xf32>
    %17 = arith.addf %12, %16 : vector<64x64xf32>
    %cst_12 = arith.constant 0.797884583 : f32
    %18 = vector.broadcast %cst_12 : f32 to vector<64x64xf32>
    %19 = arith.mulf %18, %17 : vector<64x64xf32>
    %20 = math.tanh %19 : vector<64x64xf32>
    %cst_13 = arith.constant 1.000000e+00 : f32
    %21 = vector.broadcast %cst_13 : f32 to vector<64x64xf32>
    %22 = arith.addf %21, %20 : vector<64x64xf32>
    %cst_14 = arith.constant 5.000000e-01 : f32
    %23 = vector.broadcast %cst_14 : f32 to vector<64x64xf32>
    %24 = arith.mulf %23, %22 : vector<64x64xf32>
    %25 = arith.mulf %12, %24 : vector<64x64xf32>
    %cst_15 = arith.constant 0.000000e+00 : f32
    %26 = vector.broadcast %cst_15 : f32 to vector<10x10x64xf32>
    %c0_16 = arith.constant 0 : index
    %c0_17 = arith.constant 0 : index
    %c0_18 = arith.constant 0 : index
    %27 = vector.load %arg16[%c0_16, %c0_17, %c0_18] : memref<10x10x64xf32, #tpu.memory_space<vmem>>, vector<10x10x64xf32>
    tpu.vector_store %arg16[%c0_16, %c0_17, %c0_18], %26 {strides = array<i32>} : memref<10x10x64xf32, #tpu.memory_space<vmem>>, vector<10x10x64xf32>,
    %28 = vector.shape_cast %25 : vector<64x64xf32> to vector<8x8x64xf32>
    %c1 = arith.constant 1 : index
    %c1_19 = arith.constant 1 : index
    %c0_20 = arith.constant 0 : index
    %29 = vector.load %arg16[%c1, %c1_19, %c0_20] : memref<10x10x64xf32, #tpu.memory_space<vmem>>, vector<8x8x64xf32>
    tpu.vector_store %arg16[%c1, %c1_19, %c0_20], %28 {strides = array<i32>} : memref<10x10x64xf32, #tpu.memory_space<vmem>>, vector<8x8x64xf32>,
    %c0_21 = arith.constant 0 : index
    %c0_22 = arith.constant 0 : index
    %c0_23 = arith.constant 0 : index
    %30 = vector.load %arg16[%c0_21, %c0_22, %c0_23] : memref<10x10x64xf32, #tpu.memory_space<vmem>>, vector<10x10x64xf32>
    %c0_24 = arith.constant 0 : index
    %c0_25 = arith.constant 0 : index
    %c0_26 = arith.constant 0 : index
    %31 = vector.load %arg6[%c0_24, %c0_25, %c0_26] : memref<3x3x64xf32, #tpu.memory_space<vmem>>, vector<3x3x64xf32>
    %cst_27 = arith.constant 0.000000e+00 : f32
    %32 = vector.broadcast %cst_27 : f32 to vector<8x8x64xf32>
    %33 = vector.extract_strided_slice %30 {offsets = [0, 0, 0], sizes = [8, 8, 64], strides = [1, 1, 1]} : vector<10x10x64xf32> to vector<8x8x64xf32>
    %34 = vector.extract_strided_slice %31 {offsets = [0, 0, 0], sizes = [1, 1, 64], strides = [1, 1, 1]} : vector<3x3x64xf32> to vector<1x1x64xf32>
    %35 = vector.shape_cast %34 : vector<1x1x64xf32> to vector<64xf32>
    %36 = vector.shape_cast %35 : vector<64xf32> to vector<1x1x64xf32>
    %37 = vector.broadcast %36 : vector<1x1x64xf32> to vector<8x8x64xf32>
    %38 = arith.mulf %33, %37 : vector<8x8x64xf32>
    %39 = arith.addf %32, %38 : vector<8x8x64xf32>
    %40 = vector.extract_strided_slice %30 {offsets = [0, 1, 0], sizes = [8, 8, 64], strides = [1, 1, 1]} : vector<10x10x64xf32> to vector<8x8x64xf32>
    %41 = vector.extract_strided_slice %31 {offsets = [0, 1, 0], sizes = [1, 1, 64], strides = [1, 1, 1]} : vector<3x3x64xf32> to vector<1x1x64xf32>
    %42 = vector.shape_cast %41 : vector<1x1x64xf32> to vector<64xf32>
    %43 = vector.shape_cast %42 : vector<64xf32> to vector<1x1x64xf32>
    %44 = vector.broadcast %43 : vector<1x1x64xf32> to vector<8x8x64xf32>
    %45 = arith.mulf %40, %44 : vector<8x8x64xf32>
    %46 = arith.addf %39, %45 : vector<8x8x64xf32>
    %47 = vector.extract_strided_slice %30 {offsets = [0, 2, 0], sizes = [8, 8, 64], strides = [1, 1, 1]} : vector<10x10x64xf32> to vector<8x8x64xf32>
    %48 = vector.extract_strided_slice %31 {offsets = [0, 2, 0], sizes = [1, 1, 64], strides = [1, 1, 1]} : vector<3x3x64xf32> to vector<1x1x64xf32>
    %49 = vector.shape_cast %48 : vector<1x1x64xf32> to vector<64xf32>
    %50 = vector.shape_cast %49 : vector<64xf32> to vector<1x1x64xf32>
    %51 = vector.broadcast %50 : vector<1x1x64xf32> to vector<8x8x64xf32>
    %52 = arith.mulf %47, %51 : vector<8x8x64xf32>
    %53 = arith.addf %46, %52 : vector<8x8x64xf32>
    %54 = vector.extract_strided_slice %30 {offsets = [1, 0, 0], sizes = [8, 8, 64], strides = [1, 1, 1]} : vector<10x10x64xf32> to vector<8x8x64xf32>
    %55 = vector.extract_strided_slice %31 {offsets = [1, 0, 0], sizes = [1, 1, 64], strides = [1, 1, 1]} : vector<3x3x64xf32> to vector<1x1x64xf32>
    %56 = vector.shape_cast %55 : vector<1x1x64xf32> to vector<64xf32>
    %57 = vector.shape_cast %56 : vector<64xf32> to vector<1x1x64xf32>
    %58 = vector.broadcast %57 : vector<1x1x64xf32> to vector<8x8x64xf32>
    %59 = arith.mulf %54, %58 : vector<8x8x64xf32>
    %60 = arith.addf %53, %59 : vector<8x8x64xf32>
    %61 = vector.extract_strided_slice %30 {offsets = [1, 1, 0], sizes = [8, 8, 64], strides = [1, 1, 1]} : vector<10x10x64xf32> to vector<8x8x64xf32>
    %62 = vector.extract_strided_slice %31 {offsets = [1, 1, 0], sizes = [1, 1, 64], strides = [1, 1, 1]} : vector<3x3x64xf32> to vector<1x1x64xf32>
    %63 = vector.shape_cast %62 : vector<1x1x64xf32> to vector<64xf32>
    %64 = vector.shape_cast %63 : vector<64xf32> to vector<1x1x64xf32>
    %65 = vector.broadcast %64 : vector<1x1x64xf32> to vector<8x8x64xf32>
    %66 = arith.mulf %61, %65 : vector<8x8x64xf32>
    %67 = arith.addf %60, %66 : vector<8x8x64xf32>
    %68 = vector.extract_strided_slice %30 {offsets = [1, 2, 0], sizes = [8, 8, 64], strides = [1, 1, 1]} : vector<10x10x64xf32> to vector<8x8x64xf32>
    %69 = vector.extract_strided_slice %31 {offsets = [1, 2, 0], sizes = [1, 1, 64], strides = [1, 1, 1]} : vector<3x3x64xf32> to vector<1x1x64xf32>
    %70 = vector.shape_cast %69 : vector<1x1x64xf32> to vector<64xf32>
    %71 = vector.shape_cast %70 : vector<64xf32> to vector<1x1x64xf32>
    %72 = vector.broadcast %71 : vector<1x1x64xf32> to vector<8x8x64xf32>
    %73 = arith.mulf %68, %72 : vector<8x8x64xf32>
    %74 = arith.addf %67, %73 : vector<8x8x64xf32>
    %75 = vector.extract_strided_slice %30 {offsets = [2, 0, 0], sizes = [8, 8, 64], strides = [1, 1, 1]} : vector<10x10x64xf32> to vector<8x8x64xf32>
    %76 = vector.extract_strided_slice %31 {offsets = [2, 0, 0], sizes = [1, 1, 64], strides = [1, 1, 1]} : vector<3x3x64xf32> to vector<1x1x64xf32>
    %77 = vector.shape_cast %76 : vector<1x1x64xf32> to vector<64xf32>
    %78 = vector.shape_cast %77 : vector<64xf32> to vector<1x1x64xf32>
    %79 = vector.broadcast %78 : vector<1x1x64xf32> to vector<8x8x64xf32>
    %80 = arith.mulf %75, %79 : vector<8x8x64xf32>
    %81 = arith.addf %74, %80 : vector<8x8x64xf32>
    %82 = vector.extract_strided_slice %30 {offsets = [2, 1, 0], sizes = [8, 8, 64], strides = [1, 1, 1]} : vector<10x10x64xf32> to vector<8x8x64xf32>
    %83 = vector.extract_strided_slice %31 {offsets = [2, 1, 0], sizes = [1, 1, 64], strides = [1, 1, 1]} : vector<3x3x64xf32> to vector<1x1x64xf32>
    %84 = vector.shape_cast %83 : vector<1x1x64xf32> to vector<64xf32>
    %85 = vector.shape_cast %84 : vector<64xf32> to vector<1x1x64xf32>
    %86 = vector.broadcast %85 : vector<1x1x64xf32> to vector<8x8x64xf32>
    %87 = arith.mulf %82, %86 : vector<8x8x64xf32>
    %88 = arith.addf %81, %87 : vector<8x8x64xf32>
    %89 = vector.extract_strided_slice %30 {offsets = [2, 2, 0], sizes = [8, 8, 64], strides = [1, 1, 1]} : vector<10x10x64xf32> to vector<8x8x64xf32>
    %90 = vector.extract_strided_slice %31 {offsets = [2, 2, 0], sizes = [1, 1, 64], strides = [1, 1, 1]} : vector<3x3x64xf32> to vector<1x1x64xf32>
    %91 = vector.shape_cast %90 : vector<1x1x64xf32> to vector<64xf32>
    %92 = vector.shape_cast %91 : vector<64xf32> to vector<1x1x64xf32>
    %93 = vector.broadcast %92 : vector<1x1x64xf32> to vector<8x8x64xf32>
    %94 = arith.mulf %89, %93 : vector<8x8x64xf32>
    %95 = arith.addf %88, %94 : vector<8x8x64xf32>
    %c0_28 = arith.constant 0 : index
    %c0_29 = arith.constant 0 : index
    %96 = vector.load %arg7[%c0_28, %c0_29] : memref<1x64xf32, #tpu.memory_space<vmem>>, vector<1x64xf32>
    %97 = vector.shape_cast %96 : vector<1x64xf32> to vector<1x1x64xf32>
    %98 = vector.broadcast %97 : vector<1x1x64xf32> to vector<8x8x64xf32>
    %99 = arith.addf %95, %98 : vector<8x8x64xf32>
    %100 = arith.mulf %99, %99 : vector<8x8x64xf32>
    %101 = arith.mulf %99, %100 : vector<8x8x64xf32>
    %cst_30 = arith.constant 4.471500e-02 : f32
    %102 = vector.broadcast %cst_30 : f32 to vector<8x8x64xf32>
    %103 = arith.mulf %102, %101 : vector<8x8x64xf32>
    %104 = arith.addf %99, %103 : vector<8x8x64xf32>
    %cst_31 = arith.constant 0.797884583 : f32
    %105 = vector.broadcast %cst_31 : f32 to vector<8x8x64xf32>
    %106 = arith.mulf %105, %104 : vector<8x8x64xf32>
    %107 = math.tanh %106 : vector<8x8x64xf32>
    %cst_32 = arith.constant 1.000000e+00 : f32
    %108 = vector.broadcast %cst_32 : f32 to vector<8x8x64xf32>
    %109 = arith.addf %108, %107 : vector<8x8x64xf32>
    %cst_33 = arith.constant 5.000000e-01 : f32
    %110 = vector.broadcast %cst_33 : f32 to vector<8x8x64xf32>
    %111 = arith.mulf %110, %109 : vector<8x8x64xf32>
    %112 = arith.mulf %99, %111 : vector<8x8x64xf32>
    %113 = vector.shape_cast %112 : vector<8x8x64xf32> to vector<64x64xf32>
    %c0_34 = arith.constant 0 : index
    %c0_35 = arith.constant 0 : index
    %c0_36 = arith.constant 0 : index
    %114 = vector.load %arg12[%c0_34, %c0_35, %c0_36] : memref<1x64x64xf32, #tpu.memory_space<vmem>>, vector<1x64x64xf32>
    %115 = vector.shape_cast %114 : vector<1x64x64xf32> to vector<64x64xf32>
    %116 = vector.shape_cast %113 : vector<64x64xf32> to vector<1x64x64xf32>
    tpu.vector_store %arg12[%c0_34, %c0_35, %c0_36], %116 {strides = array<i32>} : memref<1x64x64xf32, #tpu.memory_space<vmem>>, vector<1x64x64xf32>,
    %117 = arith.truncf %113 : vector<64x64xf32> to vector<64x64xbf16>
    %c0_37 = arith.constant 0 : index
    %c0_38 = arith.constant 0 : index
    %118 = vector.load %arg8[%c0_37, %c0_38] : memref<64x32xbf16, #tpu.memory_space<vmem>>, vector<64x32xbf16>
    %cst_39 = arith.constant dense<0.000000e+00> : vector<64x32xf32>
    %119 = tpu.matmul %117, %118, %cst_39 {dimension_numbers = #tpu.dot_dimension_numbers<[1], [0], [0], [1], [0, 0, 1, 1], [], []>} : vector<64x64xbf16>, vector<64x32xbf16>, vector<64x32xf32> -> vector<64x32xf32>
    %c0_40 = arith.constant 0 : index
    %c0_41 = arith.constant 0 : index
    %120 = vector.load %arg9[%c0_40, %c0_41] : memref<1x32xf32, #tpu.memory_space<vmem>>, vector<1x32xf32>
    %121 = vector.broadcast %120 : vector<1x32xf32> to vector<64x32xf32>
    %122 = arith.addf %119, %121 : vector<64x32xf32>
    %c0_42 = arith.constant 0 : index
    %c0_43 = arith.constant 0 : index
    %c0_44 = arith.constant 0 : index
    %123 = vector.load %arg13[%c0_42, %c0_43, %c0_44] : memref<1x64x32xf32, #tpu.memory_space<vmem>>, vector<1x64x32xf32>
    %124 = vector.shape_cast %123 : vector<1x64x32xf32> to vector<64x32xf32>
    %125 = vector.shape_cast %122 : vector<64x32xf32> to vector<1x64x32xf32>
    tpu.vector_store %arg13[%c0_42, %c0_43, %c0_44], %125 {strides = array<i32>} : memref<1x64x32xf32, #tpu.memory_space<vmem>>, vector<1x64x32xf32>,
    %126 = arith.addf %122, %6 : vector<64x32xf32>
    %127 = arith.mulf %126, %126 : vector<64x32xf32>
    %128 = arith.mulf %126, %127 : vector<64x32xf32>
    %cst_45 = arith.constant 4.471500e-02 : f32
    %129 = vector.broadcast %cst_45 : f32 to vector<64x32xf32>
    %130 = arith.mulf %129, %128 : vector<64x32xf32>
    %131 = arith.addf %126, %130 : vector<64x32xf32>
    %cst_46 = arith.constant 0.797884583 : f32
    %132 = vector.broadcast %cst_46 : f32 to vector<64x32xf32>
    %133 = arith.mulf %132, %131 : vector<64x32xf32>
    %134 = math.tanh %133 : vector<64x32xf32>
    %cst_47 = arith.constant 1.000000e+00 : f32
    %135 = vector.broadcast %cst_47 : f32 to vector<64x32xf32>
    %136 = arith.addf %135, %134 : vector<64x32xf32>
    %cst_48 = arith.constant 5.000000e-01 : f32
    %137 = vector.broadcast %cst_48 : f32 to vector<64x32xf32>
    %138 = arith.mulf %137, %136 : vector<64x32xf32>
    %139 = arith.mulf %126, %138 : vector<64x32xf32>
    %c0_49 = arith.constant 0 : index
    %c0_50 = arith.constant 0 : index
    %c0_51 = arith.constant 0 : index
    %140 = vector.load %arg14[%c0_49, %c0_50, %c0_51] : memref<1x64x32xf32, #tpu.memory_space<vmem>>, vector<1x64x32xf32>
    %141 = vector.shape_cast %140 : vector<1x64x32xf32> to vector<64x32xf32>
    %142 = vector.shape_cast %139 : vector<64x32xf32> to vector<1x64x32xf32>
    tpu.vector_store %arg14[%c0_49, %c0_50, %c0_51], %142 {strides = array<i32>} : memref<1x64x32xf32, #tpu.memory_space<vmem>>, vector<1x64x32xf32>,
    %143 = arith.truncf %139 : vector<64x32xf32> to vector<64x32xbf16>
    %c0_52 = arith.constant 0 : index
    %c0_53 = arith.constant 0 : index
    %144 = vector.load %arg10[%c0_52, %c0_53] : memref<32x32xbf16, #tpu.memory_space<vmem>>, vector<32x32xbf16>
    %cst_54 = arith.constant dense<0.000000e+00> : vector<64x32xf32>
    %145 = tpu.matmul %143, %144, %cst_54 {dimension_numbers = #tpu.dot_dimension_numbers<[1], [0], [0], [1], [0, 0, 1, 1], [], []>} : vector<64x32xbf16>, vector<32x32xbf16>, vector<64x32xf32> -> vector<64x32xf32>
    %c0_55 = arith.constant 0 : index
    %c0_56 = arith.constant 0 : index
    %146 = vector.load %arg11[%c0_55, %c0_56] : memref<1x32xf32, #tpu.memory_space<vmem>>, vector<1x32xf32>
    %147 = vector.broadcast %146 : vector<1x32xf32> to vector<64x32xf32>
    %148 = arith.addf %145, %147 : vector<64x32xf32>
    %c0_57 = arith.constant 0 : index
    %c0_58 = arith.constant 0 : index
    %c0_59 = arith.constant 0 : index
    %149 = vector.load %arg15[%c0_57, %c0_58, %c0_59] : memref<1x64x32xf32, #tpu.memory_space<vmem>>, vector<1x64x32xf32>
    %150 = vector.shape_cast %149 : vector<1x64x32xf32> to vector<64x32xf32>
    %151 = vector.shape_cast %148 : vector<64x32xf32> to vector<1x64x32xf32>
    tpu.vector_store %arg15[%c0_57, %c0_58, %c0_59], %151 {strides = array<i32>} : memref<1x64x32xf32, #tpu.memory_space<vmem>>, vector<1x64x32xf32>,
    return
  }
  func.func @transform_0(%arg0: i32) -> (i32, i32, i32) {
    %c0_i32 = arith.constant 0 : i32
    %c0_i32_0 = arith.constant 0 : i32
    %c0_i32_1 = arith.constant 0 : i32
    return %arg0, %c0_i32, %c0_i32_0 : i32, i32, i32
  }
  func.func @transform_1(%arg0: i32) -> (i32, i32) {
    %c0_i32 = arith.constant 0 : i32
    %c0_i32_0 = arith.constant 0 : i32
    %c0_i32_1 = arith.constant 0 : i32
    return %c0_i32, %c0_i32_0 : i32, i32
  }
  func.func @transform_2(%arg0: i32) -> (i32, i32) {
    %c0_i32 = arith.constant 0 : i32
    %c0_i32_0 = arith.constant 0 : i32
    %c0_i32_1 = arith.constant 0 : i32
    return %c0_i32, %c0_i32_0 : i32, i32
  }
  func.func @transform_3(%arg0: i32) -> (i32, i32) {
    %c0_i32 = arith.constant 0 : i32
    %c0_i32_0 = arith.constant 0 : i32
    %c0_i32_1 = arith.constant 0 : i32
    return %c0_i32, %c0_i32_0 : i32, i32
  }
  func.func @transform_4(%arg0: i32) -> (i32, i32) {
    %c0_i32 = arith.constant 0 : i32
    %c0_i32_0 = arith.constant 0 : i32
    %c0_i32_1 = arith.constant 0 : i32
    return %c0_i32, %c0_i32_0 : i32, i32
  }
  func.func @transform_5(%arg0: i32) -> (i32, i32, i32) {
    %c0_i32 = arith.constant 0 : i32
    %c0_i32_0 = arith.constant 0 : i32
    %c0_i32_1 = arith.constant 0 : i32
    %c0_i32_2 = arith.constant 0 : i32
    return %c0_i32, %c0_i32_0, %c0_i32_1 : i32, i32, i32
  }
  func.func @transform_6(%arg0: i32) -> (i32, i32) {
    %c0_i32 = arith.constant 0 : i32
    %c0_i32_0 = arith.constant 0 : i32
    %c0_i32_1 = arith.constant 0 : i32
    return %c0_i32, %c0_i32_0 : i32, i32
  }
  func.func @transform_7(%arg0: i32) -> (i32, i32) {
    %c0_i32 = arith.constant 0 : i32
    %c0_i32_0 = arith.constant 0 : i32
    %c0_i32_1 = arith.constant 0 : i32
    return %c0_i32, %c0_i32_0 : i32, i32
  }
  func.func @transform_8(%arg0: i32) -> (i32, i32) {
    %c0_i32 = arith.constant 0 : i32
    %c0_i32_0 = arith.constant 0 : i32
    %c0_i32_1 = arith.constant 0 : i32
    return %c0_i32, %c0_i32_0 : i32, i32
  }
  func.func @transform_9(%arg0: i32) -> (i32, i32) {
    %c0_i32 = arith.constant 0 : i32
    %c0_i32_0 = arith.constant 0 : i32
    %c0_i32_1 = arith.constant 0 : i32
    return %c0_i32, %c0_i32_0 : i32, i32
  }
  func.func @transform_10(%arg0: i32) -> (i32, i32) {
    %c0_i32 = arith.constant 0 : i32
    %c0_i32_0 = arith.constant 0 : i32
    %c0_i32_1 = arith.constant 0 : i32
    return %c0_i32, %c0_i32_0 : i32, i32
  }
  func.func @transform_11(%arg0: i32) -> (i32, i32, i32) {
    %c0_i32 = arith.constant 0 : i32
    %c0_i32_0 = arith.constant 0 : i32
    %c0_i32_1 = arith.constant 0 : i32
    return %arg0, %c0_i32, %c0_i32_0 : i32, i32, i32
  }
  func.func @transform_12(%arg0: i32) -> (i32, i32, i32) {
    %c0_i32 = arith.constant 0 : i32
    %c0_i32_0 = arith.constant 0 : i32
    %c0_i32_1 = arith.constant 0 : i32
    return %arg0, %c0_i32, %c0_i32_0 : i32, i32, i32
  }
  func.func @transform_13(%arg0: i32) -> (i32, i32, i32) {
    %c0_i32 = arith.constant 0 : i32
    %c0_i32_0 = arith.constant 0 : i32
    %c0_i32_1 = arith.constant 0 : i32
    return %arg0, %c0_i32, %c0_i32_0 : i32, i32, i32
  }
  func.func @transform_14(%arg0: i32) -> (i32, i32, i32) {
    %c0_i32 = arith.constant 0 : i32
    %c0_i32_0 = arith.constant 0 : i32
    %c0_i32_1 = arith.constant 0 : i32
    return %arg0, %c0_i32, %c0_i32_0 : i32, i32, i32
  }
}

module attributes {stable_mosaic.version = 11 : i64} {
  func.func @_wattn_kernel(%arg0: i32, %arg1: memref<4x16x32xf32, #tpu.memory_space<vmem>>, %arg2: memref<1x32xf32, #tpu.memory_space<vmem>>, %arg3: memref<1x32xf32, #tpu.memory_space<vmem>>, %arg4: memref<32x96xbf16, #tpu.memory_space<vmem>>, %arg5: memref<1x96xf32, #tpu.memory_space<vmem>>, %arg6: memref<2x16x16xf32, #tpu.memory_space<vmem>>, %arg7: memref<32x32xbf16, #tpu.memory_space<vmem>>, %arg8: memref<1x32xf32, #tpu.memory_space<vmem>>, %arg9: memref<4x16x32xf32, #tpu.memory_space<vmem>>, %arg10: memref<4x16x32xf32, #tpu.memory_space<vmem>>) attributes {dimension_semantics = [#tpu.dimension_semantics<parallel>], iteration_bounds = array<i64: 2>, scalar_prefetch = 0 : i64, scratch_operands = 1 : i64, tpu.core_type = #tpu.core_type<tc>, window_params = [{transform_indices = @transform_0, window_bounds = array<i64: 4, 16, 32>}, {pipeline_mode = #tpu.pipeline_mode<synchronous>, transform_indices = @transform_1, window_bounds = array<i64: 1, 32>}, {pipeline_mode = #tpu.pipeline_mode<synchronous>, transform_indices = @transform_2, window_bounds = array<i64: 1, 32>}, {pipeline_mode = #tpu.pipeline_mode<synchronous>, transform_indices = @transform_3, window_bounds = array<i64: 32, 96>}, {pipeline_mode = #tpu.pipeline_mode<synchronous>, transform_indices = @transform_4, window_bounds = array<i64: 1, 96>}, {pipeline_mode = #tpu.pipeline_mode<synchronous>, transform_indices = @transform_5, window_bounds = array<i64: 2, 16, 16>}, {pipeline_mode = #tpu.pipeline_mode<synchronous>, transform_indices = @transform_6, window_bounds = array<i64: 32, 32>}, {pipeline_mode = #tpu.pipeline_mode<synchronous>, transform_indices = @transform_7, window_bounds = array<i64: 1, 32>}, {transform_indices = @transform_8, window_bounds = array<i64: 4, 16, 32>}]} {
    %c0 = arith.constant 0 : index
    %c0_0 = arith.constant 0 : index
    %c0_1 = arith.constant 0 : index
    %0 = vector.load %arg1[%c0, %c0_0, %c0_1] : memref<4x16x32xf32, #tpu.memory_space<vmem>>, vector<4x16x32xf32>
    %cst = arith.constant dense<0.000000e+00> : vector<4x16xf32>
    %1 = vector.multi_reduction <add>, %0, %cst [2] : vector<4x16x32xf32> to vector<4x16xf32>
    %2 = vector.shape_cast %1 : vector<4x16xf32> to vector<4x16x1xf32>
    %cst_2 = arith.constant 3.200000e+01 : f32
    %3 = vector.broadcast %cst_2 : f32 to vector<4x16x1xf32>
    %4 = arith.divf %2, %3 : vector<4x16x1xf32>
    %5 = vector.broadcast %4 : vector<4x16x1xf32> to vector<4x16x32xf32>
    %6 = arith.subf %0, %5 : vector<4x16x32xf32>
    %7 = arith.mulf %6, %6 : vector<4x16x32xf32>
    %cst_3 = arith.constant dense<0.000000e+00> : vector<4x16xf32>
    %8 = vector.multi_reduction <add>, %7, %cst_3 [2] : vector<4x16x32xf32> to vector<4x16xf32>
    %9 = vector.shape_cast %8 : vector<4x16xf32> to vector<4x16x1xf32>
    %cst_4 = arith.constant 3.200000e+01 : f32
    %10 = vector.broadcast %cst_4 : f32 to vector<4x16x1xf32>
    %11 = arith.divf %9, %10 : vector<4x16x1xf32>
    %12 = vector.broadcast %4 : vector<4x16x1xf32> to vector<4x16x32xf32>
    %13 = arith.subf %0, %12 : vector<4x16x32xf32>
    %cst_5 = arith.constant 9.99999974E-6 : f32
    %14 = vector.broadcast %cst_5 : f32 to vector<4x16x1xf32>
    %15 = arith.addf %11, %14 : vector<4x16x1xf32>
    %16 = math.rsqrt %15 : vector<4x16x1xf32>
    %17 = vector.broadcast %16 : vector<4x16x1xf32> to vector<4x16x32xf32>
    %18 = arith.mulf %13, %17 : vector<4x16x32xf32>
    %c0_6 = arith.constant 0 : index
    %c0_7 = arith.constant 0 : index
    %19 = vector.load %arg2[%c0_6, %c0_7] : memref<1x32xf32, #tpu.memory_space<vmem>>, vector<1x32xf32>
    %20 = vector.shape_cast %19 : vector<1x32xf32> to vector<1x1x32xf32>
    %21 = vector.broadcast %20 : vector<1x1x32xf32> to vector<4x16x32xf32>
    %22 = arith.mulf %18, %21 : vector<4x16x32xf32>
    %c0_8 = arith.constant 0 : index
    %c0_9 = arith.constant 0 : index
    %23 = vector.load %arg3[%c0_8, %c0_9] : memref<1x32xf32, #tpu.memory_space<vmem>>, vector<1x32xf32>
    %24 = vector.shape_cast %23 : vector<1x32xf32> to vector<1x1x32xf32>
    %25 = vector.broadcast %24 : vector<1x1x32xf32> to vector<4x16x32xf32>
    %26 = arith.addf %22, %25 : vector<4x16x32xf32>
    %27 = vector.shape_cast %26 : vector<4x16x32xf32> to vector<64x32xf32>
    %28 = arith.truncf %27 : vector<64x32xf32> to vector<64x32xbf16>
    %c0_10 = arith.constant 0 : index
    %c0_11 = arith.constant 0 : index
    %29 = vector.load %arg4[%c0_10, %c0_11] : memref<32x96xbf16, #tpu.memory_space<vmem>>, vector<32x96xbf16>
    %cst_12 = arith.constant dense<0.000000e+00> : vector<64x96xf32>
    %30 = tpu.matmul %28, %29, %cst_12 {dimension_numbers = #tpu.dot_dimension_numbers<[1], [0], [0], [1], [0, 0, 1, 1], [], []>} : vector<64x32xbf16>, vector<32x96xbf16>, vector<64x96xf32> -> vector<64x96xf32>
    %c0_13 = arith.constant 0 : index
    %c0_14 = arith.constant 0 : index
    %31 = vector.load %arg5[%c0_13, %c0_14] : memref<1x96xf32, #tpu.memory_space<vmem>>, vector<1x96xf32>
    %32 = vector.broadcast %31 : vector<1x96xf32> to vector<64x96xf32>
    %33 = arith.addf %30, %32 : vector<64x96xf32>
    %34 = vector.shape_cast %33 : vector<64x96xf32> to vector<4x16x96xf32>
    %35 = vector.extract_strided_slice %34 {offsets = [0, 0, 0], sizes = [4, 16, 16], strides = [1, 1, 1]} : vector<4x16x96xf32> to vector<4x16x16xf32>
    %36 = vector.extract_strided_slice %34 {offsets = [0, 0, 16], sizes = [4, 16, 16], strides = [1, 1, 1]} : vector<4x16x96xf32> to vector<4x16x16xf32>
    %37 = tpu.concatenate %35, %36 in 0 : vector<4x16x16xf32>, vector<4x16x16xf32> -> vector<8x16x16xf32>
    %38 = vector.extract_strided_slice %34 {offsets = [0, 0, 32], sizes = [4, 16, 16], strides = [1, 1, 1]} : vector<4x16x96xf32> to vector<4x16x16xf32>
    %39 = vector.extract_strided_slice %34 {offsets = [0, 0, 48], sizes = [4, 16, 16], strides = [1, 1, 1]} : vector<4x16x96xf32> to vector<4x16x16xf32>
    %40 = tpu.concatenate %38, %39 in 0 : vector<4x16x16xf32>, vector<4x16x16xf32> -> vector<8x16x16xf32>
    %41 = vector.extract_strided_slice %34 {offsets = [0, 0, 64], sizes = [4, 16, 16], strides = [1, 1, 1]} : vector<4x16x96xf32> to vector<4x16x16xf32>
    %42 = vector.extract_strided_slice %34 {offsets = [0, 0, 80], sizes = [4, 16, 16], strides = [1, 1, 1]} : vector<4x16x96xf32> to vector<4x16x16xf32>
    %43 = tpu.concatenate %41, %42 in 0 : vector<4x16x16xf32>, vector<4x16x16xf32> -> vector<8x16x16xf32>
    %c0_15 = arith.constant 0 : index
    %c0_16 = arith.constant 0 : index
    %c0_17 = arith.constant 0 : index
    %44 = vector.load %arg6[%c0_15, %c0_16, %c0_17] : memref<2x16x16xf32, #tpu.memory_space<vmem>>, vector<1x16x16xf32>
    %45 = vector.shape_cast %44 : vector<1x16x16xf32> to vector<16x16xf32>
    %46 = vector.shape_cast %45 : vector<16x16xf32> to vector<1x16x16xf32>
    %47 = vector.shape_cast %46 : vector<1x16x16xf32> to vector<1x16x16xf32>
    %48 = vector.broadcast %47 : vector<1x16x16xf32> to vector<4x16x16xf32>
    %c1 = arith.constant 1 : index
    %c0_18 = arith.constant 0 : index
    %c0_19 = arith.constant 0 : index
    %49 = vector.load %arg6[%c1, %c0_18, %c0_19] : memref<2x16x16xf32, #tpu.memory_space<vmem>>, vector<1x16x16xf32>
    %50 = vector.shape_cast %49 : vector<1x16x16xf32> to vector<16x16xf32>
    %51 = vector.shape_cast %50 : vector<16x16xf32> to vector<1x16x16xf32>
    %52 = vector.shape_cast %51 : vector<1x16x16xf32> to vector<1x16x16xf32>
    %53 = vector.broadcast %52 : vector<1x16x16xf32> to vector<4x16x16xf32>
    %54 = tpu.concatenate %48, %53 in 0 : vector<4x16x16xf32>, vector<4x16x16xf32> -> vector<8x16x16xf32>
    %55 = arith.truncf %37 : vector<8x16x16xf32> to vector<8x16x16xbf16>
    %56 = arith.truncf %40 : vector<8x16x16xf32> to vector<8x16x16xbf16>
    "tpu.trace_start"() <{level = 10 : i32, message = "bnd,bmd->bnm"}> : () -> ()
    %cst_20 = arith.constant dense<0.000000e+00> : vector<8x16x16xf32>
    %57 = tpu.matmul %55, %56, %cst_20 {dimension_numbers = #tpu.dot_dimension_numbers<[2], [2], [1], [1], [0, 0, 0, 1, 1, 1], [0], [0]>} : vector<8x16x16xbf16>, vector<8x16x16xbf16>, vector<8x16x16xf32> -> vector<8x16x16xf32>
    "tpu.trace_stop"() : () -> ()
    %cst_21 = arith.constant 2.500000e-01 : f32
    %58 = vector.broadcast %cst_21 : f32 to vector<8x16x16xf32>
    %59 = arith.mulf %57, %58 : vector<8x16x16xf32>
    %60 = arith.addf %59, %54 : vector<8x16x16xf32>
    %cst_22 = arith.constant dense<0xFF800000> : vector<8x16xf32>
    %61 = vector.multi_reduction <maximumf>, %60, %cst_22 [2] : vector<8x16x16xf32> to vector<8x16xf32>
    %62 = vector.shape_cast %61 : vector<8x16xf32> to vector<8x16x1xf32>
    %63 = vector.broadcast %62 : vector<8x16x1xf32> to vector<8x16x16xf32>
    %64 = arith.subf %60, %63 : vector<8x16x16xf32>
    %65 = math.exp %64 : vector<8x16x16xf32>
    %cst_23 = arith.constant dense<0.000000e+00> : vector<8x16xf32>
    %66 = vector.multi_reduction <add>, %65, %cst_23 [2] : vector<8x16x16xf32> to vector<8x16xf32>
    %67 = vector.shape_cast %66 : vector<8x16xf32> to vector<8x16x1xf32>
    %68 = tpu.reciprocal %67 {approx = true} : vector<8x16x1xf32> -> vector<8x16x1xf32>
    %69 = vector.broadcast %68 : vector<8x16x1xf32> to vector<8x16x16xf32>
    %70 = arith.mulf %65, %69 : vector<8x16x16xf32>
    %71 = arith.truncf %70 : vector<8x16x16xf32> to vector<8x16x16xbf16>
    %72 = arith.truncf %43 : vector<8x16x16xf32> to vector<8x16x16xbf16>
    "tpu.trace_start"() <{level = 10 : i32, message = "bnm,bmd->bnd"}> : () -> ()
    %cst_24 = arith.constant dense<0.000000e+00> : vector<8x16x16xf32>
    %73 = tpu.matmul %71, %72, %cst_24 {dimension_numbers = #tpu.dot_dimension_numbers<[2], [1], [1], [2], [0, 0, 0, 1, 1, 2], [0], [0]>} : vector<8x16x16xbf16>, vector<8x16x16xbf16>, vector<8x16x16xf32> -> vector<8x16x16xf32>
    "tpu.trace_stop"() : () -> ()
    %74 = vector.extract_strided_slice %73 {offsets = [0, 0, 0], sizes = [4, 16, 16], strides = [1, 1, 1]} : vector<8x16x16xf32> to vector<4x16x16xf32>
    %c0_25 = arith.constant 0 : index
    %c0_26 = arith.constant 0 : index
    %c0_27 = arith.constant 0 : index
    %75 = vector.load %arg10[%c0_25, %c0_26, %c0_27] : memref<4x16x32xf32, #tpu.memory_space<vmem>>, vector<4x16x16xf32>
    tpu.vector_store %arg10[%c0_25, %c0_26, %c0_27], %74 {strides = array<i32>} : memref<4x16x32xf32, #tpu.memory_space<vmem>>, vector<4x16x16xf32>,
    %76 = vector.extract_strided_slice %73 {offsets = [4, 0, 0], sizes = [4, 16, 16], strides = [1, 1, 1]} : vector<8x16x16xf32> to vector<4x16x16xf32>
    %c0_28 = arith.constant 0 : index
    %c0_29 = arith.constant 0 : index
    %c16 = arith.constant 16 : index
    %77 = vector.load %arg10[%c0_28, %c0_29, %c16] : memref<4x16x32xf32, #tpu.memory_space<vmem>>, vector<4x16x16xf32>
    tpu.vector_store %arg10[%c0_28, %c0_29, %c16], %76 {strides = array<i32>} : memref<4x16x32xf32, #tpu.memory_space<vmem>>, vector<4x16x16xf32>,
    %c0_30 = arith.constant 0 : index
    %c0_31 = arith.constant 0 : index
    %c0_32 = arith.constant 0 : index
    %78 = vector.load %arg10[%c0_30, %c0_31, %c0_32] : memref<4x16x32xf32, #tpu.memory_space<vmem>>, vector<4x16x32xf32>
    %79 = vector.shape_cast %78 : vector<4x16x32xf32> to vector<64x32xf32>
    %80 = arith.truncf %79 : vector<64x32xf32> to vector<64x32xbf16>
    %c0_33 = arith.constant 0 : index
    %c0_34 = arith.constant 0 : index
    %81 = vector.load %arg7[%c0_33, %c0_34] : memref<32x32xbf16, #tpu.memory_space<vmem>>, vector<32x32xbf16>
    %cst_35 = arith.constant dense<0.000000e+00> : vector<64x32xf32>
    %82 = tpu.matmul %80, %81, %cst_35 {dimension_numbers = #tpu.dot_dimension_numbers<[1], [0], [0], [1], [0, 0, 1, 1], [], []>} : vector<64x32xbf16>, vector<32x32xbf16>, vector<64x32xf32> -> vector<64x32xf32>
    %c0_36 = arith.constant 0 : index
    %c0_37 = arith.constant 0 : index
    %83 = vector.load %arg8[%c0_36, %c0_37] : memref<1x32xf32, #tpu.memory_space<vmem>>, vector<1x32xf32>
    %84 = vector.broadcast %83 : vector<1x32xf32> to vector<64x32xf32>
    %85 = arith.addf %82, %84 : vector<64x32xf32>
    %86 = vector.shape_cast %85 : vector<64x32xf32> to vector<4x16x32xf32>
    %c0_38 = arith.constant 0 : index
    %c0_39 = arith.constant 0 : index
    %c0_40 = arith.constant 0 : index
    %87 = vector.load %arg9[%c0_38, %c0_39, %c0_40] : memref<4x16x32xf32, #tpu.memory_space<vmem>>, vector<4x16x32xf32>
    tpu.vector_store %arg9[%c0_38, %c0_39, %c0_40], %86 {strides = array<i32>} : memref<4x16x32xf32, #tpu.memory_space<vmem>>, vector<4x16x32xf32>,
    return
  }
  func.func @transform_0(%arg0: i32) -> (i32, i32, i32) {
    %c0_i32 = arith.constant 0 : i32
    %c0_i32_0 = arith.constant 0 : i32
    %c0_i32_1 = arith.constant 0 : i32
    return %arg0, %c0_i32, %c0_i32_0 : i32, i32, i32
  }
  func.func @transform_1(%arg0: i32) -> (i32, i32) {
    %c0_i32 = arith.constant 0 : i32
    %c0_i32_0 = arith.constant 0 : i32
    %c0_i32_1 = arith.constant 0 : i32
    return %c0_i32, %c0_i32_0 : i32, i32
  }
  func.func @transform_2(%arg0: i32) -> (i32, i32) {
    %c0_i32 = arith.constant 0 : i32
    %c0_i32_0 = arith.constant 0 : i32
    %c0_i32_1 = arith.constant 0 : i32
    return %c0_i32, %c0_i32_0 : i32, i32
  }
  func.func @transform_3(%arg0: i32) -> (i32, i32) {
    %c0_i32 = arith.constant 0 : i32
    %c0_i32_0 = arith.constant 0 : i32
    %c0_i32_1 = arith.constant 0 : i32
    return %c0_i32, %c0_i32_0 : i32, i32
  }
  func.func @transform_4(%arg0: i32) -> (i32, i32) {
    %c0_i32 = arith.constant 0 : i32
    %c0_i32_0 = arith.constant 0 : i32
    %c0_i32_1 = arith.constant 0 : i32
    return %c0_i32, %c0_i32_0 : i32, i32
  }
  func.func @transform_5(%arg0: i32) -> (i32, i32, i32) {
    %c0_i32 = arith.constant 0 : i32
    %c0_i32_0 = arith.constant 0 : i32
    %c0_i32_1 = arith.constant 0 : i32
    %c0_i32_2 = arith.constant 0 : i32
    return %c0_i32, %c0_i32_0, %c0_i32_1 : i32, i32, i32
  }
  func.func @transform_6(%arg0: i32) -> (i32, i32) {
    %c0_i32 = arith.constant 0 : i32
    %c0_i32_0 = arith.constant 0 : i32
    %c0_i32_1 = arith.constant 0 : i32
    return %c0_i32, %c0_i32_0 : i32, i32
  }
  func.func @transform_7(%arg0: i32) -> (i32, i32) {
    %c0_i32 = arith.constant 0 : i32
    %c0_i32_0 = arith.constant 0 : i32
    %c0_i32_1 = arith.constant 0 : i32
    return %c0_i32, %c0_i32_0 : i32, i32
  }
  func.func @transform_8(%arg0: i32) -> (i32, i32, i32) {
    %c0_i32 = arith.constant 0 : i32
    %c0_i32_0 = arith.constant 0 : i32
    %c0_i32_1 = arith.constant 0 : i32
    return %arg0, %c0_i32, %c0_i32_0 : i32, i32, i32
  }
}

module attributes {stable_mosaic.version = 11 : i64} {
  func.func @_tail_kernel(%arg0: i32, %arg1: memref<1x64x32xf32, #tpu.memory_space<vmem>>, %arg2: memref<1x64x32xf32, #tpu.memory_space<vmem>>, %arg3: memref<3x3x32xf32, #tpu.memory_space<vmem>>, %arg4: memref<1x32xf32, #tpu.memory_space<vmem>>, %arg5: memref<1x32xf32, #tpu.memory_space<vmem>>, %arg6: memref<1x32xf32, #tpu.memory_space<vmem>>, %arg7: memref<32x64xbf16, #tpu.memory_space<vmem>>, %arg8: memref<1x64xf32, #tpu.memory_space<vmem>>, %arg9: memref<64x32xbf16, #tpu.memory_space<vmem>>, %arg10: memref<1x32xf32, #tpu.memory_space<vmem>>, %arg11: memref<1x64x32xf32, #tpu.memory_space<vmem>>, %arg12: memref<1x64x32xf32, #tpu.memory_space<vmem>>, %arg13: memref<10x10x32xf32, #tpu.memory_space<vmem>>) attributes {dimension_semantics = [#tpu.dimension_semantics<parallel>], iteration_bounds = array<i64: 2>, scalar_prefetch = 0 : i64, scratch_operands = 1 : i64, tpu.core_type = #tpu.core_type<tc>, window_params = [{transform_indices = @transform_0, window_bounds = array<i64: 1, 64, 32>}, {transform_indices = @transform_1, window_bounds = array<i64: 1, 64, 32>}, {pipeline_mode = #tpu.pipeline_mode<synchronous>, transform_indices = @transform_2, window_bounds = array<i64: 3, 3, 32>}, {pipeline_mode = #tpu.pipeline_mode<synchronous>, transform_indices = @transform_3, window_bounds = array<i64: 1, 32>}, {pipeline_mode = #tpu.pipeline_mode<synchronous>, transform_indices = @transform_4, window_bounds = array<i64: 1, 32>}, {pipeline_mode = #tpu.pipeline_mode<synchronous>, transform_indices = @transform_5, window_bounds = array<i64: 1, 32>}, {pipeline_mode = #tpu.pipeline_mode<synchronous>, transform_indices = @transform_6, window_bounds = array<i64: 32, 64>}, {pipeline_mode = #tpu.pipeline_mode<synchronous>, transform_indices = @transform_7, window_bounds = array<i64: 1, 64>}, {pipeline_mode = #tpu.pipeline_mode<synchronous>, transform_indices = @transform_8, window_bounds = array<i64: 64, 32>}, {pipeline_mode = #tpu.pipeline_mode<synchronous>, transform_indices = @transform_9, window_bounds = array<i64: 1, 32>}, {transform_indices = @transform_10, window_bounds = array<i64: 1, 64, 32>}, {transform_indices = @transform_11, window_bounds = array<i64: 1, 64, 32>}]} {
    %c0 = arith.constant 0 : index
    %c0_0 = arith.constant 0 : index
    %c0_1 = arith.constant 0 : index
    %0 = vector.load %arg1[%c0, %c0_0, %c0_1] : memref<1x64x32xf32, #tpu.memory_space<vmem>>, vector<1x64x32xf32>
    %1 = vector.shape_cast %0 : vector<1x64x32xf32> to vector<64x32xf32>
    %c0_2 = arith.constant 0 : index
    %c0_3 = arith.constant 0 : index
    %c0_4 = arith.constant 0 : index
    %2 = vector.load %arg2[%c0_2, %c0_3, %c0_4] : memref<1x64x32xf32, #tpu.memory_space<vmem>>, vector<1x64x32xf32>
    %3 = vector.shape_cast %2 : vector<1x64x32xf32> to vector<64x32xf32>
    %4 = arith.addf %1, %3 : vector<64x32xf32>
    %cst = arith.constant 0.000000e+00 : f32
    %5 = vector.broadcast %cst : f32 to vector<10x10x32xf32>
    %c0_5 = arith.constant 0 : index
    %c0_6 = arith.constant 0 : index
    %c0_7 = arith.constant 0 : index
    %6 = vector.load %arg13[%c0_5, %c0_6, %c0_7] : memref<10x10x32xf32, #tpu.memory_space<vmem>>, vector<10x10x32xf32>
    tpu.vector_store %arg13[%c0_5, %c0_6, %c0_7], %5 {strides = array<i32>} : memref<10x10x32xf32, #tpu.memory_space<vmem>>, vector<10x10x32xf32>,
    %7 = vector.shape_cast %4 : vector<64x32xf32> to vector<8x8x32xf32>
    %c1 = arith.constant 1 : index
    %c1_8 = arith.constant 1 : index
    %c0_9 = arith.constant 0 : index
    %8 = vector.load %arg13[%c1, %c1_8, %c0_9] : memref<10x10x32xf32, #tpu.memory_space<vmem>>, vector<8x8x32xf32>
    tpu.vector_store %arg13[%c1, %c1_8, %c0_9], %7 {strides = array<i32>} : memref<10x10x32xf32, #tpu.memory_space<vmem>>, vector<8x8x32xf32>,
    %c0_10 = arith.constant 0 : index
    %c0_11 = arith.constant 0 : index
    %c0_12 = arith.constant 0 : index
    %9 = vector.load %arg13[%c0_10, %c0_11, %c0_12] : memref<10x10x32xf32, #tpu.memory_space<vmem>>, vector<10x10x32xf32>
    %c0_13 = arith.constant 0 : index
    %c0_14 = arith.constant 0 : index
    %c0_15 = arith.constant 0 : index
    %10 = vector.load %arg3[%c0_13, %c0_14, %c0_15] : memref<3x3x32xf32, #tpu.memory_space<vmem>>, vector<3x3x32xf32>
    %cst_16 = arith.constant 0.000000e+00 : f32
    %11 = vector.broadcast %cst_16 : f32 to vector<8x8x32xf32>
    %12 = vector.extract_strided_slice %9 {offsets = [0, 0, 0], sizes = [8, 8, 32], strides = [1, 1, 1]} : vector<10x10x32xf32> to vector<8x8x32xf32>
    %13 = vector.extract_strided_slice %10 {offsets = [0, 0, 0], sizes = [1, 1, 32], strides = [1, 1, 1]} : vector<3x3x32xf32> to vector<1x1x32xf32>
    %14 = vector.shape_cast %13 : vector<1x1x32xf32> to vector<32xf32>
    %15 = vector.shape_cast %14 : vector<32xf32> to vector<1x1x32xf32>
    %16 = vector.broadcast %15 : vector<1x1x32xf32> to vector<8x8x32xf32>
    %17 = arith.mulf %12, %16 : vector<8x8x32xf32>
    %18 = arith.addf %11, %17 : vector<8x8x32xf32>
    %19 = vector.extract_strided_slice %9 {offsets = [0, 1, 0], sizes = [8, 8, 32], strides = [1, 1, 1]} : vector<10x10x32xf32> to vector<8x8x32xf32>
    %20 = vector.extract_strided_slice %10 {offsets = [0, 1, 0], sizes = [1, 1, 32], strides = [1, 1, 1]} : vector<3x3x32xf32> to vector<1x1x32xf32>
    %21 = vector.shape_cast %20 : vector<1x1x32xf32> to vector<32xf32>
    %22 = vector.shape_cast %21 : vector<32xf32> to vector<1x1x32xf32>
    %23 = vector.broadcast %22 : vector<1x1x32xf32> to vector<8x8x32xf32>
    %24 = arith.mulf %19, %23 : vector<8x8x32xf32>
    %25 = arith.addf %18, %24 : vector<8x8x32xf32>
    %26 = vector.extract_strided_slice %9 {offsets = [0, 2, 0], sizes = [8, 8, 32], strides = [1, 1, 1]} : vector<10x10x32xf32> to vector<8x8x32xf32>
    %27 = vector.extract_strided_slice %10 {offsets = [0, 2, 0], sizes = [1, 1, 32], strides = [1, 1, 1]} : vector<3x3x32xf32> to vector<1x1x32xf32>
    %28 = vector.shape_cast %27 : vector<1x1x32xf32> to vector<32xf32>
    %29 = vector.shape_cast %28 : vector<32xf32> to vector<1x1x32xf32>
    %30 = vector.broadcast %29 : vector<1x1x32xf32> to vector<8x8x32xf32>
    %31 = arith.mulf %26, %30 : vector<8x8x32xf32>
    %32 = arith.addf %25, %31 : vector<8x8x32xf32>
    %33 = vector.extract_strided_slice %9 {offsets = [1, 0, 0], sizes = [8, 8, 32], strides = [1, 1, 1]} : vector<10x10x32xf32> to vector<8x8x32xf32>
    %34 = vector.extract_strided_slice %10 {offsets = [1, 0, 0], sizes = [1, 1, 32], strides = [1, 1, 1]} : vector<3x3x32xf32> to vector<1x1x32xf32>
    %35 = vector.shape_cast %34 : vector<1x1x32xf32> to vector<32xf32>
    %36 = vector.shape_cast %35 : vector<32xf32> to vector<1x1x32xf32>
    %37 = vector.broadcast %36 : vector<1x1x32xf32> to vector<8x8x32xf32>
    %38 = arith.mulf %33, %37 : vector<8x8x32xf32>
    %39 = arith.addf %32, %38 : vector<8x8x32xf32>
    %40 = vector.extract_strided_slice %9 {offsets = [1, 1, 0], sizes = [8, 8, 32], strides = [1, 1, 1]} : vector<10x10x32xf32> to vector<8x8x32xf32>
    %41 = vector.extract_strided_slice %10 {offsets = [1, 1, 0], sizes = [1, 1, 32], strides = [1, 1, 1]} : vector<3x3x32xf32> to vector<1x1x32xf32>
    %42 = vector.shape_cast %41 : vector<1x1x32xf32> to vector<32xf32>
    %43 = vector.shape_cast %42 : vector<32xf32> to vector<1x1x32xf32>
    %44 = vector.broadcast %43 : vector<1x1x32xf32> to vector<8x8x32xf32>
    %45 = arith.mulf %40, %44 : vector<8x8x32xf32>
    %46 = arith.addf %39, %45 : vector<8x8x32xf32>
    %47 = vector.extract_strided_slice %9 {offsets = [1, 2, 0], sizes = [8, 8, 32], strides = [1, 1, 1]} : vector<10x10x32xf32> to vector<8x8x32xf32>
    %48 = vector.extract_strided_slice %10 {offsets = [1, 2, 0], sizes = [1, 1, 32], strides = [1, 1, 1]} : vector<3x3x32xf32> to vector<1x1x32xf32>
    %49 = vector.shape_cast %48 : vector<1x1x32xf32> to vector<32xf32>
    %50 = vector.shape_cast %49 : vector<32xf32> to vector<1x1x32xf32>
    %51 = vector.broadcast %50 : vector<1x1x32xf32> to vector<8x8x32xf32>
    %52 = arith.mulf %47, %51 : vector<8x8x32xf32>
    %53 = arith.addf %46, %52 : vector<8x8x32xf32>
    %54 = vector.extract_strided_slice %9 {offsets = [2, 0, 0], sizes = [8, 8, 32], strides = [1, 1, 1]} : vector<10x10x32xf32> to vector<8x8x32xf32>
    %55 = vector.extract_strided_slice %10 {offsets = [2, 0, 0], sizes = [1, 1, 32], strides = [1, 1, 1]} : vector<3x3x32xf32> to vector<1x1x32xf32>
    %56 = vector.shape_cast %55 : vector<1x1x32xf32> to vector<32xf32>
    %57 = vector.shape_cast %56 : vector<32xf32> to vector<1x1x32xf32>
    %58 = vector.broadcast %57 : vector<1x1x32xf32> to vector<8x8x32xf32>
    %59 = arith.mulf %54, %58 : vector<8x8x32xf32>
    %60 = arith.addf %53, %59 : vector<8x8x32xf32>
    %61 = vector.extract_strided_slice %9 {offsets = [2, 1, 0], sizes = [8, 8, 32], strides = [1, 1, 1]} : vector<10x10x32xf32> to vector<8x8x32xf32>
    %62 = vector.extract_strided_slice %10 {offsets = [2, 1, 0], sizes = [1, 1, 32], strides = [1, 1, 1]} : vector<3x3x32xf32> to vector<1x1x32xf32>
    %63 = vector.shape_cast %62 : vector<1x1x32xf32> to vector<32xf32>
    %64 = vector.shape_cast %63 : vector<32xf32> to vector<1x1x32xf32>
    %65 = vector.broadcast %64 : vector<1x1x32xf32> to vector<8x8x32xf32>
    %66 = arith.mulf %61, %65 : vector<8x8x32xf32>
    %67 = arith.addf %60, %66 : vector<8x8x32xf32>
    %68 = vector.extract_strided_slice %9 {offsets = [2, 2, 0], sizes = [8, 8, 32], strides = [1, 1, 1]} : vector<10x10x32xf32> to vector<8x8x32xf32>
    %69 = vector.extract_strided_slice %10 {offsets = [2, 2, 0], sizes = [1, 1, 32], strides = [1, 1, 1]} : vector<3x3x32xf32> to vector<1x1x32xf32>
    %70 = vector.shape_cast %69 : vector<1x1x32xf32> to vector<32xf32>
    %71 = vector.shape_cast %70 : vector<32xf32> to vector<1x1x32xf32>
    %72 = vector.broadcast %71 : vector<1x1x32xf32> to vector<8x8x32xf32>
    %73 = arith.mulf %68, %72 : vector<8x8x32xf32>
    %74 = arith.addf %67, %73 : vector<8x8x32xf32>
    %c0_17 = arith.constant 0 : index
    %c0_18 = arith.constant 0 : index
    %75 = vector.load %arg4[%c0_17, %c0_18] : memref<1x32xf32, #tpu.memory_space<vmem>>, vector<1x32xf32>
    %76 = vector.shape_cast %75 : vector<1x32xf32> to vector<1x1x32xf32>
    %77 = vector.broadcast %76 : vector<1x1x32xf32> to vector<8x8x32xf32>
    %78 = arith.addf %74, %77 : vector<8x8x32xf32>
    %79 = vector.shape_cast %78 : vector<8x8x32xf32> to vector<64x32xf32>
    %cst_19 = arith.constant dense<0.000000e+00> : vector<64xf32>
    %80 = vector.multi_reduction <add>, %79, %cst_19 [1] : vector<64x32xf32> to vector<64xf32>
    %81 = vector.shape_cast %80 : vector<64xf32> to vector<64x1xf32>
    %cst_20 = arith.constant 3.200000e+01 : f32
    %82 = vector.broadcast %cst_20 : f32 to vector<64x1xf32>
    %83 = arith.divf %81, %82 : vector<64x1xf32>
    %84 = vector.broadcast %83 : vector<64x1xf32> to vector<64x32xf32>
    %85 = arith.subf %79, %84 : vector<64x32xf32>
    %86 = arith.mulf %85, %85 : vector<64x32xf32>
    %cst_21 = arith.constant dense<0.000000e+00> : vector<64xf32>
    %87 = vector.multi_reduction <add>, %86, %cst_21 [1] : vector<64x32xf32> to vector<64xf32>
    %88 = vector.shape_cast %87 : vector<64xf32> to vector<64x1xf32>
    %cst_22 = arith.constant 3.200000e+01 : f32
    %89 = vector.broadcast %cst_22 : f32 to vector<64x1xf32>
    %90 = arith.divf %88, %89 : vector<64x1xf32>
    %91 = vector.broadcast %83 : vector<64x1xf32> to vector<64x32xf32>
    %92 = arith.subf %79, %91 : vector<64x32xf32>
    %cst_23 = arith.constant 9.99999974E-6 : f32
    %93 = vector.broadcast %cst_23 : f32 to vector<64x1xf32>
    %94 = arith.addf %90, %93 : vector<64x1xf32>
    %95 = math.rsqrt %94 : vector<64x1xf32>
    %96 = vector.broadcast %95 : vector<64x1xf32> to vector<64x32xf32>
    %97 = arith.mulf %92, %96 : vector<64x32xf32>
    %c0_24 = arith.constant 0 : index
    %c0_25 = arith.constant 0 : index
    %98 = vector.load %arg5[%c0_24, %c0_25] : memref<1x32xf32, #tpu.memory_space<vmem>>, vector<1x32xf32>
    %99 = vector.broadcast %98 : vector<1x32xf32> to vector<64x32xf32>
    %100 = arith.mulf %97, %99 : vector<64x32xf32>
    %c0_26 = arith.constant 0 : index
    %c0_27 = arith.constant 0 : index
    %101 = vector.load %arg6[%c0_26, %c0_27] : memref<1x32xf32, #tpu.memory_space<vmem>>, vector<1x32xf32>
    %102 = vector.broadcast %101 : vector<1x32xf32> to vector<64x32xf32>
    %103 = arith.addf %100, %102 : vector<64x32xf32>
    %104 = arith.truncf %103 : vector<64x32xf32> to vector<64x32xbf16>
    %c0_28 = arith.constant 0 : index
    %c0_29 = arith.constant 0 : index
    %105 = vector.load %arg7[%c0_28, %c0_29] : memref<32x64xbf16, #tpu.memory_space<vmem>>, vector<32x64xbf16>
    %cst_30 = arith.constant dense<0.000000e+00> : vector<64x64xf32>
    %106 = tpu.matmul %104, %105, %cst_30 {dimension_numbers = #tpu.dot_dimension_numbers<[1], [0], [0], [1], [0, 0, 1, 1], [], []>} : vector<64x32xbf16>, vector<32x64xbf16>, vector<64x64xf32> -> vector<64x64xf32>
    %c0_31 = arith.constant 0 : index
    %c0_32 = arith.constant 0 : index
    %107 = vector.load %arg8[%c0_31, %c0_32] : memref<1x64xf32, #tpu.memory_space<vmem>>, vector<1x64xf32>
    %108 = vector.broadcast %107 : vector<1x64xf32> to vector<64x64xf32>
    %109 = arith.addf %106, %108 : vector<64x64xf32>
    %110 = arith.mulf %109, %109 : vector<64x64xf32>
    %111 = arith.mulf %109, %110 : vector<64x64xf32>
    %cst_33 = arith.constant 4.471500e-02 : f32
    %112 = vector.broadcast %cst_33 : f32 to vector<64x64xf32>
    %113 = arith.mulf %112, %111 : vector<64x64xf32>
    %114 = arith.addf %109, %113 : vector<64x64xf32>
    %cst_34 = arith.constant 0.797884583 : f32
    %115 = vector.broadcast %cst_34 : f32 to vector<64x64xf32>
    %116 = arith.mulf %115, %114 : vector<64x64xf32>
    %117 = math.tanh %116 : vector<64x64xf32>
    %cst_35 = arith.constant 1.000000e+00 : f32
    %118 = vector.broadcast %cst_35 : f32 to vector<64x64xf32>
    %119 = arith.addf %118, %117 : vector<64x64xf32>
    %cst_36 = arith.constant 5.000000e-01 : f32
    %120 = vector.broadcast %cst_36 : f32 to vector<64x64xf32>
    %121 = arith.mulf %120, %119 : vector<64x64xf32>
    %122 = arith.mulf %109, %121 : vector<64x64xf32>
    %123 = arith.truncf %122 : vector<64x64xf32> to vector<64x64xbf16>
    %c0_37 = arith.constant 0 : index
    %c0_38 = arith.constant 0 : index
    %124 = vector.load %arg9[%c0_37, %c0_38] : memref<64x32xbf16, #tpu.memory_space<vmem>>, vector<64x32xbf16>
    %cst_39 = arith.constant dense<0.000000e+00> : vector<64x32xf32>
    %125 = tpu.matmul %123, %124, %cst_39 {dimension_numbers = #tpu.dot_dimension_numbers<[1], [0], [0], [1], [0, 0, 1, 1], [], []>} : vector<64x64xbf16>, vector<64x32xbf16>, vector<64x32xf32> -> vector<64x32xf32>
    %c0_40 = arith.constant 0 : index
    %c0_41 = arith.constant 0 : index
    %126 = vector.load %arg10[%c0_40, %c0_41] : memref<1x32xf32, #tpu.memory_space<vmem>>, vector<1x32xf32>
    %127 = vector.broadcast %126 : vector<1x32xf32> to vector<64x32xf32>
    %128 = arith.addf %125, %127 : vector<64x32xf32>
    %c0_42 = arith.constant 0 : index
    %c0_43 = arith.constant 0 : index
    %c0_44 = arith.constant 0 : index
    %129 = vector.load %arg11[%c0_42, %c0_43, %c0_44] : memref<1x64x32xf32, #tpu.memory_space<vmem>>, vector<1x64x32xf32>
    %130 = vector.shape_cast %129 : vector<1x64x32xf32> to vector<64x32xf32>
    %131 = vector.shape_cast %128 : vector<64x32xf32> to vector<1x64x32xf32>
    tpu.vector_store %arg11[%c0_42, %c0_43, %c0_44], %131 {strides = array<i32>} : memref<1x64x32xf32, #tpu.memory_space<vmem>>, vector<1x64x32xf32>,
    %132 = arith.addf %79, %128 : vector<64x32xf32>
    %c0_45 = arith.constant 0 : index
    %c0_46 = arith.constant 0 : index
    %c0_47 = arith.constant 0 : index
    %133 = vector.load %arg12[%c0_45, %c0_46, %c0_47] : memref<1x64x32xf32, #tpu.memory_space<vmem>>, vector<1x64x32xf32>
    %134 = vector.shape_cast %133 : vector<1x64x32xf32> to vector<64x32xf32>
    %135 = vector.shape_cast %132 : vector<64x32xf32> to vector<1x64x32xf32>
    tpu.vector_store %arg12[%c0_45, %c0_46, %c0_47], %135 {strides = array<i32>} : memref<1x64x32xf32, #tpu.memory_space<vmem>>, vector<1x64x32xf32>,
    return
  }
  func.func @transform_0(%arg0: i32) -> (i32, i32, i32) {
    %c0_i32 = arith.constant 0 : i32
    %c0_i32_0 = arith.constant 0 : i32
    %c0_i32_1 = arith.constant 0 : i32
    return %arg0, %c0_i32, %c0_i32_0 : i32, i32, i32
  }
  func.func @transform_1(%arg0: i32) -> (i32, i32, i32) {
    %c0_i32 = arith.constant 0 : i32
    %c0_i32_0 = arith.constant 0 : i32
    %c0_i32_1 = arith.constant 0 : i32
    return %arg0, %c0_i32, %c0_i32_0 : i32, i32, i32
  }
  func.func @transform_2(%arg0: i32) -> (i32, i32, i32) {
    %c0_i32 = arith.constant 0 : i32
    %c0_i32_0 = arith.constant 0 : i32
    %c0_i32_1 = arith.constant 0 : i32
    %c0_i32_2 = arith.constant 0 : i32
    return %c0_i32, %c0_i32_0, %c0_i32_1 : i32, i32, i32
  }
  func.func @transform_3(%arg0: i32) -> (i32, i32) {
    %c0_i32 = arith.constant 0 : i32
    %c0_i32_0 = arith.constant 0 : i32
    %c0_i32_1 = arith.constant 0 : i32
    return %c0_i32, %c0_i32_0 : i32, i32
  }
  func.func @transform_4(%arg0: i32) -> (i32, i32) {
    %c0_i32 = arith.constant 0 : i32
    %c0_i32_0 = arith.constant 0 : i32
    %c0_i32_1 = arith.constant 0 : i32
    return %c0_i32, %c0_i32_0 : i32, i32
  }
  func.func @transform_5(%arg0: i32) -> (i32, i32) {
    %c0_i32 = arith.constant 0 : i32
    %c0_i32_0 = arith.constant 0 : i32
    %c0_i32_1 = arith.constant 0 : i32
    return %c0_i32, %c0_i32_0 : i32, i32
  }
  func.func @transform_6(%arg0: i32) -> (i32, i32) {
    %c0_i32 = arith.constant 0 : i32
    %c0_i32_0 = arith.constant 0 : i32
    %c0_i32_1 = arith.constant 0 : i32
    return %c0_i32, %c0_i32_0 : i32, i32
  }
  func.func @transform_7(%arg0: i32) -> (i32, i32) {
    %c0_i32 = arith.constant 0 : i32
    %c0_i32_0 = arith.constant 0 : i32
    %c0_i32_1 = arith.constant 0 : i32
    return %c0_i32, %c0_i32_0 : i32, i32
  }
  func.func @transform_8(%arg0: i32) -> (i32, i32) {
    %c0_i32 = arith.constant 0 : i32
    %c0_i32_0 = arith.constant 0 : i32
    %c0_i32_1 = arith.constant 0 : i32
    return %c0_i32, %c0_i32_0 : i32, i32
  }
  func.func @transform_9(%arg0: i32) -> (i32, i32) {
    %c0_i32 = arith.constant 0 : i32
    %c0_i32_0 = arith.constant 0 : i32
    %c0_i32_1 = arith.constant 0 : i32
    return %c0_i32, %c0_i32_0 : i32, i32
  }
  func.func @transform_10(%arg0: i32) -> (i32, i32, i32) {
    %c0_i32 = arith.constant 0 : i32
    %c0_i32_0 = arith.constant 0 : i32
    %c0_i32_1 = arith.constant 0 : i32
    return %arg0, %c0_i32, %c0_i32_0 : i32, i32, i32
  }
  func.func @transform_11(%arg0: i32) -> (i32, i32, i32) {
    %c0_i32 = arith.constant 0 : i32
    %c0_i32_0 = arith.constant 0 : i32
    %c0_i32_1 = arith.constant 0 : i32
    return %arg0, %c0_i32, %c0_i32_0 : i32, i32, i32
  }
}

</mosaic_0001>

<bundles_post_ra>
// kernel: mobile_sam_forward.4
= control target key start
LH: loop header
LB: loop body
LE: loop exit
PB: predicated region body
PF: predicated region fallthrough
CT: control target
= control target key end

     0   :  { %s694_s12 = smov 0   ;;  %s899_s0 = inlined_call_operand.vmem [shape: bf16[512,27], index: 0, kind: input, shape index: {}]   ;;  %s900_s1 = inlined_call_operand.vmem [shape: bf16[27,16], index: 1, kind: input, shape index: {}]   ;;  %s901_s2 = inlined_call_operand.vmem [shape: f32[1,16], index: 2, kind: input, shape index: {}]   ;;  %s902_s3 = inlined_call_operand.vmem [shape: f32[512,16], index: 3, kind: output, shape index: {}]  }
   0x1 LB: > { %s548_s13 = sadd.s32 4294967295, %s671_s12   ;;  %p552_p0 = scmp.ge.s32.totalorder %s671_s12, 1  ;;  %s671_s12 = sphi %s694_s12, %s13_s12  }
   0x2   : > { %p138_p1 = scmp.lt.s32.totalorder %s671_s12, 5 }
   0x4   : > { %p139_p2 = pnand %p552_p0, %p138_p1 }
   0x5   : > { %s553_s18 = sshll.u32 (!%p139_p2), %s548_s13, 4 }
   0x6   : > { %142 = sbr.rel (%p139_p2) target bundleno = 210 (0xd2), region = 32  ;;  %p163_p3 = scmp.lt.s32.totalorder (!%p139_p2), %s553_s18, 63 }
   0xb   : > { %v595_v0 = vld [vmem:[%s900_s1 + $0x8] sm:$0xf]  ;;  %v616_v1 = vld [vmem:[%s900_s1 + $0x8] sm:$0x30]  ;;  %vm275_vm0 = vcmask 1044480   ;;  %vm276_vm1 = vcmask 1045504  }
   0xc   : > { %v596_v2 = vor.u32 %v616_v1, %v595_v0  ;;  %v673_v3 = vmov 65535   ;;  %s904_s18 = smov (!%p163_p3, %s553_s18), 63  ;;  %v615_v7 = vld [vmem:[%s900_s1] sm:$0xff]  ;;  %vm250_vm2 = vcmask 220160   ;;  %vm475_vm3 = vcmask 130048  }
   0xd   : > { %v277_v4 = vsel %vm275_vm0, 4294967295, %v673_v3  ;;  %s554_s21 = sshll.u32 %s904_s18, 2  ;;  %v728_v16 = vld [vmem:[%s901_s2] ss:$0 sm:$0xff]  ;;  %s556_s27 = sshll.u32 %s904_s18, 3 }
   0xe   : > { %v278_v5 = vsel %vm276_vm1, %v277_v4, 0  ;;  %s166_s24 = scalar_lea.vmem %s899_s0, %s554_s21  ;;  %s800_s30 = scalar_lea.vmem %s902_s3, %s556_s27 }
   0xf   : > { %v280_v6 = vand.u32 %v596_v2, %v278_v5  ;;  %v607_v8 = vld [vmem:[%s166_s24] sm:$0xff]  ;;  %v609_v9 = vld [vmem:[%s166_s24 + $0x10] sm:$0xff]  ;;  %v608_v12 = vld [vmem:[%s166_s24 + $0x8] sm:$0xff] }
  0x10   : > { %v611_v10 = vld [vmem:[%s166_s24 + $0x20] sm:$0xff]  ;;  %v613_v11 = vld [vmem:[%s166_s24 + $0x30] sm:$0xff]  ;;  %v610_v13 = vld [vmem:[%s166_s24 + $0x18] sm:$0xff] }
  0x11   : > { %288 = vmatpush.bf16.msra.mxu0 %v280_v6  ;;  %617 = vmatpush.bf16.msra.mxu1 %v280_v6  ;;  %v612_v14 = vld [vmem:[%s166_s24 + $0x28] sm:$0xff]  ;;  %v614_v15 = vld [vmem:[%s166_s24 + $0x38] sm:$0xff] }
  0x12   : > { %618 = vmatpush.bf16.msra.mxu2 %v280_v6  ;;  %619 = vmatpush.bf16.msra.mxu3 %v280_v6 }
  0x15   : > { %289 = vmatpush.bf16.msra.mxu0 %v615_v7  ;;  %620 = vmatpush.bf16.msra.mxu1 %v615_v7 }
  0x16   : > { %621 = vmatpush.bf16.msra.mxu2 %v615_v7  ;;  %622 = vmatpush.bf16.msra.mxu3 %v615_v7 }
  0x18   : > { %597 = vmatmul.msk.bf16.vlgmr.msra.gmra.mxu0 %vm250_vm2, %v607_v8  ;;  %599 = vmatmul.msk.bf16.vlgmr.msra.gmra.mxu1 %vm250_vm2, %v609_v9 }
  0x19   : > { %601 = vmatmul.msk.bf16.vlgmr.msra.gmra.mxu2 %vm250_vm2, %v611_v10  ;;  %603 = vmatmul.msk.bf16.vlgmr.msra.gmra.mxu3 %vm250_vm2, %v613_v11 }
  0x28   : > { %598 = vmatmul.msk.bf16.gmra.mxu0 %vm250_vm2, %v608_v12  ;;  %600 = vmatmul.msk.bf16.gmra.mxu1 %vm250_vm2, %v610_v13 }
  0x29   : > { %602 = vmatmul.msk.bf16.gmra.mxu2 %vm250_vm2, %v612_v14  ;;  %604 = vmatmul.msk.bf16.gmra.mxu3 %vm250_vm2, %v614_v15 }
  0x95   : > { %v291_v17 = vpop.f32.mrf.mxu0  ;;  %v301_v18 = vpop.f32.mrf.mxu1 }
  0x96   : > { %v731_v19 = vadd.f32 %v728_v16, %v291_v17  ;;  %v734_v20 = vadd.f32 %v728_v16, %v301_v18 }
  0x98   : > { %v331_v21 = vmul.f32 %v731_v19, %v731_v19  ;;  %v335_v22 = vmul.f32 %v734_v20, %v734_v20 }
  0x9a   : > { %v347_v23 = vmul.f32 %v331_v21, %v731_v19  ;;  %v351_v24 = vmul.f32 %v335_v22, %v734_v20 }
  0x9c   : > { %v363_v25 = vmul.f32 0.044715, %v347_v23  ;;  %v367_v26 = vmul.f32 0.044715, %v351_v24  ;;  %v311_v27 = vpop.f32.mrf.mxu2  ;;  %v321_v28 = vpop.f32.mrf.mxu3 }
  0x9d   : > { %v743_v29 = vadd.f32 %v728_v16, %v311_v27  ;;  %v746_v30 = vadd.f32 %v728_v16, %v321_v28  ;;  %v293_v31 = vpop.f32.mrf.mxu0  ;;  %v303_v32 = vpop.f32.mrf.mxu1 }
  0x9e   : > { %v379_v33 = vadd.f32 %v363_v25, %v731_v19  ;;  %v383_v34 = vadd.f32 %v367_v26, %v734_v20  ;;  %v751_v35 = vadd.f32 %v728_v16, %v293_v31  ;;  %v754_v36 = vadd.f32 %v728_v16, %v303_v32 }
  0x9f   : > { %v339_v37 = vmul.f32 %v743_v29, %v743_v29  ;;  %v343_v38 = vmul.f32 %v746_v30, %v746_v30 }
  0xa0   : > { %v395_v39 = vmul.f32 0.7978846, %v379_v33  ;;  %v399_v40 = vmul.f32 0.7978846, %v383_v34  ;;  %v332_v41 = vmul.f32 %v751_v35, %v751_v35  ;;  %v336_v42 = vmul.f32 %v754_v36, %v754_v36 }
  0xa1   : > { %v355_v43 = vmul.f32 %v339_v37, %v743_v29  ;;  %v359_v44 = vmul.f32 %v343_v38, %v746_v30 }
  0xa2   : > { %633 = vtanh.f32 %v395_v39  ;;  %v348_v45 = vmul.f32 %v332_v41, %v751_v35  ;;  %v352_v46 = vmul.f32 %v336_v42, %v754_v36 }
  0xa3   : > { %635 = vtanh.f32 %v399_v40  ;;  %v371_v47 = vmul.f32 0.044715, %v355_v43  ;;  %v375_v48 = vmul.f32 0.044715, %v359_v44 }
  0xa4   : > { %v364_v49 = vmul.f32 0.044715, %v348_v45  ;;  %v368_v50 = vmul.f32 0.044715, %v352_v46  ;;  %v313_v51 = vpop.f32.mrf.mxu2  ;;  %v323_v52 = vpop.f32.mrf.mxu3 }
  0xa5   : > { %v387_v53 = vadd.f32 %v371_v47, %v743_v29  ;;  %v391_v54 = vadd.f32 %v375_v48, %v746_v30  ;;  %v771_v55 = vadd.f32 %v728_v16, %v313_v51  ;;  %v774_v56 = vadd.f32 %v728_v16, %v323_v52  ;;  %v296_v57 = vpop.f32.mrf.mxu0  ;;  %v306_v58 = vpop.f32.mrf.mxu1 }
  0xa6   : > { %v380_v59 = vadd.f32 %v364_v49, %v751_v35  ;;  %v384_v60 = vadd.f32 %v368_v50, %v754_v36  ;;  %v779_v61 = vadd.f32 %v728_v16, %v296_v57  ;;  %v782_v62 = vadd.f32 %v728_v16, %v306_v58 }
  0xa7   : > { %v403_v63 = vmul.f32 0.7978846, %v387_v53  ;;  %v407_v0 = vmul.f32 0.7978846, %v391_v54  ;;  %v340_v1 = vmul.f32 %v771_v55, %v771_v55  ;;  %v344_v2 = vmul.f32 %v774_v56, %v774_v56 }
  0xa8   : > { %v634_v3 = vpop.eup %633  ;;  %v396_v4 = vmul.f32 0.7978846, %v380_v59  ;;  %v400_v5 = vmul.f32 0.7978846, %v384_v60  ;;  %v333_v6 = vmul.f32 %v779_v61, %v779_v61  ;;  %v337_v7 = vmul.f32 %v782_v62, %v782_v62 }
  0xa9   : > { %v636_v8 = vpop.eup %635  ;;  %v427_v9 = vadd.f32 1.0, %v634_v3  ;;  %637 = vtanh.f32 %v403_v63  ;;  %v356_v10 = vmul.f32 %v340_v1, %v771_v55  ;;  %v360_v11 = vmul.f32 %v344_v2, %v774_v56 }
  0xaa   : > { %v431_v12 = vadd.f32 1.0, %v636_v8  ;;  %639 = vtanh.f32 %v407_v0  ;;  %v349_v13 = vmul.f32 %v333_v6, %v779_v61  ;;  %v353_v14 = vmul.f32 %v337_v7, %v782_v62 }
  0xab   : > { %v443_v15 = vmul.f32 0.5, %v427_v9  ;;  %641 = vtanh.f32 %v396_v4  ;;  %v372_v17 = vmul.f32 0.044715, %v356_v10  ;;  %v376_v18 = vmul.f32 0.044715, %v360_v11 }
  0xac   : > { %v447_v21 = vmul.f32 0.5, %v431_v12  ;;  %643 = vtanh.f32 %v400_v5  ;;  %v365_v22 = vmul.f32 0.044715, %v349_v13  ;;  %v369_v23 = vmul.f32 0.044715, %v353_v14  ;;  %v316_v24 = vpop.f32.mrf.mxu2  ;;  %v326_v25 = vpop.f32.mrf.mxu3 }
  0xad   : > { %v459_v26 = vmul.f32 %v443_v15, %v731_v19  ;;  %v388_v27 = vadd.f32 %v372_v17, %v771_v55  ;;  %v392_v28 = vadd.f32 %v376_v18, %v774_v56  ;;  %v806_v31 = vadd.f32 %v728_v16, %v316_v24  ;;  %v298_v32 = vpop.f32.mrf.mxu0  ;;  %v308_v60 = vpop.f32.mrf.mxu1 }
  0xae   : > { %v463_v33 = vmul.f32 %v447_v21, %v734_v20  ;;  %v381_v34 = vadd.f32 %v365_v22, %v779_v61  ;;  %v385_v37 = vadd.f32 %v369_v23, %v782_v62  ;;  %v812_v38 = vadd.f32 %v728_v16, %v326_v25 }
  0xaf   : > { %v638_v39 = vpop.eup %637  ;;  %476 = vst.msk [vmem:[%s800_s30] sm:$0xff] %vm475_vm3, %v459_v26  ;;  %v404_v19 = vmul.f32 0.7978846, %v388_v27  ;;  %v408_v40 = vmul.f32 0.7978846, %v392_v28  ;;  %v341_v41 = vmul.f32 %v806_v31, %v806_v31  ;;  %v819_v42 = vadd.f32 %v728_v16, %v298_v32 }
  0xb0   : > { %v640_v43 = vpop.eup %639  ;;  %480 = vst.msk [vmem:[%s800_s30 + $0x20] sm:$0xff] %vm475_vm3, %v463_v33  ;;  %v435_v20 = vadd.f32 1.0, %v638_v39  ;;  %v397_v44 = vmul.f32 0.7978846, %v381_v34  ;;  %v401_v45 = vmul.f32 0.7978846, %v385_v37  ;;  %v345_v46 = vmul.f32 %v812_v38, %v812_v38 }
  0xb1   : > { %v642_v47 = vpop.eup %641  ;;  %v439_v48 = vadd.f32 1.0, %v640_v43  ;;  %645 = vtanh.f32 %v404_v19  ;;  %v357_v49 = vmul.f32 %v341_v41, %v806_v31  ;;  %v334_v50 = vmul.f32 %v819_v42, %v819_v42 }
  0xb2   : > { %v644_v51 = vpop.eup %643  ;;  %v451_v52 = vmul.f32 0.5, %v435_v20  ;;  %v428_v53 = vadd.f32 1.0, %v642_v47  ;;  %647 = vtanh.f32 %v408_v40  ;;  %v361_v54 = vmul.f32 %v345_v46, %v812_v38 }
  0xb3   : > { %v455_v57 = vmul.f32 0.5, %v439_v48  ;;  %v432_v58 = vadd.f32 1.0, %v644_v51  ;;  %649 = vtanh.f32 %v397_v44  ;;  %v373_v59 = vmul.f32 0.044715, %v357_v49 }
  0xb4   : > { %v467_v63 = vmul.f32 %v451_v52, %v743_v29  ;;  %v444_v0 = vmul.f32 0.5, %v428_v53  ;;  %651 = vtanh.f32 %v401_v45  ;;  %v377_v1 = vmul.f32 0.044715, %v361_v54  ;;  %v318_v2 = vpop.f32.mrf.mxu2  ;;  %v328_v3 = vpop.f32.mrf.mxu3 }
  0xb5   : > { %v471_v4 = vmul.f32 %v455_v57, %v746_v30  ;;  %v448_v5 = vmul.f32 0.5, %v432_v58  ;;  %v389_v6 = vadd.f32 %v373_v59, %v806_v31  ;;  %v350_v7 = vmul.f32 %v334_v50, %v819_v42 }
  0xb6   : > { %484 = vst.msk [vmem:[%s800_s30 + $0x40] sm:$0xff] %vm475_vm3, %v467_v63  ;;  %v460_v8 = vmul.f32 %v444_v0, %v751_v35  ;;  %v393_v29 = vadd.f32 %v377_v1, %v812_v38  ;;  %v838_v9 = vadd.f32 %v728_v16, %v308_v60  ;;  %v841_v10 = vadd.f32 %v728_v16, %v318_v2 }
  0xb7   : > { %v646_v30 = vpop.eup %645  ;;  %488 = vst.msk [vmem:[%s800_s30 + $0x60] sm:$0xff] %vm475_vm3, %v471_v4  ;;  %v464_v11 = vmul.f32 %v448_v5, %v754_v36  ;;  %v405_v12 = vmul.f32 0.7978846, %v389_v6  ;;  %v366_v13 = vmul.f32 0.044715, %v350_v7  ;;  %v847_v14 = vadd.f32 %v728_v16, %v328_v3 }
  0xb8   : > { %v648_v35 = vpop.eup %647  ;;  %477 = vst.msk [vmem:[%s800_s30 + $0x8] sm:$0xff] %vm475_vm3, %v460_v8  ;;  %v436_v15 = vadd.f32 1.0, %v646_v30  ;;  %v409_v17 = vmul.f32 0.7978846, %v393_v29  ;;  %v338_v18 = vmul.f32 %v838_v9, %v838_v9  ;;  %v342_v21 = vmul.f32 %v841_v10, %v841_v10 }
  0xb9   : > { %v650_v22 = vpop.eup %649  ;;  %481 = vst.msk [vmem:[%s800_s30 + $0x28] sm:$0xff] %vm475_vm3, %v464_v11  ;;  %v440_v36 = vadd.f32 1.0, %v648_v35  ;;  %653 = vtanh.f32 %v405_v12  ;;  %v382_v23 = vadd.f32 %v366_v13, %v819_v42  ;;  %v346_v16 = vmul.f32 %v847_v14, %v847_v14 }
  0xba   : > { %v652_v24 = vpop.eup %651  ;;  %v452_v25 = vmul.f32 0.5, %v436_v15  ;;  %v429_v26 = vadd.f32 1.0, %v650_v22  ;;  %655 = vtanh.f32 %v409_v17  ;;  %v354_v27 = vmul.f32 %v338_v18, %v838_v9 }
  0xbb   : > { %v456_v28 = vmul.f32 0.5, %v440_v36  ;;  %v433_v32 = vadd.f32 1.0, %v652_v24  ;;  %v398_v33 = vmul.f32 0.7978846, %v382_v23  ;;  %v358_v34 = vmul.f32 %v342_v21, %v841_v10 }
  0xbc   : > { %v468_v37 = vmul.f32 %v452_v25, %v771_v55  ;;  %v445_v39 = vmul.f32 0.5, %v429_v26  ;;  %v370_v19 = vmul.f32 0.044715, %v354_v27  ;;  %v362_v40 = vmul.f32 %v346_v16, %v847_v14 }
  0xbd   : > { %v472_v41 = vmul.f32 %v456_v28, %v774_v56  ;;  %v449_v43 = vmul.f32 0.5, %v433_v32  ;;  %657 = vtanh.f32 %v398_v33  ;;  %v374_v20 = vmul.f32 0.044715, %v358_v34 }
  0xbe   : > { %485 = vst.msk [vmem:[%s800_s30 + $0x48] sm:$0xff] %vm475_vm3, %v468_v37  ;;  %v461_v44 = vmul.f32 %v445_v39, %v779_v61  ;;  %v386_v45 = vadd.f32 %v370_v19, %v838_v9  ;;  %v378_v46 = vmul.f32 0.044715, %v362_v40 }
  0xbf   : > { %v654_v47 = vpop.eup %653  ;;  %489 = vst.msk [vmem:[%s800_s30 + $0x68] sm:$0xff] %vm475_vm3, %v472_v41  ;;  %v465_v55 = vmul.f32 %v449_v43, %v782_v62  ;;  %v390_v48 = vadd.f32 %v374_v20, %v841_v10 }
  0xc0   : > { %v656_v49 = vpop.eup %655  ;;  %478 = vst.msk [vmem:[%s800_s30 + $0x10] sm:$0xff] %vm475_vm3, %v461_v44  ;;  %v437_v56 = vadd.f32 1.0, %v654_v47  ;;  %v402_v50 = vmul.f32 0.7978846, %v386_v45  ;;  %v394_v51 = vadd.f32 %v378_v46, %v847_v14 }
  0xc1   : > { %482 = vst.msk [vmem:[%s800_s30 + $0x30] sm:$0xff] %vm475_vm3, %v465_v55  ;;  %v441_v61 = vadd.f32 1.0, %v656_v49  ;;  %v406_v52 = vmul.f32 0.7978846, %v390_v48 }
  0xc2   : > { %v453_v53 = vmul.f32 0.5, %v437_v56  ;;  %659 = vtanh.f32 %v402_v50  ;;  %v410_v54 = vmul.f32 0.7978846, %v394_v51 }
  0xc3   : > { %v658_v62 = vpop.eup %657  ;;  %v457_v57 = vmul.f32 0.5, %v441_v61  ;;  %661 = vtanh.f32 %v406_v52 }
  0xc4   : > { %v469_v58 = vmul.f32 %v453_v53, %v806_v31  ;;  %v430_v59 = vadd.f32 1.0, %v658_v62  ;;  %663 = vtanh.f32 %v410_v54 }
  0xc5   : > { %v473_v60 = vmul.f32 %v457_v57, %v812_v38 }
  0xc6   : > { %486 = vst.msk [vmem:[%s800_s30 + $0x50] sm:$0xff] %vm475_vm3, %v469_v58  ;;  %v446_v63 = vmul.f32 0.5, %v430_v59 }
  0xc7   : > { %490 = vst.msk [vmem:[%s800_s30 + $0x70] sm:$0xff] %vm475_vm3, %v473_v60 }
  0xc8   : > { %v660_v0 = vpop.eup %659  ;;  %v462_v1 = vmul.f32 %v446_v63, %v819_v42 }
  0xc9   : > { %v662_v2 = vpop.eup %661  ;;  %v434_v3 = vadd.f32 1.0, %v660_v0 }
  0xca   : > { %v664_v4 = vpop.eup %663  ;;  %479 = vst.msk [vmem:[%s800_s30 + $0x18] sm:$0xff] %vm475_vm3, %v462_v1  ;;  %v438_v31 = vadd.f32 1.0, %v662_v2 }
  0xcb   : > { %v450_v5 = vmul.f32 0.5, %v434_v3  ;;  %v442_v6 = vadd.f32 1.0, %v664_v4 }
  0xcc   : > { %v454_v38 = vmul.f32 0.5, %v438_v31 }
  0xcd   : > { %v466_v7 = vmul.f32 %v450_v5, %v838_v9  ;;  %v458_v8 = vmul.f32 0.5, %v442_v6 }
  0xce   : > { %v470_v29 = vmul.f32 %v454_v38, %v841_v10 }
  0xcf   : > { %483 = vst.msk [vmem:[%s800_s30 + $0x38] sm:$0xff] %vm475_vm3, %v466_v7  ;;  %v474_v30 = vmul.f32 %v458_v8, %v847_v14 }
  0xd0   : > { %487 = vst.msk [vmem:[%s800_s30 + $0x58] sm:$0xff] %vm475_vm3, %v470_v29 }
  0xd1   : > { %491 = vst.msk [vmem:[%s800_s30 + $0x78] sm:$0xff] %vm475_vm3, %v474_v30 }
  0xd2 PF: > { %s13_s12 = sadd.s32 1, %s671_s12  }
  0xd3   : > { %p10_p4 = scmp.ge.s32.totalorder %s13_s12, 6  }
  0xd5   :  { %12 = sbr.rel (!%p10_p4) target bundleno = 1 (0x1), region = 62 }

// kernel: mobile_sam_forward.6
= control target key start
LH: loop header
LB: loop body
LE: loop exit
PB: predicated region body
PF: predicated region fallthrough
CT: control target
= control target key end

     0   :  { %s1722_s27 = smov 0   ;;  %s2189_s0 = inlined_call_operand.vmem [shape: f32[8,16,32], index: 0, kind: input, shape index: {}]   ;;  %s2190_s1 = inlined_call_operand.vmem [shape: f32[1,32], index: 1, kind: input, shape index: {}]   ;;  %s2191_s2 = inlined_call_operand.vmem [shape: f32[1,32], index: 2, kind: input, shape index: {}]   ;;  %s2192_s3 = inlined_call_operand.vmem [shape: bf16[32,96], index: 3, kind: input, shape index: {}]   ;;  %s2193_s4 = inlined_call_operand.vmem [shape: f32[1,96], index: 4, kind: input, shape index: {}]   ;;  %s2194_s5 = inlined_call_operand.vmem [shape: f32[2,16,16], index: 5, kind: input, shape index: {}]   ;;  %s2195_s6 = inlined_call_operand.vmem [shape: bf16[32,32], index: 6, kind: input, shape index: {}]   ;;  %s2196_s7 = inlined_call_operand.vmem [shape: f32[1,32], index: 7, kind: input, shape index: {}]   ;;  %s2197_s8 = inlined_call_operand.vmem [shape: f32[8,16,32], index: 8, kind: output, shape index: {}]  }
   0x1 LB: > { %s1478_s28 = sadd.s32 4294967295, %s1670_s27   ;;  %p1482_p0 = scmp.ge.s32.totalorder %s1670_s27, 1  ;;  %s1670_s27 = sphi %s1722_s27, %s18_s27  }
   0x2   : > { %p264_p1 = scmp.lt.s32.totalorder %s1670_s27, 3 }
   0x4   : > { %p265_p2 = pnand %p1482_p0, %p264_p1 }
   0x5   : > { %s1483_s29 = sshll.u32 (!%p265_p2), %s1478_s28, 2  ;;  %s1673_s22 = smov (!%p265_p2), 112  }
   0x6   : > { %268 = sbr.rel (%p265_p2) target bundleno = 1562 (0x61a), region = 52  ;;  %p301_p3 = scmp.lt.s32.totalorder (!%p265_p2), %s1483_s29, 7 }
   0x7   : > { %s1674_s23 = smov (!%p265_p2), 96   ;;  %s1675_s24 = smov (!%p265_p2), 64  }
   0x8   : > { %s1676_s14 = smov (!%p265_p2), 16  }
   0xb   : > { %s2209_s29 = smov (!%p301_p3, %s1483_s29), 7  ;;  %vm323_vm0 = vcmask 261120   ;;  %v1672_v16 = vmov 32.0  }
   0xc   : > { %s1533_s30 = sshll.u32 %s2209_s29, 4  ;;  %1582 = vrcp.f32 %v1672_v16 }
   0xd   : > { %s305_s11 = scalar_lea.vmem %s2189_s0, %s1533_s30 }
   0xe   : > { %v319_v0 = vld [vmem:[%s305_s11 + $0x20] sm:$0xff]  ;;  %v317_v1 = vld [vmem:[%s305_s11 + $0x10] sm:$0xff]  ;;  %v320_v6 = vld [vmem:[%s305_s11 + $0x28] sm:$0xff] }
   0xf   : > { %v315_v2 = vld [vmem:[%s305_s11] sm:$0xff]  ;;  %v336_v3 = vsel %vm323_vm0, %v319_v0, 0.0  ;;  %v330_v4 = vsel %vm323_vm0, %v317_v1, 0.0  ;;  %v318_v7 = vld [vmem:[%s305_s11 + $0x18] sm:$0xff]  ;;  %v316_v8 = vld [vmem:[%s305_s11 + $0x8] sm:$0xff]  ;;  %v339_v9 = vsel %vm323_vm0, %v320_v6, 0.0 }
  0x10   : > { %v324_v5 = vsel %vm323_vm0, %v315_v2, 0.0  ;;  %337 = vadd.xlane.f32.xlu2 %v336_v3  ;;  %331 = vadd.xlane.f32.xlu1 %v330_v4  ;;  %v333_v10 = vsel %vm323_vm0, %v318_v7, 0.0  ;;  %v327_v11 = vsel %vm323_vm0, %v316_v8, 0.0  ;;  %v322_v12 = vld [vmem:[%s305_s11 + $0x38] sm:$0xff]  ;;  %v321_v13 = vld [vmem:[%s305_s11 + $0x30] sm:$0xff]  ;;  %v1536_v3 = vld [vmem:[%s2192_s3 + $0x8] sm:$0xff] }
  0x11   : > { %325 = vadd.xlane.f32.xlu0 %v324_v5  ;;  %v345_v14 = vsel %vm323_vm0, %v322_v12, 0.0  ;;  %v342_v15 = vsel %vm323_vm0, %v321_v13, 0.0  ;;  %573 = vmatpush.bf16.msra.mxu0 %v1536_v3 }
  0x12   : > { %v1583_v17 = vpop.eup %1582  ;;  %1539 = vmatpush.bf16.msra.mxu1 %v1536_v3  ;;  %1540 = vmatpush.bf16.msra.mxu2 %v1536_v3 }
  0x13   : > { %v349_v18 = vmul.f32 32.0, %v1583_v17  ;;  %vm353_vm1 = vweird.f32 %v1583_v17  ;;  %1541 = vmatpush.bf16.msra.mxu3 %v1536_v3 }
  0x15   : > { %v350_v19 = vsub.f32 1.0, %v349_v18 }
  0x17   : > { %v351_v20 = vmul.f32 %v1583_v17, %v350_v19 }
  0x18   : > { %340 = vadd.xlane.f32.xlu2 %v339_v9  ;;  %334 = vadd.xlane.f32.xlu1 %v333_v10 }
  0x19   : > { %328 = vadd.xlane.f32.xlu0 %v327_v11  ;;  %v352_v21 = vadd.f32 %v1583_v17, %v351_v20 }
  0x1b   : > { %v1746_v22 = vsel %vm353_vm1, %v1583_v17, %v352_v21 }
  0x20   : > { %346 = vadd.xlane.f32.xlu1 %v345_v14 }
  0x21   : > { %343 = vadd.xlane.f32.xlu0 %v342_v15 }
  0x83   : > { %v338_v23 = vpop.xlane.xlu2 %337  ;;  %v332_v24 = vpop.xlane.xlu1 %331 }
  0x84   : > { %v357_v25 = vmul.f32 %v1746_v22, %v332_v24  ;;  %v326_v26 = vpop.xlane.xlu0 %325  ;;  %v359_v39 = vmul.f32 %v1746_v22, %v338_v23 }
  0x85   : > { %v355_v27 = vmul.f32 %v1746_v22, %v326_v26 }
  0x86   : > { %v1750_v28 = vsub.f32 %v317_v1, %v357_v25  ;;  %v1774_v46 = vsub.f32 %v319_v0, %v359_v39 }
  0x87   : > { %v1752_v29 = vsub.f32 %v315_v2, %v355_v27 }
  0x88   : > { %v373_v30 = vmul.f32 %v1750_v28, %v1750_v28  ;;  %v375_v55 = vmul.f32 %v1774_v46, %v1774_v46 }
  0x89   : > { %v371_v31 = vmul.f32 %v1752_v29, %v1752_v29 }
  0x8a   : > { %v385_v32 = vsel %vm323_vm0, %v373_v30, 0.0  ;;  %v391_v58 = vsel %vm323_vm0, %v375_v55, 0.0 }
  0x8b   : > { %v341_v33 = vpop.xlane.xlu2 %340  ;;  %386 = vadd.xlane.f32.xlu1 %v385_v32  ;;  %v335_v34 = vpop.xlane.xlu1 %334  ;;  %v379_v35 = vsel %vm323_vm0, %v371_v31, 0.0 }
  0x8c   : > { %v360_v36 = vmul.f32 %v1746_v22, %v341_v33  ;;  %v358_v37 = vmul.f32 %v1746_v22, %v335_v34  ;;  %380 = vadd.xlane.f32.xlu2 %v379_v35  ;;  %v329_v38 = vpop.xlane.xlu0 %328 }
  0x8d   : > { %v356_v40 = vmul.f32 %v1746_v22, %v329_v38 }
  0x8e   : > { %v1764_v41 = vsub.f32 %v320_v6, %v360_v36  ;;  %v1766_v42 = vsub.f32 %v318_v7, %v358_v37  ;;  %v1535_v6 = vld [vmem:[%s2192_s3] sm:$0xff] }
  0x8f   : > { %v1768_v43 = vsub.f32 %v316_v8, %v356_v40  ;;  %574 = vmatpush.bf16.msra.mxu0 %v1535_v6  ;;  %1542 = vmatpush.bf16.msra.mxu1 %v1535_v6 }
  0x90   : > { %v376_v44 = vmul.f32 %v1764_v41, %v1764_v41  ;;  %v374_v45 = vmul.f32 %v1766_v42, %v1766_v42  ;;  %1543 = vmatpush.bf16.msra.mxu2 %v1535_v6  ;;  %1544 = vmatpush.bf16.msra.mxu3 %v1535_v6 }
  0x91   : > { %v372_v47 = vmul.f32 %v1768_v43, %v1768_v43 }
  0x92   : > { %v394_v48 = vsel %vm323_vm0, %v376_v44, 0.0  ;;  %v388_v49 = vsel %vm323_vm0, %v374_v45, 0.0 }
  0x93   : > { %395 = vadd.xlane.f32.xlu1 %v394_v48  ;;  %v382_v50 = vsel %vm323_vm0, %v372_v47, 0.0  ;;  %v347_v51 = vpop.xlane.xlu1 %346 }
  0x94   : > { %389 = vadd.xlane.f32.xlu2 %v388_v49  ;;  %383 = vadd.xlane.f32.xlu0 %v382_v50  ;;  %v344_v52 = vpop.xlane.xlu0 %343  ;;  %v362_v54 = vmul.f32 %v1746_v22, %v347_v51 }
  0x95   : > { %v361_v53 = vmul.f32 %v1746_v22, %v344_v52 }
  0x96   : > { %v1787_v57 = vsub.f32 %v322_v12, %v362_v54 }
  0x97   : > { %v1785_v56 = vsub.f32 %v321_v13, %v361_v53 }
  0x98   : > { %v378_v61 = vmul.f32 %v1787_v57, %v1787_v57 }
  0x99   : > { %v377_v59 = vmul.f32 %v1785_v56, %v1785_v56 }
  0x9a   : > { %v400_v62 = vsel %vm323_vm0, %v378_v61, 0.0 }
  0x9b   : > { %v397_v60 = vsel %vm323_vm0, %v377_v59, 0.0 }
  0x9c   : > { %392 = vadd.xlane.f32.xlu0 %v391_v58  ;;  %398 = vadd.xlane.f32.xlu2 %v397_v60 }
  0xa4   : > { %401 = vadd.xlane.f32.xlu0 %v400_v62 }
  0xfe   : > { %v387_v63 = vpop.xlane.xlu1 %386 }
  0xff   : > { %v405_v0 = vmul.f32 %v387_v63, %v1746_v22  ;;  %v381_v1 = vpop.xlane.xlu2 %380 }
 0x100   : > { %v403_v2 = vmul.f32 %v381_v1, %v1746_v22 }
 0x101   : > { %v413_v4 = vadd.f32 1e-05, %v405_v0 }
 0x102   : > { %v411_v5 = vadd.f32 1e-05, %v403_v2 }
 0x103   : > { %1584 = vrsqrt.f32 %v413_v4  ;;  %vm445_vm2 = vweird.f32 %v413_v4 }
 0x104   : > { %1586 = vrsqrt.f32 %v411_v5  ;;  %vm425_vm6 = vweird.f32 %v411_v5 }
 0x106   : > { %v396_v7 = vpop.xlane.xlu1 %395 }
 0x107   : > { %v408_v8 = vmul.f32 %v396_v7, %v1746_v22  ;;  %v390_v9 = vpop.xlane.xlu2 %389  ;;  %v384_v10 = vpop.xlane.xlu0 %383 }
 0x108   : > { %v406_v11 = vmul.f32 %v390_v9, %v1746_v22  ;;  %v404_v12 = vmul.f32 %v384_v10, %v1746_v22 }
 0x109   : > { %v1585_v13 = vpop.eup %1584  ;;  %v1807_v14 = vadd.f32 1e-05, %v408_v8 }
 0x10a   : > { %v1587_v15 = vpop.eup %1586  ;;  %v440_v16 = vmul.f32 %v1585_v13, %v413_v4  ;;  %v414_v17 = vadd.f32 1e-05, %v406_v11  ;;  %v1809_v18 = vadd.f32 1e-05, %v404_v12  ;;  %vm446_vm3 = vweird.f32 %v1585_v13 }
 0x10b   : > { %v420_v19 = vmul.f32 %v1587_v15, %v411_v5  ;;  %1588 = vrsqrt.f32 %v1807_v14  ;;  %vm426_vm4 = vweird.f32 %v1587_v15  ;;  %vm1825_vm5 = vmor %vm445_vm2, %vm446_vm3  ;;  %vm475_vm10 = vweird.f32 %v1807_v14 }
 0x10c   : > { %v441_v20 = vmul.f32 %v1585_v13, %v440_v16  ;;  %1590 = vrsqrt.f32 %v414_v17  ;;  %vm1830_vm7 = vmor %vm425_vm6, %vm426_vm4  ;;  %vm455_vm8 = vweird.f32 %v414_v17  ;;  %vm435_vm14 = vweird.f32 %v1809_v18 }
 0x10d   : > { %v421_v21 = vmul.f32 %v1587_v15, %v420_v19  ;;  %1592 = vrsqrt.f32 %v1809_v18 }
 0x10e   : > { %v442_v23 = vmul.f32 0.5, %v441_v20 }
 0x10f   : > { %v422_v24 = vmul.f32 0.5, %v421_v21  ;;  %v399_v25 = vpop.xlane.xlu2 %398  ;;  %v393_v26 = vpop.xlane.xlu0 %392 }
 0x110   : > { %v443_v27 = vsub.f32 1.5, %v442_v23  ;;  %v409_v30 = vmul.f32 %v399_v25, %v1746_v22  ;;  %v407_v31 = vmul.f32 %v393_v26, %v1746_v22 }
 0x111   : > { %v1815_v32 = vpop.eup %1588  ;;  %v423_v33 = vsub.f32 1.5, %v422_v24 }
 0x112   : > { %v1591_v34 = vpop.eup %1590  ;;  %v470_v35 = vmul.f32 %v1815_v32, %v1807_v14  ;;  %v1819_v36 = vadd.f32 1e-05, %v409_v30  ;;  %v1821_v39 = vadd.f32 1e-05, %v407_v31  ;;  %v444_v40 = vmul.f32 %v1585_v13, %v443_v27 }
 0x113   : > { %v1593_v37 = vpop.eup %1592  ;;  %v450_v38 = vmul.f32 %v1591_v34, %v414_v17  ;;  %v424_v44 = vmul.f32 %v1587_v15, %v423_v33  ;;  %vm456_vm9 = vweird.f32 %v1591_v34  ;;  %vm476_vm13 = vweird.f32 %v1815_v32  ;;  %v1579_v17 = vld [vmem:[%s2191_s2] ss:$0 sm:$0xff] }
 0x114   : > { %v471_v45 = vmul.f32 %v1815_v32, %v470_v35  ;;  %v430_v47 = vmul.f32 %v1593_v37, %v1809_v18  ;;  %1594 = vrsqrt.f32 %v1819_v36  ;;  %v448_v55 = vsel %vm1825_vm5, %v1585_v13, %v444_v40  ;;  %vm1841_vm11 = vmor %vm455_vm8, %vm456_vm9 }
 0x115   : > { %v451_v49 = vmul.f32 %v1591_v34, %v450_v38  ;;  %1596 = vrsqrt.f32 %v1821_v39  ;;  %v428_v58 = vsel %vm1830_vm7, %v1587_v15, %v424_v44  ;;  %vm436_vm12 = vweird.f32 %v1593_v37  ;;  %vm1860_vm1 = vmor %vm475_vm10, %vm476_vm13 }
 0x116   : > { %v472_v50 = vmul.f32 0.5, %v471_v45  ;;  %v431_v51 = vmul.f32 %v1593_v37, %v430_v47  ;;  %v501_v3 = vmul.f32 %v448_v55, %v1750_v28  ;;  %v499_v4 = vmul.f32 %v428_v58, %v1752_v29  ;;  %vm437_vm15 = vmor %vm435_vm14, %vm436_vm12 }
 0x117   : > { %v452_v53 = vmul.f32 0.5, %v451_v49  ;;  %v402_v54 = vpop.xlane.xlu0 %401  ;;  %vm485_vm2 = vweird.f32 %v1819_v36  ;;  %vm465_vm4 = vweird.f32 %v1821_v39  ;;  %vm1330_vm12 = vcmask 261248  }
 0x118   : > { %v432_v59 = vmul.f32 0.5, %v431_v51  ;;  %v410_v60 = vmul.f32 %v402_v54, %v1746_v22  ;;  %v473_v61 = vsub.f32 1.5, %v472_v50  ;;  %v1851_v22 = vld [vmem:[%s2190_s1] ss:$0 sm:$0xff] }
 0x119   : > { %v453_v62 = vsub.f32 1.5, %v452_v53  ;;  %v511_v16 = vmul.f32 %v1851_v22, %v499_v4  ;;  %v513_v14 = vmul.f32 %v1851_v22, %v501_v3 }
 0x11a   : > { %v433_v0 = vsub.f32 1.5, %v432_v59  ;;  %v418_v1 = vadd.f32 1e-05, %v410_v60  ;;  %v1595_v2 = vpop.eup %1594  ;;  %v474_v9 = vmul.f32 %v1815_v32, %v473_v61 }
 0x11b   : > { %v454_v5 = vmul.f32 %v1591_v34, %v453_v62  ;;  %v480_v7 = vmul.f32 %v1595_v2, %v1819_v36  ;;  %v1597_v8 = vpop.eup %1596  ;;  %vm486_vm3 = vweird.f32 %v1595_v2  ;;  %v523_v26 = vadd.f32 %v1579_v17, %v511_v16 }
 0x11c   : > { %v434_v6 = vmul.f32 %v1593_v37, %v433_v0  ;;  %1598 = vrsqrt.f32 %v418_v1  ;;  %v460_v13 = vmul.f32 %v1597_v8, %v1821_v39  ;;  %v525_v30 = vadd.f32 %v1579_v17, %v513_v14  ;;  %vm1882_vm6 = vmor %vm485_vm2, %vm486_vm3  ;;  %v1580_v0 = vld [vmem:[%s2193_s4] ss:$0 sm:$0xff] }
 0x11d   : > { %v458_v28 = vsel %vm1841_vm11, %v1591_v34, %v454_v5  ;;  %v481_v12 = vmul.f32 %v1595_v2, %v480_v7  ;;  %vm466_vm5 = vweird.f32 %v1597_v8  ;;  %vm495_vm8 = vweird.f32 %v418_v1 }
 0x11e   : > { %v502_v10 = vmul.f32 %v458_v28, %v1766_v42  ;;  %v438_v11 = vsel %vm437_vm15, %v1593_v37, %v434_v6  ;;  %v461_v19 = vmul.f32 %v1597_v8, %v460_v13  ;;  %v478_v42 = vsel %vm1860_vm1, %v1815_v32, %v474_v9  ;;  %vm467_vm7 = vmor %vm465_vm4, %vm466_vm5 }
 0x11f   : > { %v500_v15 = vmul.f32 %v438_v11, %v1768_v43  ;;  %v482_v18 = vmul.f32 0.5, %v481_v12  ;;  %v504_v32 = vmul.f32 %v478_v42, %v1764_v41  ;;  %vm656_vm11 = vcmask 130048  }
 0x120   : > { %v514_v20 = vmul.f32 %v1851_v22, %v502_v10  ;;  %v462_v23 = vmul.f32 0.5, %v461_v19 }
 0x121   : > { %v512_v43 = vmul.f32 %v1851_v22, %v500_v15  ;;  %v483_v21 = vsub.f32 1.5, %v482_v18  ;;  %v516_v47 = vmul.f32 %v1851_v22, %v504_v32 }
 0x122   : > { %v526_v24 = vadd.f32 %v1579_v17, %v514_v20  ;;  %v1599_v25 = vpop.eup %1598  ;;  %v463_v33 = vsub.f32 1.5, %v462_v23 }
 0x123   : > { %v524_v27 = vadd.f32 %v1579_v17, %v512_v43  ;;  %v484_v31 = vmul.f32 %v1595_v2, %v483_v21  ;;  %v490_v34 = vmul.f32 %v1599_v25, %v418_v1  ;;  %vm496_vm9 = vweird.f32 %v1599_v25 }
 0x124   : > { %v532_v38 = vpack.c.bf16 %v526_v24, %v525_v30  ;;  %v464_v40 = vmul.f32 %v1597_v8, %v463_v33  ;;  %vm497_vm10 = vmor %vm495_vm8, %vm496_vm9  ;;  %v528_v53 = vadd.f32 %v1579_v17, %v516_v47 }
 0x125   : > { %v531_v37 = vpack.c.bf16 %v524_v27, %v523_v26  ;;  %v491_v44 = vmul.f32 %v1599_v25, %v490_v34  ;;  %v488_v39 = vsel %vm1882_vm6, %v1595_v2, %v484_v31 }
 0x126   : > { %1498 = vmatmul.msk.bf16.vlgmr.msra.gmra.mxu1 %vm323_vm0, %v532_v38  ;;  %v468_v41 = vsel %vm467_vm7, %v1597_v8, %v464_v40  ;;  %v505_v49 = vmul.f32 %v488_v39, %v1785_v56 }
 0x127   : > { %1497 = vmatmul.msk.bf16.vlgmr.msra.gmra.mxu0 %vm323_vm0, %v531_v37  ;;  %v492_v45 = vmul.f32 0.5, %v491_v44  ;;  %v503_v36 = vmul.f32 %v468_v41, %v1774_v46 }
 0x128   : > { %v517_v59 = vmul.f32 %v1851_v22, %v505_v49 }
 0x129   : > { %v493_v48 = vsub.f32 1.5, %v492_v45  ;;  %v515_v50 = vmul.f32 %v1851_v22, %v503_v36 }
 0x12a   : > { %v529_v60 = vadd.f32 %v1579_v17, %v517_v59 }
 0x12b   : > { %v494_v51 = vmul.f32 %v1599_v25, %v493_v48  ;;  %v527_v52 = vadd.f32 %v1579_v17, %v515_v50 }
 0x12d   : > { %v498_v54 = vsel %vm497_vm10, %v1599_v25, %v494_v51  ;;  %v533_v58 = vpack.c.bf16 %v528_v53, %v527_v52 }
 0x12e   : > { %v506_v55 = vmul.f32 %v498_v54, %v1787_v57 }
 0x12f   : > { %1499 = vmatmul.msk.bf16.vlgmr.msra.gmra.mxu2 %vm323_vm0, %v533_v58 }
 0x130   : > { %v518_v46 = vmul.f32 %v1851_v22, %v506_v55 }
 0x132   : > { %v530_v61 = vadd.f32 %v1579_v17, %v518_v46 }
 0x134   : > { %v534_v62 = vpack.c.bf16 %v530_v61, %v529_v60 }
 0x136   : > { %1500 = vmatmul.msk.bf16.vlgmr.msra.gmra.mxu3 %vm323_vm0, %v534_v62 }
 0x1a3   : > { %v581_v63 = vpop.f32.mrf.mxu1 }
 0x1a4   : > { %v576_v56 = vpop.f32.mrf.mxu0  ;;  %v582_v1 = vadd.f32 %v1580_v0, %v581_v63 }
 0x1a5   : > { %v577_v3 = vadd.f32 %v1580_v0, %v576_v56 }
 0x1a6   : > { %v635_v4 = vpack.c.bf16 %v582_v1, %v582_v1 }
 0x1a7   : > { %v633_v12 = vpack.c.bf16 %v577_v3, %v577_v3 }
 0x1a8   : > { %v679_v9 = vunpack.c.l.b16 %v635_v4 }
 0x1a9   : > { %v651_v15 = vunpack.c.l.b16 %v633_v12 }
 0x1ab   : > { %v583_v2 = vpop.f32.mrf.mxu1 }
 0x1ac   : > { %v578_v57 = vpop.f32.mrf.mxu0  ;;  %v584_v6 = vadd.f32 %v1580_v0, %v583_v2 }
 0x1ad   : > { %v579_v5 = vadd.f32 %v1580_v0, %v578_v57 }
 0x1ae   : > { %v636_v22 = vpack.c.bf16 %v584_v6, %v584_v6  ;;  %v1563_v8 = vpack.i.bf16 %v584_v6, %v582_v1 }
 0x1af   : > { %v1558_v7 = vpack.i.bf16 %v579_v5, %v577_v3  ;;  %v634_v29 = vpack.c.bf16 %v579_v5, %v579_v5 }
 0x1b0   : > { %v680_v28 = vunpack.c.l.b16 %v636_v22  ;;  %1564 = vrot.lane.b32.xlu2 %v1563_v8, %s1673_s22 }
 0x1b1   : > { %1559 = vrot.lane.b32.xlu1 %v1558_v7, %s1673_s22  ;;  %v652_v13 = vunpack.c.l.b16 %v634_v29 }
 0x1b2   : > { %v1904_v10 = vpack.c.b16 %v680_v28, %v679_v9  ;;  %v586_v11 = vpop.f32.mrf.mxu2 }
 0x1b3   : > { %v1908_v17 = vpack.c.b16 %v652_v13, %v651_v15  ;;  %v587_v18 = vadd.f32 %v1580_v0, %v586_v11 }
 0x1b4   : > { %682 = vrot.lane.b32.xlu0 %v1904_v10, %s1674_s23 }
 0x1b5   : > { %v637_v21 = vpack.c.bf16 %v587_v18, %v587_v18 }
 0x1b7   : > { %v706_v27 = vunpack.c.l.b16 %v637_v21 }
 0x1b9   : > { %v591_v16 = vpop.f32.mrf.mxu3 }
 0x1ba   : > { %v588_v14 = vpop.f32.mrf.mxu2  ;;  %v592_v43 = vadd.f32 %v1580_v0, %v591_v16 }
 0x1bb   : > { %v589_v19 = vadd.f32 %v1580_v0, %v588_v14 }
 0x1bc   : > { %654 = vrot.lane.b32.xlu0 %v1908_v17, %s1674_s23  ;;  %v639_v25 = vpack.c.bf16 %v592_v43, %v592_v43 }
 0x1bd   : > { %v638_v20 = vpack.c.bf16 %v589_v19, %v589_v19  ;;  %v1568_v42 = vpack.i.bf16 %v589_v19, %v587_v18 }
 0x1be   : > { %v733_v33 = vunpack.c.l.b16 %v639_v25 }
 0x1bf   : > { %1569 = vrot.lane.b32.xlu2 %v1568_v42, %s1673_s22  ;;  %v707_v24 = vunpack.c.l.b16 %v638_v20 }
 0x1c1   : > { %v593_v23 = vpop.f32.mrf.mxu3  ;;  %v708_v32 = vpack.c.b16 %v707_v24, %v706_v27  ;;  %v628_v24 = vld [vmem:[%s2194_s5] sm:$0xff] }
 0x1c2   : > { %v594_v26 = vadd.f32 %v1580_v0, %v593_v23 }
 0x1c4   : > { %v640_v30 = vpack.c.bf16 %v594_v26, %v594_v26  ;;  %v1573_v31 = vpack.i.bf16 %v594_v26, %v592_v43 }
 0x1c6   : > { %v734_v34 = vunpack.c.l.b16 %v640_v30  ;;  %1574 = vrot.lane.b32.xlu1 %v1573_v31, %s1673_s22 }
 0x1c7   : > { %709 = vrot.lane.b32.xlu2 %v708_v32, %s1674_s23 }
 0x1c8   : > { %v1915_v35 = vpack.c.b16 %v734_v34, %v733_v33 }
 0x1ca   : > { %736 = vrot.lane.b32.xlu0 %v1915_v35, %s1674_s23 }
 0x20a   : > { %v1565_v37 = vpop.permute.xlu2 %1564 }
 0x20b   : > { %v1567_v38 = vunpack.i.h.bf16 %v1565_v37  ;;  %v1566_v40 = vunpack.i.l.bf16 %v1565_v37 }
 0x20d   : > { %v644_v44 = vpack.c.bf16 %v1567_v38, %v1567_v38  ;;  %v643_v39 = vpack.c.bf16 %v1566_v40, %v1566_v40 }
 0x20f   : > { %v788_v41 = vunpack.c.l.b16 %v644_v44  ;;  %v787_v45 = vunpack.c.l.b16 %v643_v39  ;;  %v629_v39 = vld [vmem:[%s2194_s5 + $0x8] sm:$0xff] }
 0x211   : > { %v1919_v36 = vpack.c.b16 %v788_v41, %v787_v45 }
 0x213   : > { %790 = vrot.lane.b32.xlu2 %v1919_v36, %s1674_s23 }
 0x219   : > { %v1570_v47 = vpop.permute.xlu2 %1569 }
 0x21a   : > { %v1572_v53 = vunpack.i.h.bf16 %v1570_v47  ;;  %v1571_v54 = vunpack.i.l.bf16 %v1570_v47 }
 0x21b   : > { %1120 = vrot.lane.b32.xlu2 %v1904_v10, %s1675_s24 }
 0x21c   : > { %v646_v62 = vpack.c.bf16 %v1572_v53, %v1572_v53  ;;  %v645_v56 = vpack.c.bf16 %v1571_v54, %v1571_v54 }
 0x21e   : > { %v815_v0 = vunpack.c.l.b16 %v646_v62  ;;  %v814_v1 = vunpack.c.l.b16 %v645_v56 }
 0x220   : > { %v1933_v3 = vpack.c.b16 %v815_v0, %v814_v1 }
 0x221   : > { %v710_v48 = vpop.permute.xlu2 %709 }
 0x222   : > { %v715_v52 = vsel %vm656_vm11, %v710_v48, 0 }
 0x223   : > { %v1560_v49 = vpop.permute.xlu1 %1559  ;;  %1145 = vrot.lane.b32.xlu2 %v708_v32, %s1675_s24  ;;  %724 = vmatpush.bf16.xpose.msrb.mxu3 %v715_v52 }
 0x224   : > { %v1562_v50 = vunpack.i.h.bf16 %v1560_v49  ;;  %v1561_v51 = vunpack.i.l.bf16 %v1560_v49 }
 0x226   : > { %v642_v55 = vpack.c.bf16 %v1562_v50, %v1562_v50  ;;  %v641_v58 = vpack.c.bf16 %v1561_v51, %v1561_v51  ;;  %v683_v59 = vpop.permute.xlu0 %682 }
 0x227   : > { %v688_v61 = vsel %vm656_vm11, %v683_v59, 0 }
 0x228   : > { %v761_v46 = vunpack.c.l.b16 %v642_v55  ;;  %v760_v60 = vunpack.c.l.b16 %v641_v58  ;;  %697 = vmatpush.bf16.xpose.msrb.mxu2 %v688_v61 }
 0x22a   : > { %v762_v63 = vpack.c.b16 %v761_v46, %v760_v60  ;;  %1505 = vmatmul.msk.bf16.vlgmr.msrb.gmra.mxu3 %vm656_vm11, %v708_v32 }
 0x22c   : > { %763 = vrot.lane.b32.xlu1 %v762_v63, %s1674_s23 }
 0x22e   : > { %v655_v57 = vpop.permute.xlu0 %654 }
 0x22f   : > { %1504 = vmatmul.msk.bf16.vlgmr.msrb.gmra.mxu2 %vm656_vm11, %v1904_v10  ;;  %v661_v2 = vsel %vm656_vm11, %v655_v57, 0 }
 0x230   : > { %670 = vmatpush.bf16.xpose.msrb.mxu1 %v661_v2 }
 0x234   : > { %817 = vrot.lane.b32.xlu1 %v1933_v3, %s1674_s23 }
 0x237   : > { %1503 = vmatmul.msk.bf16.vlgmr.msrb.gmra.mxu1 %vm656_vm11, %v1908_v17 }
 0x238   : > { %v1575_v4 = vpop.permute.xlu1 %1574 }
 0x239   : > { %v1577_v5 = vunpack.i.h.bf16 %v1575_v4  ;;  %v1576_v6 = vunpack.i.l.bf16 %v1575_v4  ;;  %v1501_v4 = vld [vmem:[%s2194_s5 + $0x10] sm:$0xff] }
 0x23b   : > { %v648_v7 = vpack.c.bf16 %v1577_v5, %v1577_v5  ;;  %v647_v22 = vpack.c.bf16 %v1576_v6, %v1576_v6 }
 0x23c   : > { %1195 = vrot.lane.b32.xlu1 %v762_v63, %s1675_s24  ;;  %v737_v8 = vpop.permute.xlu0 %736 }
 0x23d   : > { %v842_v9 = vunpack.c.l.b16 %v648_v7  ;;  %v841_v28 = vunpack.c.l.b16 %v647_v22  ;;  %v742_v29 = vsel %vm656_vm11, %v737_v8, 0 }
 0x23e   : > { %751 = vmatpush.bf16.xpose.msra.mxu1 %v742_v29 }
 0x23f   : > { %v1941_v10 = vpack.c.b16 %v842_v9, %v841_v28 }
 0x241   : > { %844 = vrot.lane.b32.xlu0 %v1941_v10, %s1674_s23  ;;  %s312_s23 = scalar_lea.vmem %s2197_s8, %s1533_s30 }
 0x247   : > { %1506 = vmatmul.msk.bf16.vlgmr.msra.gmra.mxu1 %vm656_vm11, %v1915_v35 }
 0x249   : > { %1095 = vrot.lane.b32.xlu0 %v1908_v17, %s1675_s24 }
 0x26d   : > { %v791_v11 = vpop.permute.xlu2 %790 }
 0x26e   : > { %v796_v12 = vsel %vm656_vm11, %v791_v11, 0 }
 0x26f   : > { %805 = vmatpush.bf16.xpose.msra.mxu3 %v796_v12 }
 0x275   : > { %v1121_v18 = vpop.permute.xlu2 %1120 }
 0x276   : > { %1508 = vmatmul.msk.bf16.vlgmr.msra.gmra.mxu3 %vm656_vm11, %v1919_v36 }
 0x27d   : > { %v1146_v25 = vpop.permute.xlu2 %1145 }
 0x29e   : > { %v764_v13 = vpop.permute.xlu1 %763 }
 0x29f   : > { %v769_v15 = vsel %vm656_vm11, %v764_v13, 0 }
 0x2a0   : > { %778 = vmatpush.bf16.xpose.msra.mxu2 %v769_v15 }
 0x2a6   : > { %v818_v16 = vpop.permute.xlu1 %817 }
 0x2a7   : > { %v823_v14 = vsel %vm656_vm11, %v818_v16, 0  ;;  %1507 = vmatmul.msk.bf16.vlgmr.msra.gmra.mxu2 %vm656_vm11, %v762_v63 }
 0x2a8   : > { %832 = vmatpush.bf16.xpose.msrb.mxu1 %v823_v14 }
 0x2ad   : > { %v726_v43 = vpop.f32.mrf.mxu3 }
 0x2ae   : > { %v1196_v17 = vpop.permute.xlu1 %1195  ;;  %v870_v30 = vmul.f32 0.25, %v726_v43 }
 0x2af   : > { %1509 = vmatmul.msk.bf16.vlgmr.msrb.gmra.mxu1 %vm656_vm11, %v1933_v3  ;;  %1208 = vmatpush.bf16.msrb.mxu0 %v1196_v17 }
 0x2b0   : > { %1133 = vmatpush.bf16.msra.mxu1 %v1121_v18  ;;  %v1966_v40 = vadd.f32 %v870_v30, %v628_v24  ;;  %v1502_v18 = vld [vmem:[%s2194_s5 + $0x18] sm:$0xff] }
 0x2b2   : > { %v699_v19 = vpop.f32.mrf.mxu2  ;;  %v910_v47 = vsel %vm656_vm11, %v1966_v40, -inf }
 0x2b3   : > { %v868_v20 = vmul.f32 0.25, %v699_v19  ;;  %v845_v42 = vpop.permute.xlu0 %844 }
 0x2b4   : > { %v850_v21 = vsel %vm656_vm11, %v845_v42, 0  ;;  %v672_v23 = vpop.f32.mrf.mxu1 }
 0x2b5   : > { %v866_v26 = vmul.f32 0.25, %v672_v23  ;;  %859 = vmatpush.bf16.xpose.msrb.mxu2 %v850_v21  ;;  %v1961_v27 = vadd.f32 %v868_v20, %v628_v24  ;;  %v728_v53 = vpop.f32.mrf.mxu3 }
 0x2b6   : > { %v871_v55 = vmul.f32 0.25, %v728_v53 }
 0x2b7   : > { %v904_v31 = vsel %vm656_vm11, %v1961_v27, -inf  ;;  %v882_v33 = vadd.f32 %v866_v26, %v628_v24 }
 0x2b8   : > { %905 = vmax.xlane.f32.xlu2 %v904_v31  ;;  %v1987_v60 = vadd.f32 %v871_v55, %v629_v39 }
 0x2b9   : > { %v898_v34 = vsel %vm656_vm11, %v882_v33, -inf }
 0x2ba   : > { %v701_v32 = vpop.f32.mrf.mxu2  ;;  %899 = vmax.xlane.f32.xlu1 %v898_v34  ;;  %v913_v62 = vsel %vm656_vm11, %v1987_v60, -inf }
 0x2bb   : > { %v869_v37 = vmul.f32 0.25, %v701_v32  ;;  %v1096_v38 = vpop.permute.xlu0 %1095 }
 0x2bc   : > { %v674_v44 = vpop.f32.mrf.mxu1  ;;  %1510 = vmatmul.msk.bf16.vlgmr.msrb.gmra.mxu2 %vm656_vm11, %v1941_v10  ;;  %1108 = vmatpush.bf16.msrb.mxu3 %v1096_v38 }
 0x2bd   : > { %1158 = vmatpush.bf16.msra.mxu2 %v1146_v25  ;;  %v867_v41 = vmul.f32 0.25, %v674_v44  ;;  %v1973_v45 = vadd.f32 %v869_v37, %v629_v39 }
 0x2bf   : > { %v1977_v48 = vadd.f32 %v867_v41, %v629_v39  ;;  %v907_v49 = vsel %vm656_vm11, %v1973_v45, -inf }
 0x2c0   : > { %911 = vmax.xlane.f32.xlu2 %v910_v47 }
 0x2c1   : > { %v901_v50 = vsel %vm656_vm11, %v1977_v48, -inf }
 0x2c2   : > { %908 = vmax.xlane.f32.xlu1 %v907_v49  ;;  %902 = vmax.xlane.f32.xlu0 %v901_v50 }
 0x2c4   : > { %v753_v51 = vpop.f32.mrf.mxu1 }
 0x2c5   : > { %v872_v52 = vmul.f32 0.25, %v753_v51 }
 0x2c7   : > { %v1983_v54 = vadd.f32 %v872_v52, %v628_v24 }
 0x2c9   : > { %v916_v58 = vsel %vm656_vm11, %v1983_v54, -inf }
 0x2ca   : > { %917 = vmax.xlane.f32.xlu1 %v916_v58 }
 0x2cc   : > { %v755_v59 = vpop.f32.mrf.mxu1 }
 0x2cd   : > { %v873_v46 = vmul.f32 0.25, %v755_v59 }
 0x2cf   : > { %v1989_v61 = vadd.f32 %v873_v46, %v629_v39 }
 0x2d1   : > { %v919_v56 = vsel %vm656_vm11, %v1989_v61, -inf }
 0x2d2   : > { %914 = vmax.xlane.f32.xlu1 %v913_v62  ;;  %920 = vmax.xlane.f32.xlu0 %v919_v56 }
 0x2f9   : > { %v807_v0 = vpop.f32.mrf.mxu3 }
 0x2fa   : > { %v876_v22 = vmul.f32 0.25, %v807_v0 }
 0x2fc   : > { %v2007_v16 = vadd.f32 %v1501_v4, %v876_v22 }
 0x2fe   : > { %v928_v24 = vsel %vm656_vm11, %v2007_v16, -inf }
 0x301   : > { %v809_v17 = vpop.f32.mrf.mxu3 }
 0x32a   : > { %v780_v63 = vpop.f32.mrf.mxu2 }
 0x32b   : > { %v874_v1 = vmul.f32 0.25, %v780_v63  ;;  %v906_v57 = vpop.xlane.xlu2 %905 }
 0x32c   : > { %v834_v2 = vpop.f32.mrf.mxu1  ;;  %v948_v29 = vsub.f32 %v1961_v27, %v906_v57  ;;  %v877_v27 = vmul.f32 0.25, %v809_v17 }
 0x32d   : > { %v878_v5 = vmul.f32 0.25, %v834_v2  ;;  %v1998_v6 = vadd.f32 %v1501_v4, %v874_v1  ;;  %v900_v7 = vpop.xlane.xlu1 %899 }
 0x32e   : > { %v946_v8 = vsub.f32 %v882_v33, %v900_v7  ;;  %v966_v19 = vmul.f32 1.442695, %v948_v29  ;;  %v2026_v38 = vadd.f32 %v1502_v18, %v877_v27 }
 0x32f   : > { %v922_v9 = vsel %vm656_vm11, %v1998_v6, -inf  ;;  %v2002_v28 = vadd.f32 %v1501_v4, %v878_v5 }
 0x330   : > { %923 = vmax.xlane.f32.xlu0 %v922_v9  ;;  %v962_v12 = vmul.f32 1.442695, %v946_v8  ;;  %v931_v50 = vsel %vm656_vm11, %v2026_v38, -inf }
 0x331   : > { %v934_v11 = vsel %vm656_vm11, %v2002_v28, -inf }
 0x332   : > { %v782_v13 = vpop.f32.mrf.mxu2  ;;  %935 = vmax.xlane.f32.xlu2 %v934_v11  ;;  %1600 = vpow2.f32 %v962_v12 }
 0x333   : > { %v875_v15 = vmul.f32 0.25, %v782_v13  ;;  %v912_v20 = vpop.xlane.xlu2 %911  ;;  %1602 = vpow2.f32 %v966_v19 }
 0x334   : > { %v836_v14 = vpop.f32.mrf.mxu1  ;;  %v950_v30 = vsub.f32 %v1966_v40, %v912_v20 }
 0x335   : > { %v879_v42 = vmul.f32 0.25, %v836_v14  ;;  %v2012_v43 = vadd.f32 %v1502_v18, %v875_v15  ;;  %v909_v21 = vpop.xlane.xlu1 %908  ;;  %v903_v23 = vpop.xlane.xlu0 %902 }
 0x336   : > { %v947_v25 = vsub.f32 %v1977_v48, %v903_v23  ;;  %v970_v37 = vmul.f32 1.442695, %v950_v30  ;;  %v949_v44 = vsub.f32 %v1973_v45, %v909_v21 }
 0x337   : > { %v2017_v26 = vadd.f32 %v1502_v18, %v879_v42  ;;  %v925_v31 = vsel %vm656_vm11, %v2012_v43, -inf }
 0x338   : > { %929 = vmax.xlane.f32.xlu0 %v928_v24  ;;  %v2024_v34 = vpop.eup %1600  ;;  %v964_v32 = vmul.f32 1.442695, %v947_v25  ;;  %v968_v51 = vmul.f32 1.442695, %v949_v44 }
 0x339   : > { %v937_v33 = vsel %vm656_vm11, %v2017_v26, -inf  ;;  %v2029_v41 = vpop.eup %1602  ;;  %v994_v40 = vsel %vm656_vm11, %v2024_v34, 0.0 }
 0x33a   : > { %926 = vmax.xlane.f32.xlu2 %v925_v31  ;;  %938 = vmax.xlane.f32.xlu1 %v937_v33  ;;  %1604 = vpow2.f32 %v964_v32  ;;  %v1000_v45 = vsel %vm656_vm11, %v2029_v41, 0.0 }
 0x33b   : > { %1606 = vpow2.f32 %v970_v37 }
 0x33c   : > { %1608 = vpow2.f32 %v968_v51 }
 0x33d   : > { %v918_v39 = vpop.xlane.xlu1 %917 }
 0x33e   : > { %v952_v48 = vsub.f32 %v1983_v54, %v918_v39 }
 0x33f   : > { %v861_v47 = vpop.f32.mrf.mxu2 }
 0x340   : > { %995 = vadd.xlane.f32.xlu0 %v994_v40  ;;  %v880_v49 = vmul.f32 0.25, %v861_v47  ;;  %v974_v53 = vmul.f32 1.442695, %v952_v48  ;;  %v2040_v55 = vpop.eup %1604 }
 0x341   : > { %v2042_v46 = vpop.eup %1606  ;;  %v997_v1 = vsel %vm656_vm11, %v2040_v55, 0.0 }
 0x342   : > { %932 = vmax.xlane.f32.xlu2 %v931_v50  ;;  %1001 = vadd.xlane.f32.xlu1 %v1000_v45  ;;  %v2038_v52 = vadd.f32 %v1501_v4, %v880_v49  ;;  %1610 = vpow2.f32 %v974_v53  ;;  %v1006_v2 = vsel %vm656_vm11, %v2042_v46, 0.0  ;;  %v2052_v4 = vpop.eup %1608 }
 0x343   : > { %v1003_v7 = vsel %vm656_vm11, %v2052_v4, 0.0 }
 0x344   : > { %v940_v62 = vsel %vm656_vm11, %v2038_v52, -inf }
 0x345   : > { %v915_v58 = vpop.xlane.xlu1 %914  ;;  %v921_v59 = vpop.xlane.xlu0 %920 }
 0x346   : > { %v951_v54 = vsub.f32 %v1987_v60, %v915_v58  ;;  %v953_v56 = vsub.f32 %v1989_v61, %v921_v59 }
 0x347   : > { %v863_v63 = vpop.f32.mrf.mxu2 }
 0x348   : > { %941 = vmax.xlane.f32.xlu0 %v940_v62  ;;  %v881_v0 = vmul.f32 0.25, %v863_v63  ;;  %v972_v57 = vmul.f32 1.442695, %v951_v54  ;;  %v976_v60 = vmul.f32 1.442695, %v953_v56  ;;  %v2056_v61 = vpop.eup %1610 }
 0x349   : > { %v1012_v8 = vsel %vm656_vm11, %v2056_v61, 0.0 }
 0x34a   : > { %998 = vadd.xlane.f32.xlu2 %v997_v1  ;;  %1007 = vadd.xlane.f32.xlu1 %v1006_v2  ;;  %v2054_v5 = vadd.f32 %v1502_v18, %v881_v0  ;;  %1612 = vpow2.f32 %v972_v57 }
 0x34b   : > { %1614 = vpow2.f32 %v976_v60 }
 0x34c   : > { %v943_v22 = vsel %vm656_vm11, %v2054_v5, -inf }
 0x350   : > { %1004 = vadd.xlane.f32.xlu0 %v1003_v7  ;;  %v2064_v9 = vpop.eup %1612 }
 0x351   : > { %v2066_v29 = vpop.eup %1614  ;;  %v1009_v11 = vsel %vm656_vm11, %v2064_v9, 0.0 }
 0x352   : > { %944 = vmax.xlane.f32.xlu2 %v943_v22  ;;  %1013 = vadd.xlane.f32.xlu1 %v1012_v8  ;;  %v1015_v12 = vsel %vm656_vm11, %v2066_v29, 0.0 }
 0x358   : > { %1010 = vadd.xlane.f32.xlu0 %v1009_v11 }
 0x35a   : > { %1016 = vadd.xlane.f32.xlu2 %v1015_v12 }
 0x3a3   : > { %v924_v13 = vpop.xlane.xlu0 %923 }
 0x3a4   : > { %v954_v15 = vsub.f32 %v1998_v6, %v924_v13 }
 0x3a5   : > { %v936_v14 = vpop.xlane.xlu2 %935 }
 0x3a6   : > { %v978_v18 = vmul.f32 1.442695, %v954_v15  ;;  %v958_v21 = vsub.f32 %v2002_v28, %v936_v14 }
 0x3a8   : > { %1616 = vpow2.f32 %v978_v18  ;;  %v986_v31 = vmul.f32 1.442695, %v958_v21 }
 0x3ab   : > { %v930_v17 = vpop.xlane.xlu0 %929 }
 0x3ac   : > { %v956_v19 = vsub.f32 %v2007_v16, %v930_v17 }
 0x3ad   : > { %v927_v20 = vpop.xlane.xlu2 %926  ;;  %v939_v25 = vpop.xlane.xlu1 %938 }
 0x3ae   : > { %v2074_v42 = vpop.eup %1616  ;;  %v982_v23 = vmul.f32 1.442695, %v956_v19  ;;  %v955_v24 = vsub.f32 %v2012_v43, %v927_v20  ;;  %v959_v27 = vsub.f32 %v2017_v26, %v939_v25 }
 0x3af   : > { %v1018_v6 = vsel %vm656_vm11, %v2074_v42, 0.0 }
 0x3b0   : > { %1618 = vpow2.f32 %v982_v23  ;;  %v980_v30 = vmul.f32 1.442695, %v955_v24  ;;  %1019 = vadd.xlane.f32.xlu2 %v1018_v6  ;;  %v988_v16 = vmul.f32 1.442695, %v959_v27 }
 0x3b2   : > { %1620 = vpow2.f32 %v980_v30 }
 0x3b3   : > { %v996_v33 = vpop.xlane.xlu0 %995  ;;  %1622 = vpow2.f32 %v986_v31 }
 0x3b4   : > { %1624 = vpow2.f32 %v988_v16 }
 0x3b5   : > { %v933_v32 = vpop.xlane.xlu2 %932  ;;  %1626 = vrcp.f32 %v996_v33  ;;  %v1002_v39 = vpop.xlane.xlu1 %1001 }
 0x3b6   : > { %v2081_v37 = vpop.eup %1618  ;;  %v957_v28 = vsub.f32 %v2026_v38, %v933_v32  ;;  %1628 = vrcp.f32 %v1002_v39 }
 0x3b7   : > { %v1024_v43 = vsel %vm656_vm11, %v2081_v37, 0.0 }
 0x3b8   : > { %v2086_v26 = vpop.eup %1620  ;;  %1025 = vadd.xlane.f32.xlu0 %v1024_v43  ;;  %v984_v44 = vmul.f32 1.442695, %v957_v28 }
 0x3b9   : > { %v1021_v40 = vsel %vm656_vm11, %v2086_v26, 0.0  ;;  %v2090_v48 = vpop.eup %1622 }
 0x3ba   : > { %1022 = vadd.xlane.f32.xlu1 %v1021_v40  ;;  %v2092_v49 = vpop.eup %1624  ;;  %1630 = vpow2.f32 %v984_v44  ;;  %v1030_v51 = vsel %vm656_vm11, %v2090_v48, 0.0 }
 0x3bb   : > { %v942_v47 = vpop.xlane.xlu0 %941  ;;  %v1627_v50 = vpop.eup %1626  ;;  %v1033_v53 = vsel %vm656_vm11, %v2092_v49, 0.0 }
 0x3bc   : > { %v1058_v45 = vmul.f32 %v1627_v50, %v2024_v34  ;;  %v1629_v58 = vpop.eup %1628 }
 0x3bd   : > { %v999_v38 = vpop.xlane.xlu2 %998  ;;  %v1008_v54 = vpop.xlane.xlu1 %1007  ;;  %v1060_v1 = vmul.f32 %v1629_v58, %v2029_v41 }
 0x3be   : > { %1632 = vrcp.f32 %v999_v38  ;;  %v1074_v63 = vpack.c.bf16 %v1058_v45, %v1058_v45 }
 0x3bf   : > { %v1076_v22 = vpack.c.bf16 %v1060_v1, %v1060_v1 }
 0x3c0   : > { %1031 = vadd.xlane.f32.xlu0 %v1030_v51  ;;  %v2099_v59 = vpop.eup %1630  ;;  %v1092_v2 = vunpack.c.l.b16 %v1074_v63 }
 0x3c1   : > { %v1027_v34 = vsel %vm656_vm11, %v2099_v59, 0.0  ;;  %v1117_v41 = vunpack.c.l.b16 %v1076_v22 }
 0x3c2   : > { %1034 = vadd.xlane.f32.xlu1 %v1033_v53 }
 0x3c3   : > { %v1005_v62 = vpop.xlane.xlu0 %1004 }
 0x3c4   : > { %v1633_v56 = vpop.eup %1632  ;;  %1634 = vrcp.f32 %v1005_v62 }
 0x3c5   : > { %v1059_v0 = vmul.f32 %v1633_v56, %v2040_v55  ;;  %1636 = vrcp.f32 %v1008_v54  ;;  %v945_v25 = vpop.xlane.xlu2 %944  ;;  %v1014_v31 = vpop.xlane.xlu1 %1013 }
 0x3c7   : > { %v1075_v57 = vpack.c.bf16 %v1059_v0, %v1059_v0 }
 0x3c8   : > { %1220 = vrot.lane.b32.xlu2 %v1919_v36, %s1675_s24  ;;  %1028 = vadd.xlane.f32.xlu0 %v1027_v34 }
 0x3c9   : > { %v1093_v60 = vunpack.c.l.b16 %v1075_v57 }
 0x3ca   : > { %v1635_v7 = vpop.eup %1634 }
 0x3cb   : > { %v1094_v8 = vpack.c.b16 %v1093_v60, %v1092_v2  ;;  %v1061_v11 = vmul.f32 %v1635_v7, %v2052_v4  ;;  %v1011_v12 = vpop.xlane.xlu0 %1010  ;;  %v1637_v55 = vpop.eup %1636 }
 0x3cc   : > { %1638 = vrcp.f32 %v1011_v12  ;;  %v1062_v15 = vmul.f32 %v1637_v55, %v2042_v46  ;;  %v960_v46 = vsub.f32 %v2038_v52, %v942_v47 }
 0x3cd   : > { %v1077_v13 = vpack.c.bf16 %v1061_v11, %v1061_v11  ;;  %1511 = vmatmul.msk.bf16.vlgmr.msrb.gmra.mxu3 %vm656_vm11, %v1094_v8  ;;  %v1017_v52 = vpop.xlane.xlu2 %1016 }
 0x3ce   : > { %v1078_v17 = vpack.c.bf16 %v1062_v15, %v1062_v15  ;;  %v990_v24 = vmul.f32 1.442695, %v960_v46 }
 0x3cf   : > { %v1118_v14 = vunpack.c.l.b16 %v1077_v13 }
 0x3d0   : > { %v1142_v21 = vunpack.c.l.b16 %v1078_v17  ;;  %1640 = vpow2.f32 %v990_v24 }
 0x3d1   : > { %v1119_v18 = vpack.c.b16 %v1118_v14, %v1117_v41 }
 0x3d2   : > { %v1639_v36 = vpop.eup %1638 }
 0x3d3   : > { %v1063_v19 = vmul.f32 %v1639_v36, %v2064_v9  ;;  %1512 = vmatmul.msk.bf16.vlgmr.msra.gmra.mxu1 %vm656_vm11, %v1119_v18 }
 0x3d5   : > { %v1079_v20 = vpack.c.bf16 %v1063_v19, %v1063_v19 }
 0x3d6   : > { %v2120_v9 = vpop.eup %1640 }
 0x3d7   : > { %v1143_v4 = vunpack.c.l.b16 %v1079_v20  ;;  %v1036_v27 = vsel %vm656_vm11, %v2120_v9, 0.0 }
 0x3d9   : > { %v1144_v23 = vpack.c.b16 %v1143_v4, %v1142_v21 }
 0x3db   : > { %1170 = vrot.lane.b32.xlu1 %v1915_v35, %s1675_s24  ;;  %1513 = vmatmul.msk.bf16.vlgmr.msra.gmra.mxu2 %vm656_vm11, %v1144_v23  ;;  %v961_v35 = vsub.f32 %v2054_v5, %v945_v25 }
 0x3dc   : > { %1245 = vrot.lane.b32.xlu0 %v1933_v3, %s1675_s24 }
 0x3dd   : > { %v992_v6 = vmul.f32 1.442695, %v961_v35 }
 0x3df   : > { %1642 = vpow2.f32 %v992_v6 }
 0x3e4   : > { %1270 = vrot.lane.b32.xlu0 %v1941_v10, %s1675_s24 }
 0x3e5   : > { %v2125_v30 = vpop.eup %1642 }
 0x3e6   : > { %v1039_v3 = vsel %vm656_vm11, %v2125_v30, 0.0 }
 0x3f1   : > { %1037 = vadd.xlane.f32.xlu2 %v1036_v27 }
 0x405   : > { %1040 = vadd.xlane.f32.xlu1 %v1039_v3 }
 0x423   : > { %v1020_v10 = vpop.xlane.xlu2 %1019 }
 0x424   : > { %1644 = vrcp.f32 %v1020_v10 }
 0x42a   : > { %v1645_v28 = vpop.eup %1644 }
 0x42b   : > { %v1221_v16 = vpop.permute.xlu2 %1220  ;;  %v1026_v33 = vpop.xlane.xlu0 %1025  ;;  %v1066_v5 = vmul.f32 %v1645_v28, %v2074_v42 }
 0x42c   : > { %1233 = vmatpush.bf16.msrb.mxu1 %v1221_v16 }
 0x42d   : > { %v1023_v32 = vpop.xlane.xlu1 %1022  ;;  %v1082_v39 = vpack.c.bf16 %v1066_v5, %v1066_v5 }
 0x42e   : > { %1646 = vrcp.f32 %v1023_v32 }
 0x42f   : > { %1648 = vrcp.f32 %v1026_v33  ;;  %v1192_v50 = vunpack.c.l.b16 %v1082_v39 }
 0x430   : > { %1650 = vrcp.f32 %v1014_v31 }
 0x431   : > { %1652 = vrcp.f32 %v1017_v52 }
 0x433   : > { %v1032_v43 = vpop.xlane.xlu0 %1031 }
 0x434   : > { %v1647_v44 = vpop.eup %1646 }
 0x435   : > { %v1067_v40 = vmul.f32 %v1647_v44, %v2086_v26  ;;  %v1035_v38 = vpop.xlane.xlu1 %1034  ;;  %v1649_v58 = vpop.eup %1648 }
 0x436   : > { %1654 = vrcp.f32 %v1035_v38  ;;  %v1651_v42 = vpop.eup %1650  ;;  %v1068_v54 = vmul.f32 %v1649_v58, %v2081_v37 }
 0x437   : > { %v1083_v47 = vpack.c.bf16 %v1067_v40, %v1067_v40  ;;  %v1653_v62 = vpop.eup %1652  ;;  %v1064_v2 = vmul.f32 %v1651_v42, %v2056_v61  ;;  %v1538_v40 = vld [vmem:[%s2195_s6 + $0x8] sm:$0xff] }
 0x438   : > { %v1065_v0 = vmul.f32 %v1653_v62, %v2066_v29  ;;  %v1084_v1 = vpack.c.bf16 %v1068_v54, %v1068_v54  ;;  %1389 = vmatpush.bf16.msra.mxu0 %v1538_v40 }
 0x439   : > { %v1193_v51 = vunpack.c.l.b16 %v1083_v47  ;;  %v1080_v12 = vpack.c.bf16 %v1064_v2, %v1064_v2  ;;  %v1537_v47 = vld [vmem:[%s2195_s6] sm:$0xff] }
 0x43a   : > { %v1081_v22 = vpack.c.bf16 %v1065_v0, %v1065_v0  ;;  %v1217_v8 = vunpack.c.l.b16 %v1084_v1 }
 0x43b   : > { %v1029_v45 = vpop.xlane.xlu0 %1028  ;;  %v1194_v53 = vpack.c.b16 %v1193_v51, %v1192_v50  ;;  %v1167_v15 = vunpack.c.l.b16 %v1080_v12 }
 0x43c   : > { %1656 = vrcp.f32 %v1029_v45  ;;  %v1655_v26 = vpop.eup %1654  ;;  %v1168_v41 = vunpack.c.l.b16 %v1081_v22  ;;  %1390 = vmatpush.bf16.msra.mxu0 %v1537_v47 }
 0x43d   : > { %1658 = vrcp.f32 %v1032_v43  ;;  %1515 = vmatmul.msk.bf16.vlgmr.msrb.gmra.mxu0 %vm656_vm11, %v1194_v53  ;;  %v1071_v34 = vmul.f32 %v1655_v26, %v2092_v49 }
 0x43e   : > { %v1169_v61 = vpack.c.b16 %v1168_v41, %v1167_v15 }
 0x43f   : > { %v1087_v37 = vpack.c.bf16 %v1071_v34, %v1071_v34 }
 0x441   : > { %v1243_v29 = vunpack.c.l.b16 %v1087_v37 }
 0x442   : > { %v1657_v56 = vpop.eup %1656 }
 0x443   : > { %v1659_v63 = vpop.eup %1658  ;;  %v1069_v57 = vmul.f32 %v1657_v56, %v2099_v59 }
 0x444   : > { %v1070_v7 = vmul.f32 %v1659_v63, %v2090_v48 }
 0x445   : > { %v1085_v60 = vpack.c.bf16 %v1069_v57, %v1069_v57 }
 0x446   : > { %v1086_v13 = vpack.c.bf16 %v1070_v7, %v1070_v7 }
 0x447   : > { %v1218_v11 = vunpack.c.l.b16 %v1085_v60 }
 0x448   : > { %v1242_v14 = vunpack.c.l.b16 %v1086_v13 }
 0x449   : > { %v1219_v55 = vpack.c.b16 %v1218_v11, %v1217_v8  ;;  %v1581_v8 = vld [vmem:[%s2196_s7] ss:$0 sm:$0xff] }
 0x44a   : > { %v1244_v18 = vpack.c.b16 %v1243_v29, %v1242_v14 }
 0x44b   : > { %1516 = vmatmul.msk.bf16.vlgmr.msrb.gmra.mxu1 %vm656_vm11, %v1219_v55 }
 0x44d   : > { %v1171_v59 = vpop.permute.xlu1 %1170 }
 0x44e   : > { %1183 = vmatpush.bf16.msra.mxu3 %v1171_v59  ;;  %v1246_v49 = vpop.permute.xlu0 %1245 }
 0x44f   : > { %1258 = vmatpush.bf16.msrb.mxu2 %v1246_v49 }
 0x450   : > { %v1110_v48 = vpop.f32.mrf.mxu3  ;;  %v1135_v36 = vpop.f32.mrf.mxu1 }
 0x451   : > { %1290 = vst.msk [vmem:[#allocation2] sm:$0xff] %vm656_vm11, %v1110_v48  ;;  %1514 = vmatmul.msk.bf16.vlgmr.msra.gmra.mxu3 %vm656_vm11, %v1169_v61 }
 0x452   : > { %1292 = vst.msk [vmem:[#allocation2 + $0x10] sm:$0xff] %vm656_vm11, %v1135_v36  ;;  %1517 = vmatmul.msk.bf16.vlgmr.msrb.gmra.mxu2 %vm656_vm11, %v1244_v18 }
 0x456   : > { %v1271_v17 = vpop.permute.xlu0 %1270 }
 0x457   : > { %1283 = vmatpush.bf16.msrb.mxu3 %v1271_v17 }
 0x458   : > { %v1112_v19 = vpop.f32.mrf.mxu3  ;;  %v1137_v20 = vpop.f32.mrf.mxu1 }
 0x459   : > { %1291 = vst.msk [vmem:[#allocation2 + $0x8] sm:$0xff] %vm656_vm11, %v1112_v19 }
 0x45a   : > { %1293 = vst.msk [vmem:[#allocation2 + $0x18] sm:$0xff] %vm656_vm11, %v1137_v20 }
 0x45e   : > { %v1160_v21 = vpop.f32.mrf.mxu2 }
 0x45f   : > { %1294 = vst.msk [vmem:[#allocation2 + $0x20] sm:$0xff] %vm656_vm11, %v1160_v21 }
 0x464   : > { %v1038_v23 = vpop.xlane.xlu2 %1037 }
 0x465   : > { %1660 = vrcp.f32 %v1038_v23 }
 0x466   : > { %v1162_v4 = vpop.f32.mrf.mxu2 }
 0x467   : > { %1295 = vst.msk [vmem:[#allocation2 + $0x28] sm:$0xff] %vm656_vm11, %v1162_v4 }
 0x46b   : > { %v1661_v24 = vpop.eup %1660 }
 0x46c   : > { %v1072_v25 = vmul.f32 %v1661_v24, %v2120_v9 }
 0x46e   : > { %v1088_v35 = vpack.c.bf16 %v1072_v25, %v1072_v25 }
 0x470   : > { %v1267_v52 = vunpack.c.l.b16 %v1088_v35 }
 0x478   : > { %v1041_v46 = vpop.xlane.xlu1 %1040 }
 0x479   : > { %1662 = vrcp.f32 %v1041_v46 }
 0x47f   : > { %v1663_v27 = vpop.eup %1662 }
 0x480   : > { %v1073_v6 = vmul.f32 %v1663_v27, %v2125_v30 }
 0x482   : > { %v1089_v3 = vpack.c.bf16 %v1073_v6, %v1073_v6 }
 0x484   : > { %v1268_v10 = vunpack.c.l.b16 %v1089_v3 }
 0x486   : > { %v1269_v31 = vpack.c.b16 %v1268_v10, %v1267_v52 }
 0x488   : > { %1518 = vmatmul.msk.bf16.vlgmr.msrb.gmra.mxu3 %vm656_vm11, %v1269_v31 }
 0x4ba   : > { %v1210_v16 = vpop.f32.mrf.mxu0 }
 0x4bb   : > { %1306 = vrot.lane.b32.xlu0 %v1210_v16, %s1676_s14 }
 0x4c2   : > { %v1212_v33 = vpop.f32.mrf.mxu0 }
 0x4c3   : > { %1308 = vrot.lane.b32.xlu0 %v1212_v33, %s1676_s14 }
 0x4c8   : > { %v1235_v32 = vpop.f32.mrf.mxu1 }
 0x4cb   : > { %1310 = vrot.lane.b32.xlu0 %v1235_v32, %s1676_s14 }
 0x4d0   : > { %v1237_v28 = vpop.f32.mrf.mxu1 }
 0x4d3   : > { %1312 = vrot.lane.b32.xlu0 %v1237_v28, %s1676_s14 }
 0x4d4   : > { %v1185_v9 = vpop.f32.mrf.mxu3 }
 0x4d5   : > { %1296 = vst.msk [vmem:[#allocation2 + $0x30] sm:$0xff] %vm656_vm11, %v1185_v9  ;;  %v1260_v5 = vpop.f32.mrf.mxu2 }
 0x4d6   : > { %1314 = vrot.lane.b32.xlu2 %v1260_v5, %s1676_s14 }
 0x4dc   : > { %v1187_v30 = vpop.f32.mrf.mxu3 }
 0x4dd   : > { %1297 = vst.msk [vmem:[#allocation2 + $0x38] sm:$0xff] %vm656_vm11, %v1187_v30  ;;  %v1262_v43 = vpop.f32.mrf.mxu2 }
 0x4de   : > { %1316 = vrot.lane.b32.xlu0 %v1262_v43, %s1676_s14 }
 0x50b   : > { %v1285_v44 = vpop.f32.mrf.mxu3 }
 0x50c   : > { %1318 = vrot.lane.b32.xlu1 %v1285_v44, %s1676_s14 }
 0x513   : > { %v1287_v39 = vpop.f32.mrf.mxu3 }
 0x514   : > { %1320 = vrot.lane.b32.xlu0 %v1287_v39, %s1676_s14 }
 0x52d   : > { %v1307_v38 = vpop.permute.xlu0 %1306 }
 0x52e   : > { %1331 = vst.msk [vmem:[#allocation2] sm:$0xff] %vm1330_vm12, %v1307_v38 }
 0x530   : > { %v1315_v50 = vpop.permute.xlu2 %1314 }
 0x531   : > { %1335 = vst.msk [vmem:[#allocation2 + $0x20] sm:$0xff] %vm1330_vm12, %v1315_v50 }
 0x535   : > { %v1309_v51 = vpop.permute.xlu0 %1308  ;;  %v1339_v53 = vld [vmem:[#allocation2] sm:$0xff] }
 0x536   : > { %1332 = vst.msk [vmem:[#allocation2 + $0x8] sm:$0xff] %vm1330_vm12, %v1309_v51 }
 0x538   : > { %v1343_v1 = vld [vmem:[#allocation2 + $0x20] sm:$0xff] }
 0x53d   : > { %v1311_v45 = vpop.permute.xlu0 %1310  ;;  %v1340_v58 = vld [vmem:[#allocation2 + $0x8] sm:$0xff] }
 0x53e   : > { %1333 = vst.msk [vmem:[#allocation2 + $0x10] sm:$0xff] %vm1330_vm12, %v1311_v45  ;;  %v1347_v42 = vpack.c.bf16 %v1340_v58, %v1339_v53 }
 0x540   : > { %1527 = vmatmul.msk.bf16.vlgmr.msra.gmra.mxu0 %vm323_vm0, %v1347_v42 }
 0x545   : > { %v1313_v54 = vpop.permute.xlu0 %1312  ;;  %v1341_v62 = vld [vmem:[#allocation2 + $0x10] sm:$0xff] }
 0x546   : > { %1334 = vst.msk [vmem:[#allocation2 + $0x18] sm:$0xff] %vm1330_vm12, %v1313_v54 }
 0x54d   : > { %v1342_v26 = vld [vmem:[#allocation2 + $0x18] sm:$0xff] }
 0x54e   : > { %v1348_v56 = vpack.c.bf16 %v1342_v26, %v1341_v62 }
 0x550   : > { %1528 = vmatmul.msk.bf16.gmra.mxu0 %vm323_vm0, %v1348_v56  ;;  %v1317_v63 = vpop.permute.xlu0 %1316 }
 0x551   : > { %1336 = vst.msk [vmem:[#allocation2 + $0x28] sm:$0xff] %vm1330_vm12, %v1317_v63 }
 0x558   : > { %v1344_v0 = vld [vmem:[#allocation2 + $0x28] sm:$0xff] }
 0x559   : > { %v1349_v57 = vpack.c.bf16 %v1344_v0, %v1343_v1 }
 0x560   : > { %1529 = vmatmul.msk.bf16.gmra.mxu0 %vm323_vm0, %v1349_v57 }
 0x57e   : > { %v1319_v34 = vpop.permute.xlu1 %1318 }
 0x57f   : > { %1337 = vst.msk [vmem:[#allocation2 + $0x30] sm:$0xff] %vm1330_vm12, %v1319_v34 }
 0x586   : > { %v1321_v2 = vpop.permute.xlu0 %1320  ;;  %v1345_v60 = vld [vmem:[#allocation2 + $0x30] sm:$0xff] }
 0x587   : > { %1338 = vst.msk [vmem:[#allocation2 + $0x38] sm:$0xff] %vm1330_vm12, %v1321_v2 }
 0x58e   : > { %v1346_v7 = vld [vmem:[#allocation2 + $0x38] sm:$0xff] }
 0x58f   : > { %v1350_v22 = vpack.c.bf16 %v1346_v7, %v1345_v60 }
 0x591   : > { %1530 = vmatmul.msk.bf16.gmra.mxu0 %vm323_vm0, %v1350_v22 }
 0x5bd   : > { %v1392_v11 = vpop.f32.mrf.mxu0 }
 0x5be   : > { %v1393_v37 = vadd.f32 %v1581_v8, %v1392_v11 }
 0x5c0   : > { %1412 = vst.msk [vmem:[%s312_s23] sm:$0xff] %vm323_vm0, %v1393_v37 }
 0x5c5   : > { %v1394_v12 = vpop.f32.mrf.mxu0 }
 0x5c6   : > { %v1395_v55 = vadd.f32 %v1581_v8, %v1394_v12 }
 0x5c8   : > { %1413 = vst.msk [vmem:[%s312_s23 + $0x8] sm:$0xff] %vm323_vm0, %v1395_v55 }
 0x5cd   : > { %v1397_v13 = vpop.f32.mrf.mxu0 }
 0x5ce   : > { %v1398_v41 = vadd.f32 %v1581_v8, %v1397_v13 }
 0x5d0   : > { %1414 = vst.msk [vmem:[%s312_s23 + $0x10] sm:$0xff] %vm323_vm0, %v1398_v41 }
 0x5d5   : > { %v1399_v29 = vpop.f32.mrf.mxu0 }
 0x5d6   : > { %v1400_v15 = vadd.f32 %v1581_v8, %v1399_v29 }
 0x5d8   : > { %1415 = vst.msk [vmem:[%s312_s23 + $0x18] sm:$0xff] %vm323_vm0, %v1400_v15 }
 0x5dd   : > { %v1402_v59 = vpop.f32.mrf.mxu0 }
 0x5de   : > { %v1403_v14 = vadd.f32 %v1581_v8, %v1402_v59 }
 0x5e0   : > { %1416 = vst.msk [vmem:[%s312_s23 + $0x20] sm:$0xff] %vm323_vm0, %v1403_v14 }
 0x5e5   : > { %v1404_v49 = vpop.f32.mrf.mxu0 }
 0x5e6   : > { %v1405_v61 = vadd.f32 %v1581_v8, %v1404_v49 }
 0x5e8   : > { %1417 = vst.msk [vmem:[%s312_s23 + $0x28] sm:$0xff] %vm323_vm0, %v1405_v61 }
 0x60e   : > { %v1407_v18 = vpop.f32.mrf.mxu0 }
 0x60f   : > { %v1408_v48 = vadd.f32 %v1581_v8, %v1407_v18 }
 0x611   : > { %1418 = vst.msk [vmem:[%s312_s23 + $0x30] sm:$0xff] %vm323_vm0, %v1408_v48 }
 0x616   : > { %v1409_v36 = vpop.f32.mrf.mxu0 }
 0x617   : > { %v1410_v17 = vadd.f32 %v1581_v8, %v1409_v36 }
 0x619   : > { %1419 = vst.msk [vmem:[%s312_s23 + $0x38] sm:$0xff] %vm323_vm0, %v1410_v17 }
 0x61a PF: > { %s18_s27 = sadd.s32 1, %s1670_s27  }
 0x61b   : > { %p15_p4 = scmp.ge.s32.totalorder %s18_s27, 4  }
 0x61d   :  { %17 = sbr.rel (!%p15_p4) target bundleno = 1 (0x1), region = 83 }

// kernel: mobile_sam_forward.5
= control target key start
LH: loop header
LB: loop body
LE: loop exit
PB: predicated region body
PF: predicated region fallthrough
CT: control target
= control target key end

     0   :  { %s3214_s0 = inlined_call_operand.vmem [shape: bf16[2,64,144], index: 0, kind: input, shape index: {}]   ;;  %s3215_s1 = inlined_call_operand.vmem [shape: bf16[144,32], index: 1, kind: input, shape index: {}]   ;;  %s3216_s2 = inlined_call_operand.vmem [shape: f32[1,32], index: 2, kind: input, shape index: {}]   ;;  %s3217_s3 = inlined_call_operand.vmem [shape: bf16[32,64], index: 3, kind: input, shape index: {}]   ;;  %s3218_s4 = inlined_call_operand.vmem [shape: f32[1,64], index: 4, kind: input, shape index: {}]   ;;  %s3219_s5 = inlined_call_operand.vmem [shape: f32[3,3,64], index: 5, kind: input, shape index: {}]   ;;  %s3220_s6 = inlined_call_operand.vmem [shape: f32[1,64], index: 6, kind: input, shape index: {}]   ;;  %s3221_s7 = inlined_call_operand.vmem [shape: bf16[64,32], index: 7, kind: input, shape index: {}]   ;;  %s3222_s8 = inlined_call_operand.vmem [shape: f32[1,32], index: 8, kind: input, shape index: {}]   ;;  %s3223_s9 = inlined_call_operand.vmem [shape: bf16[32,32], index: 9, kind: input, shape index: {}]   ;;  %s3224_s10 = inlined_call_operand.vmem [shape: f32[1,32], index: 10, kind: input, shape index: {}]   ;;  %s3225_s11 = inlined_call_operand.hbm [shape: f32[2,64,64], index: 11, kind: output, shape index: {0}]   ;;  %s3226_s12 = inlined_call_operand.hbm [shape: f32[2,64,32], index: 12, kind: output, shape index: {1}]   ;;  %s3227_s13 = inlined_call_operand.hbm [shape: f32[2,64,32], index: 13, kind: output, shape index: {2}]   ;;  %s3228_s14 = inlined_call_operand.vmem [shape: f32[2,64,32], index: 14, kind: output, shape index: {3}]  }
   0x1   :  { %3233 = sst [smem:[#allocation12_spill]] %s3214_s0 }
   0x2   :  { %3234 = sst [smem:[#allocation13_spill]] %s3215_s1 }
   0x3   :  { %3235 = sst [smem:[#allocation14_spill]] %s3216_s2 }
   0x4   :  { %3236 = sst [smem:[#allocation15_spill]] %s3217_s3 }
   0x5   :  { %3237 = sst [smem:[#allocation16_spill]] %s3218_s4 }
   0x6   :  { %3238 = sst [smem:[#allocation17_spill]] %s3219_s5 }
   0x7   :  { %3239 = sst [smem:[#allocation18_spill]] %s3220_s6 }
   0x8   :  { %3240 = sst [smem:[#allocation19_spill]] %s3221_s7 }
   0x9   :  { %3241 = sst [smem:[#allocation20_spill]] %s3222_s8 }
   0xa   :  { %20 = vsyncpa [#allocation4], 0 }
   0xb   :  { %22 = vsyncpa [#allocation4 + $0x1], 0 }
   0xc   :  { %23 = vsyncpa [#allocation6], 0 }
   0xd   :  { %25 = vsyncpa [#allocation6 + $0x1], 0  ;;  %s2408_s29 = smov 0   ;;  %s2410_s30 = smov 0  }
   0xe   :  { %s2412_s15 = smov 0   ;;  %s2414_s16 = smov 0  }
   0xf LB: > { %3242 = sst [smem:[#allocation10_spill]] %s2324_s15  ;;  %s2429_s17 = sadd.s32 4294967295, %s2328_s16   ;;  %s2328_s16 = sphi %s2414_s16, %s3262_s16   ;;  %s2324_s15 = sphi %s2412_s15, %s3259_s15   ;;  %s2320_s30 = sphi %s2410_s30, %s3261_s30   ;;  %s2316_s29 = sphi %s2408_s29, %s3260_s29  }
  0x10   : > { %s3229_s18 = sadd.s32 4294967294, %s2328_s16   ;;  %s2433_s19 = sadd.s32 1, %s2328_s16  }
  0x11   : > { %s274_s20 = sadd.s32 1, %s2324_s15  ;;  %s271_s21 = ssub.s32 %s2328_s16, %s2433_s19 }
  0x12   : > { %p284_p0 = scmp.ne.s32.totalorder %s2324_s15, %s2320_s30  ;;  %p272_p1 = scmp.eq.s32.totalorder %s271_s21, 0 }
  0x13   : > { %p285_p2 = scmp.eq.s32.totalorder %s2429_s17, 1  ;;  %p290_p3 = scmp.ne.s32.totalorder %s2320_s30, %s2316_s29 }
  0x14   : > { %p291_p4 = scmp.eq.s32.totalorder %s3229_s18, 1  ;;  %p1934_p7 = scmp.ge.s32.totalorder %s2328_s16, 1 }
  0x15   : > { %s2446_s22 = scalar_select %p272_p1, %s2324_s15, %s274_s20  }
  0x16   : > { %p2448_p5 = por %p285_p2, %p284_p0  ;;  %p2452_p6 = por %p291_p4, %p290_p3 }
  0x17   : > { %3243 = sst [smem:[#allocation11_spill]] %s2446_s22  ;;  %p425_p8 = scmp.lt.s32.totalorder %s2328_s16, 3 }
  0x19   : > { %p426_p9 = pnand %p1934_p7, %p425_p8 }
  0x1a   : > { %s3246_s1 = sld [smem:[#allocation13_spill]] (!%p426_p9)  ;;  %p486_p10 = scmp.lt.s32.totalorder (!%p426_p9), %s2429_s17, 1 }
  0x1b   : > { %429 = sbr.rel (%p426_p9) target bundleno = 811 (0x32b), region = 64  ;;  %s3247_s0 = sld [smem:[#allocation12_spill]] (!%p426_p9) }
  0x1c   : > { %s3248_s3 = sld [smem:[#allocation15_spill]] (!%p426_p9)  ;;  %s3232_s21 = sand.u32 (!%p426_p9), 1, %s2320_s30  }
  0x1d   : > { %s3249_s2 = sld [smem:[#allocation14_spill]] (!%p426_p9)  ;;  %s2825_s25 = sshll.u32 (!%p426_p9), %s3232_s21, 6 }
  0x1e   : > { %s3250_s4 = sld [smem:[#allocation16_spill]] (!%p426_p9)  ;;  %s2844_s26 = scalar_lea.vmem (!%p426_p9), [#allocation3], %s2825_s25 }
  0x1f   : > { %s3251_s5 = sld [smem:[#allocation17_spill]] (!%p426_p9)  ;;  %s3048_s28 = scalar_lea.vmem (!%p426_p9), [#allocation5], %s2825_s25 }
  0x20   : > { %v2086_v0 = vld [vmem:[%s3246_s1 + $0x38] sm:$0xff]  ;;  %v2085_v1 = vld [vmem:[%s3246_s1 + $0x30] sm:$0xff]  ;;  %v2087_v2 = vld [vmem:[%s3246_s1 + $0x40] sm:$0xff]  ;;  %s2469_s18 = scalar_select %p486_p10, %s2429_s17, 1  ;;  %vm617_vm0 = vcmask 130048   ;;  %vm712_vm1 = vcmask 261120  }
  0x21   : > { %630 = vmatpush.bf16.msra.mxu0 %v2086_v0  ;;  %666 = vmatpush.bf16.msra.mxu1 %v2087_v2  ;;  %v2084_v3 = vld [vmem:[%s3246_s1 + $0x28] sm:$0xff]  ;;  %v2083_v10 = vld [vmem:[%s3246_s1 + $0x20] sm:$0xff]  ;;  %v2082_v11 = vld [vmem:[%s3246_s1 + $0x18] sm:$0xff]  ;;  %vm826_vm2 = vcmask 523264   ;;  %vm828_vm3 = vcmask 517120   ;;  %vm930_vm4 = vcmask 1046528  }
  0x22   : > { %s3231_s22 = sshll.u32 %s2469_s18, 6  ;;  %2099 = vmatpush.bf16.msra.mxu2 %v2087_v2  ;;  %2100 = vmatpush.bf16.msra.mxu3 %v2087_v2  ;;  %v2081_v12 = vld [vmem:[%s3246_s1 + $0x10] sm:$0xff]  ;;  %v2080_v15 = vld [vmem:[%s3246_s1 + $0x8] sm:$0xff]  ;;  %v2079_v17 = vld [vmem:[%s3246_s1] sm:$0xff]  ;;  %vm1004_vm5 = vcmask 1045504   ;;  %s3252_s7 = sld [smem:[#allocation19_spill]] }
  0x23   : > { %s2477_s15 = scalar_lea.vmem %s3247_s0, %s3231_s22  ;;  %v2089_v27 = vld [vmem:[%s3248_s3 + $0x8] sm:$0xff]  ;;  %v2088_v34 = vld [vmem:[%s3248_s3] sm:$0xff]  ;;  %s3253_s6 = sld [smem:[#allocation18_spill]] }
  0x24   : > { %v2071_v4 = vld [vmem:[%s2477_s15 + $0x4] sm:$0xf]  ;;  %v1946_v5 = vld [vmem:[%s2477_s15 + $0x8] sm:$0xf0]  ;;  %v2073_v7 = vld [vmem:[%s2477_s15 + $0x14] sm:$0xf] }
  0x25   : > { %631 = vmatpush.bf16.msra.mxu0 %v2085_v1  ;;  %v1949_v6 = vor.u32 %v2071_v4, %v1946_v5  ;;  %v1954_v8 = vld [vmem:[%s2477_s15 + $0x18] sm:$0xf0]  ;;  %v2075_v13 = vld [vmem:[%s2477_s15 + $0x24] sm:$0xf]  ;;  %v1962_v14 = vld [vmem:[%s2477_s15 + $0x28] sm:$0xf0] }
  0x26   : > { %v1957_v9 = vor.u32 %v2073_v7, %v1954_v8  ;;  %v1965_v16 = vor.u32 %v2075_v13, %v1962_v14  ;;  %v1944_v18 = vld [vmem:[%s2477_s15] sm:$0xf]  ;;  %v2072_v19 = vld [vmem:[%s2477_s15 + $0x4] sm:$0xf0]  ;;  %v2077_v21 = vld [vmem:[%s2477_s15 + $0x34] sm:$0xf]  ;;  %731 = vmatpush.bf16.msrb.mxu2 %v2089_v27 }
  0x27   : > { %2010 = vmatmul.msk.bf16.vlgmr.msra.gmra.mxu1 %vm617_vm0, %v1949_v6  ;;  %v1945_v20 = vor.u32 %v2072_v19, %v1944_v18  ;;  %v1970_v22 = vld [vmem:[%s2477_s15 + $0x38] sm:$0xf0]  ;;  %v1952_v24 = vld [vmem:[%s2477_s15 + $0x10] sm:$0xf]  ;;  %v2074_v25 = vld [vmem:[%s2477_s15 + $0x14] sm:$0xf0] }
  0x28   : > { %2011 = vmatmul.msk.bf16.vlgmr.msra.gmra.mxu2 %vm617_vm0, %v1957_v9  ;;  %v1973_v23 = vor.u32 %v2077_v21, %v1970_v22  ;;  %v1953_v26 = vor.u32 %v2074_v25, %v1952_v24  ;;  %v1960_v28 = vld [vmem:[%s2477_s15 + $0x20] sm:$0xf]  ;;  %v2076_v29 = vld [vmem:[%s2477_s15 + $0x24] sm:$0xf0]  ;;  %v1968_v31 = vld [vmem:[%s2477_s15 + $0x30] sm:$0xf] }
  0x29   : > { %632 = vmatpush.bf16.msra.mxu0 %v2084_v3  ;;  %v1961_v30 = vor.u32 %v2076_v29, %v1960_v28  ;;  %v2078_v32 = vld [vmem:[%s2477_s15 + $0x34] sm:$0xf0]  ;;  %v2153_v37 = vld [vmem:[%s3249_s2] ss:$0 sm:$0xff]  ;;  %v2330_v8 = vmov 0.0   ;;  %s3254_s8 = sld [smem:[#allocation20_spill]] }
  0x2a   : > { %2013 = vmatmul.msk.bf16.vlgmr.msra.gmra.mxu3 %vm617_vm0, %v1973_v23  ;;  %v1969_v33 = vor.u32 %v2078_v32, %v1968_v31  ;;  %732 = vmatpush.bf16.msrb.mxu2 %v2088_v34  ;;  %830 = vst.msk [vmem:[#allocation2 + $0x10] sm:$0xff] %vm826_vm2, %v2330_v8  ;;  %v2567_v9 = vld [vmem:[%s3250_s4] ss:$0 sm:$0xff]  ;;  %s3068_s22 = scalar_lea.vmem [#allocation7], %s2825_s25  ;;  %s1718_s25 = sand.u32 1, %s2429_s17  }
  0x2b   : > { %831 = vst.msk [vmem:[#allocation2 + $0x18] sm:$0x3] %vm828_vm3, %v2330_v8  ;;  %v877_v18 = vld [vmem:[%s3251_s5] sm:$0x7]  ;;  %s2096_s20 = sshll.u32 %s2429_s17, 6  ;;  %s1758_s0 = sshll.u32 %s3048_s28, 4  ;;  %s1759_s0 = int_to_ptr.vmem [resolvable:$true] %s1758_s0 }
  0x2c   : > { %827 = vst.msk [vmem:[#allocation2] sm:$0xff] %vm826_vm2, %v2330_v8  ;;  %v2584_v22 = vperm.slane %v877_v18, 1  ;;  %v2586_v27 = vperm.slane %v877_v18, 2  ;;  %s1757_s21 = scalar_lea.hbm %s3226_s12, %s2096_s20  ;;  %s3116_s2 = scalar_lea.sflag [#allocation6], %s1718_s25 }
  0x2d   : > { %633 = vmatpush.bf16.msra.mxu0 %v2083_v10  ;;  %829 = vst.msk [vmem:[#allocation2 + $0x8] sm:$0x3] %vm828_vm3, %v2330_v8  ;;  %s1760_s1 = sshll.u32 %s1757_s21, 4  ;;  %s2226_s17 = scalar_lea.hbm %s3226_s12, 128  ;;  %s1761_s1 = int_to_ptr.hbm [resolvable:$true] %s1760_s1 }
  0x2e   : > { %832 = vst.msk [vmem:[#allocation2 + $0x20] sm:$0xff] %vm826_vm2, %v2330_v8  ;;  %s2220_s3 = sshra.s32 %s1761_s1, 4  ;;  %s2221_s3 = int_to_ptr.hbm [resolvable:$true] %s2220_s3 }
  0x2f   : > { %833 = vst.msk [vmem:[#allocation2 + $0x28] sm:$0x3] %vm828_vm3, %v2330_v8  ;;  %s2222_s4 = scalar_lea.hbm %s2221_s3, 64  ;;  %p2227_p0 = scmp.lt.s32.totalorder %s2221_s3, %s3226_s12 }
  0x30   : > { %834 = vst.msk [vmem:[#allocation2 + $0x30] sm:$0xff] %vm826_vm2, %v2330_v8  ;;  %p2223_p11 = scmp.ne.s32.totalorder %s2221_s3, %s2222_s4  ;;  %p2228_p1 = scmp.lt.s32.totalorder %s2226_s17, %s2222_s4 }
  0x31   : > { %634 = vmatpush.bf16.msra.mxu0 %v2082_v11  ;;  %835 = vst.msk [vmem:[#allocation2 + $0x38] sm:$0x3] %vm828_vm3, %v2330_v8 }
  0x32   : > { %836 = vst.msk [vmem:[#allocation2 + $0x40] sm:$0xff] %vm826_vm2, %v2330_v8  ;;  %p2224_p12 = pnand %p2223_p11, %p2448_p5  ;;  %p2229_p2 = por %p2228_p1, %p2227_p0 }
  0x33   : > { %837 = vst.msk [vmem:[#allocation2 + $0x48] sm:$0x3] %vm828_vm3, %v2330_v8  ;;  %v857_v23 = vld [vmem:[#allocation2] sm:$0xff] }
  0x34   : > { %838 = vst.msk [vmem:[#allocation2 + $0x50] sm:$0xff] %vm826_vm2, %v2330_v8  ;;  %v858_v24 = vld [vmem:[#allocation2 + $0x8] sm:$0x3]  ;;  %p2225_p13 = pneg %p2224_p12 }
  0x35   : > { %635 = vmatpush.bf16.msra.mxu0 %v2081_v12  ;;  %839 = vst.msk [vmem:[#allocation2 + $0x58] sm:$0x3] %vm828_vm3, %v2330_v8  ;;  %v899_v31 = vmul.f32 %v2584_v22, %v858_v24 }
  0x36   : > { %840 = vst.msk [vmem:[#allocation2 + $0x60] sm:$0xff] %vm826_vm2, %v2330_v8  ;;  %p2230_p3 = pnand %p2229_p2, %p2225_p13 }
  0x37   : > { %841 = vst.msk [vmem:[#allocation2 + $0x68] sm:$0x3] %vm828_vm3, %v2330_v8 }
  0x38   : > { %2012 = vmatmul.msk.bf16.gmra.mxu2 %vm617_vm0, %v1965_v16  ;;  %842 = vst.msk [vmem:[#allocation2 + $0x70] sm:$0xff] %vm826_vm2, %v2330_v8 }
  0x39   : > { %636 = vmatpush.bf16.msra.mxu0 %v2080_v15  ;;  %843 = vst.msk [vmem:[#allocation2 + $0x78] sm:$0x3] %vm828_vm3, %v2330_v8 }
  0x3a   : > { %844 = vst.msk [vmem:[#allocation2 + $0x80] sm:$0xff] %vm826_vm2, %v2330_v8 }
  0x3b   : > { %845 = vst.msk [vmem:[#allocation2 + $0x88] sm:$0x3] %vm828_vm3, %v2330_v8 }
  0x3c   : > { %846 = vst.msk [vmem:[#allocation2 + $0x90] sm:$0xff] %vm826_vm2, %v2330_v8 }
  0x3d   : > { %637 = vmatpush.bf16.msra.mxu0 %v2079_v17  ;;  %847 = vst.msk [vmem:[#allocation2 + $0x98] sm:$0x3] %vm828_vm3, %v2330_v8 }
  0x40   : > { %638 = vmatmul.bf16.vlgmr.msra.gmra.mxu0 %v1945_v20 }
  0x50   : > { %643 = vmatmul.bf16.gmra.mxu0 %v1953_v26 }
  0x60   : > { %648 = vmatmul.bf16.gmra.mxu0 %v1961_v30  ;;  %v898_v30 = vmul.f32 %v2584_v22, %v857_v23 }
  0x70   : > { %653 = vmatmul.bf16.gmra.mxu0 %v1969_v33 }
  0xa4   : > { %v668_v35 = vpop.f32.mrf.mxu1 }
  0xab   : > { %v673_v44 = vpop.f32.mrf.mxu2 }
  0xac   : > { %v670_v41 = vpop.f32.mrf.mxu1 }
  0xad   : > { %v683_v63 = vpop.f32.mrf.mxu3 }
  0xb3   : > { %v675_v47 = vpop.f32.mrf.mxu2 }
  0xb5   : > { %v685_v4 = vpop.f32.mrf.mxu3 }
  0xbb   : > { %v678_v54 = vpop.f32.mrf.mxu2 }
  0xbd   : > { %v639_v36 = vpop.f32.mrf.mxu0 }
  0xbe   : > { %v640_v38 = vadd.f32 %v2153_v37, %v639_v36  ;;  %v2595_v36 = vperm.slane %v877_v18, 0 }
  0xc0   : > { %v2526_v42 = vadd.f32 %v668_v35, %v640_v38  ;;  %v973_v38 = vmul.f32 %v2586_v27, %v858_v24 }
  0xc3   : > { %v680_v59 = vpop.f32.mrf.mxu2 }
  0xc5   : > { %v641_v39 = vpop.f32.mrf.mxu0 }
  0xc6   : > { %v642_v40 = vadd.f32 %v2153_v37, %v641_v39 }
  0xc8   : > { %v2528_v43 = vadd.f32 %v670_v41, %v642_v40  ;;  %v931_v40 = vrot.slane %v898_v30, 1  ;;  %v932_v41 = vrot.slane %v899_v31, 1 }
  0xca   : > { %v688_v45 = vpack.c.bf16 %v2528_v43, %v2526_v42 }
  0xcc   : > { %2022 = vmatmul.msk.bf16.vlgmr.msrb.gmra.mxu2 %vm712_vm1, %v688_v45 }
  0xcd   : > { %v644_v46 = vpop.f32.mrf.mxu0 }
  0xce   : > { %v645_v48 = vadd.f32 %v2153_v37, %v644_v46 }
  0xd0   : > { %v2533_v51 = vadd.f32 %v673_v44, %v645_v48  ;;  %v881_v48 = vmul.f32 %v2595_v36, %v857_v23 }
  0xd5   : > { %v646_v49 = vpop.f32.mrf.mxu0 }
  0xd6   : > { %v647_v50 = vadd.f32 %v2153_v37, %v646_v49 }
  0xd8   : > { %v2535_v52 = vadd.f32 %v675_v47, %v647_v50 }
  0xda   : > { %v689_v53 = vpack.c.bf16 %v2535_v52, %v2533_v51 }
  0xdc   : > { %2023 = vmatmul.msk.bf16.gmra.mxu2 %vm712_vm1, %v689_v53 }
  0xdd   : > { %v649_v55 = vpop.f32.mrf.mxu0 }
  0xde   : > { %v650_v56 = vadd.f32 %v2153_v37, %v649_v55  ;;  %v1006_v55 = vrot.slane %v973_v38, 2 }
  0xe0   : > { %v2540_v60 = vadd.f32 %v678_v54, %v650_v56  ;;  %v933_v54 = vsel %vm930_vm4, %v931_v40, %v932_v41 }
  0xe5   : > { %v651_v57 = vpop.f32.mrf.mxu0 }
  0xe6   : > { %v652_v58 = vadd.f32 %v2153_v37, %v651_v57 }
  0xe8   : > { %v2542_v61 = vadd.f32 %v680_v59, %v652_v58 }
  0xea   : > { %v690_v62 = vpack.c.bf16 %v2542_v61, %v2540_v60 }
  0xec   : > { %2024 = vmatmul.msk.bf16.gmra.mxu2 %vm712_vm1, %v690_v62  ;;  %v878_v62 = vld [vmem:[%s3251_s5 + $0x4] sm:$0x7] }
  0xed   : > { %v654_v0 = vpop.f32.mrf.mxu0  ;;  %v2619_v8 = vperm.slane %v878_v62, 1 }
  0xee   : > { %v655_v1 = vadd.f32 %v2153_v37, %v654_v0 }
  0xf0   : > { %v2547_v5 = vadd.f32 %v683_v63, %v655_v1  ;;  %v963_v63 = vadd.f32 %v933_v54, %v881_v48  ;;  %v879_v1 = vld [vmem:[%s3251_s5 + $0x8] sm:$0x7] }
  0xf5   : > { %v656_v2 = vpop.f32.mrf.mxu0 }
  0xf6   : > { %v657_v3 = vadd.f32 %v2153_v37, %v656_v2  ;;  %v972_v37 = vmul.f32 %v2586_v27, %v857_v23 }
  0xf8   : > { %v2549_v6 = vadd.f32 %v685_v4, %v657_v3  ;;  %v1005_v49 = vrot.slane %v972_v37, 2 }
  0xfa   : > { %v691_v7 = vpack.c.bf16 %v2549_v6, %v2547_v5  ;;  %v1007_v2 = vsel %vm1004_vm5, %v1005_v49, %v1006_v55 }
  0xfc   : > { %2025 = vmatmul.msk.bf16.gmra.mxu2 %vm712_vm1, %v691_v7  ;;  %v2617_v7 = vperm.slane %v878_v62, 0 }
 0x14f   : > { %v734_v10 = vpop.f32.mrf.mxu2 }
 0x150   : > { %v735_v11 = vadd.f32 %v2567_v9, %v734_v10 }
 0x152   : > { %v754_v12 = vmul.f32 %v735_v11, %v735_v11 }
 0x154   : > { %v762_v13 = vmul.f32 %v754_v12, %v735_v11  ;;  %v1037_v12 = vadd.f32 %v1007_v2, %v963_v63 }
 0x156   : > { %v770_v14 = vmul.f32 0.044715, %v762_v13  ;;  %v2621_v13 = vperm.slane %v878_v62, 2 }
 0x157   : > { %v736_v15 = vpop.f32.mrf.mxu2 }
 0x158   : > { %v778_v16 = vadd.f32 %v770_v14, %v735_v11  ;;  %v737_v17 = vadd.f32 %v2567_v9, %v736_v15  ;;  %v2623_v14 = vperm.slane %v879_v1, 0 }
 0x15a   : > { %v786_v19 = vmul.f32 0.7978846, %v778_v16  ;;  %v755_v20 = vmul.f32 %v737_v17, %v737_v17 }
 0x15c   : > { %2158 = vtanh.f32 %v786_v19  ;;  %v763_v21 = vmul.f32 %v755_v20, %v737_v17  ;;  %v2629_v20 = vperm.slane %v879_v1, 1 }
 0x15e   : > { %v771_v25 = vmul.f32 0.044715, %v763_v21  ;;  %v2631_v21 = vperm.slane %v879_v1, 2 }
 0x15f   : > { %v739_v26 = vpop.f32.mrf.mxu2 }
 0x160   : > { %v779_v28 = vadd.f32 %v771_v25, %v737_v17  ;;  %v2589_v29 = vadd.f32 %v2567_v9, %v739_v26 }
 0x162   : > { %v2159_v32 = vpop.eup %2158  ;;  %v787_v33 = vmul.f32 0.7978846, %v779_v28  ;;  %v756_v34 = vmul.f32 %v2589_v29, %v2589_v29 }
 0x163   : > { %v802_v35 = vadd.f32 1.0, %v2159_v32 }
 0x164   : > { %2160 = vtanh.f32 %v787_v33  ;;  %v764_v39 = vmul.f32 %v756_v34, %v2589_v29 }
 0x165   : > { %v810_v44 = vmul.f32 0.5, %v802_v35 }
 0x166   : > { %v772_v45 = vmul.f32 0.044715, %v764_v39  ;;  %v2093_v39 = vld [vmem:[%s3252_s7 + $0x18] sm:$0xff] }
 0x167   : > { %v818_v46 = vmul.f32 %v810_v44, %v735_v11  ;;  %v741_v47 = vpop.f32.mrf.mxu2  ;;  %1519 = vmatpush.bf16.msrb.mxu3 %v2093_v39 }
 0x168   : > { %v780_v50 = vadd.f32 %v772_v45, %v2589_v29  ;;  %v2603_v53 = vadd.f32 %v2567_v9, %v741_v47 }
 0x169   : > { %849 = vst.msk [vmem:[#allocation2 + $0x11] sm:$0xff] %vm826_vm2, %v818_v46 }
 0x16a   : > { %v2161_v56 = vpop.eup %2160  ;;  %v788_v57 = vmul.f32 0.7978846, %v780_v50  ;;  %v757_v58 = vmul.f32 %v2603_v53, %v2603_v53 }
 0x16b   : > { %v803_v59 = vadd.f32 1.0, %v2161_v56 }
 0x16c   : > { %2162 = vtanh.f32 %v788_v57  ;;  %v765_v0 = vmul.f32 %v757_v58, %v2603_v53 }
 0x16d   : > { %v811_v3 = vmul.f32 0.5, %v803_v59 }
 0x16e   : > { %v773_v4 = vmul.f32 0.044715, %v765_v0  ;;  %v2092_v0 = vld [vmem:[%s3252_s7 + $0x10] sm:$0xff] }
 0x16f   : > { %v819_v10 = vmul.f32 %v811_v3, %v737_v17  ;;  %v744_v11 = vpop.f32.mrf.mxu2  ;;  %1520 = vmatpush.bf16.msrb.mxu3 %v2092_v0 }
 0x170   : > { %v781_v15 = vadd.f32 %v773_v4, %v2603_v53  ;;  %v2627_v16 = vadd.f32 %v2567_v9, %v744_v11  ;;  %v859_v18 = vld [vmem:[#allocation2 + $0x10] sm:$0xff]  ;;  %v860_v19 = vld [vmem:[#allocation2 + $0x18] sm:$0x3] }
 0x171   : > { %850 = vst.msk [vmem:[#allocation2 + $0x21] sm:$0xff] %vm826_vm2, %v819_v10  ;;  %v882_v17 = vmul.f32 %v2595_v36, %v859_v18  ;;  %v900_v23 = vmul.f32 %v2584_v22, %v859_v18  ;;  %v901_v24 = vmul.f32 %v2584_v22, %v860_v19  ;;  %v974_v25 = vmul.f32 %v2586_v27, %v859_v18 }
 0x172   : > { %v2163_v26 = vpop.eup %2162  ;;  %v789_v28 = vmul.f32 0.7978846, %v781_v15  ;;  %v758_v30 = vmul.f32 %v2627_v16, %v2627_v16  ;;  %v975_v31 = vmul.f32 %v2586_v27, %v860_v19  ;;  %v1046_v32 = vmul.f32 %v2617_v7, %v859_v18 }
 0x173   : > { %v804_v33 = vadd.f32 1.0, %v2163_v26  ;;  %v934_v34 = vrot.slane %v900_v23, 1  ;;  %v935_v35 = vrot.slane %v901_v24, 1  ;;  %v1008_v37 = vrot.slane %v974_v25, 2 }
 0x174   : > { %2164 = vtanh.f32 %v789_v28  ;;  %v766_v38 = vmul.f32 %v758_v30, %v2627_v16  ;;  %v1009_v40 = vrot.slane %v975_v31, 2  ;;  %v1054_v41 = vadd.f32 %v1046_v32, %v1037_v12  ;;  %v2091_v31 = vld [vmem:[%s3252_s7 + $0x8] sm:$0xff] }
 0x175   : > { %v812_v44 = vmul.f32 0.5, %v804_v33  ;;  %v936_v45 = vsel %vm930_vm4, %v934_v34, %v935_v35  ;;  %v1063_v46 = vmul.f32 %v2619_v8, %v859_v18  ;;  %v1064_v47 = vmul.f32 %v2619_v8, %v860_v19  ;;  %1521 = vmatpush.bf16.msrb.mxu3 %v2091_v31 }
 0x176   : > { %v774_v48 = vmul.f32 0.044715, %v766_v38  ;;  %v964_v49 = vadd.f32 %v936_v45, %v882_v17  ;;  %v1010_v50 = vsel %vm1004_vm5, %v1008_v37, %v1009_v40  ;;  %v1136_v54 = vmul.f32 %v2621_v13, %v859_v18 }
 0x177   : > { %v820_v55 = vmul.f32 %v812_v44, %v2589_v29  ;;  %v746_v56 = vpop.f32.mrf.mxu2  ;;  %v1095_v57 = vrot.slane %v1063_v46, 1  ;;  %v1096_v58 = vrot.slane %v1064_v47, 1  ;;  %v1137_v59 = vmul.f32 %v2621_v13, %v860_v19 }
 0x178   : > { %v782_v62 = vadd.f32 %v774_v48, %v2627_v16  ;;  %v2655_v63 = vadd.f32 %v2567_v9, %v746_v56  ;;  %v2660_v1 = vld [vmem:[#allocation2 + $0x20] sm:$0xff]  ;;  %v2662_v2 = vld [vmem:[#allocation2 + $0x28] sm:$0x3]  ;;  %v1038_v3 = vadd.f32 %v1010_v50, %v964_v49  ;;  %v1168_v29 = vrot.slane %v1136_v54, 2 }
 0x179   : > { %851 = vst.msk [vmem:[#allocation2 + $0x31] sm:$0xff] %vm826_vm2, %v820_v55  ;;  %v1047_v4 = vmul.f32 %v2617_v7, %v2660_v1  ;;  %v1065_v10 = vmul.f32 %v2619_v8, %v2660_v1  ;;  %v1066_v11 = vmul.f32 %v2619_v8, %v2662_v2  ;;  %v1097_v12 = vsel %vm930_vm4, %v1095_v57, %v1096_v58  ;;  %v2090_v55 = vld [vmem:[%s3252_s7] sm:$0xff] }
 0x17a   : > { %v2165_v15 = vpop.eup %2164  ;;  %v790_v18 = vmul.f32 0.7978846, %v782_v62  ;;  %v759_v19 = vmul.f32 %v2655_v63, %v2655_v63  ;;  %v1127_v17 = vadd.f32 %v1097_v12, %v1054_v41  ;;  %v1138_v23 = vmul.f32 %v2621_v13, %v2660_v1  ;;  %1522 = vmatpush.bf16.msrb.mxu3 %v2090_v55 }
 0x17b   : > { %v805_v24 = vadd.f32 1.0, %v2165_v15  ;;  %v1055_v25 = vadd.f32 %v1047_v4, %v1038_v3  ;;  %v1098_v26 = vrot.slane %v1065_v10, 1  ;;  %v1099_v28 = vrot.slane %v1066_v11, 1 }
 0x17c   : > { %2166 = vtanh.f32 %v790_v18  ;;  %v767_v30 = vmul.f32 %v759_v19, %v2655_v63  ;;  %v1139_v32 = vmul.f32 %v2621_v13, %v2662_v2  ;;  %v1169_v33 = vrot.slane %v1137_v59, 2 }
 0x17d   : > { %v813_v34 = vmul.f32 0.5, %v805_v24  ;;  %v1100_v35 = vsel %vm930_vm4, %v1098_v26, %v1099_v28  ;;  %v1171_v37 = vrot.slane %v1138_v23, 2  ;;  %v1209_v38 = vmul.f32 %v2623_v14, %v2660_v1 }
 0x17e   : > { %v775_v39 = vmul.f32 0.044715, %v767_v30  ;;  %v1128_v40 = vadd.f32 %v1100_v35, %v1055_v25  ;;  %v1170_v41 = vsel %vm1004_vm5, %v1168_v29, %v1169_v33  ;;  %v1172_v44 = vrot.slane %v1139_v32, 2 }
 0x17f   : > { %v821_v45 = vmul.f32 %v813_v34, %v2603_v53  ;;  %v749_v46 = vpop.f32.mrf.mxu2  ;;  %v1200_v47 = vadd.f32 %v1170_v41, %v1127_v17  ;;  %v1226_v48 = vmul.f32 %v2629_v20, %v2660_v1  ;;  %v1227_v49 = vmul.f32 %v2629_v20, %v2662_v2 }
 0x180   : > { %v783_v50 = vadd.f32 %v775_v39, %v2655_v63  ;;  %v2693_v54 = vadd.f32 %v2567_v9, %v749_v46  ;;  %v2698_v56 = vld [vmem:[#allocation2 + $0x30] sm:$0xff]  ;;  %v2700_v53 = vld [vmem:[#allocation2 + $0x38] sm:$0x3]  ;;  %v1173_v57 = vsel %vm1004_vm5, %v1171_v37, %v1172_v44  ;;  %v1299_v58 = vmul.f32 %v2631_v21, %v2660_v1 }
 0x181   : > { %852 = vst.msk [vmem:[#allocation2 + $0x41] sm:$0xff] %vm826_vm2, %v821_v45  ;;  %v1201_v59 = vadd.f32 %v1173_v57, %v1128_v40  ;;  %v1210_v62 = vmul.f32 %v2623_v14, %v2698_v56  ;;  %v1217_v0 = vadd.f32 %v1209_v38, %v1200_v47  ;;  %v1228_v3 = vmul.f32 %v2629_v20, %v2698_v56  ;;  %v2731_v47 = vld [vmem:[%s3253_s6] ss:$0 sm:$0xff] }
 0x182   : > { %v2167_v29 = vpop.eup %2166  ;;  %v791_v4 = vmul.f32 0.7978846, %v783_v50  ;;  %v760_v10 = vmul.f32 %v2693_v54, %v2693_v54  ;;  %v1229_v11 = vmul.f32 %v2629_v20, %v2700_v53  ;;  %v1258_v12 = vrot.slane %v1226_v48, 1 }
 0x183   : > { %v806_v15 = vadd.f32 1.0, %v2167_v29  ;;  %v1218_v18 = vadd.f32 %v1210_v62, %v1201_v59  ;;  %v1259_v19 = vrot.slane %v1227_v49, 1  ;;  %v1261_v17 = vrot.slane %v1228_v3, 1 }
 0x184   : > { %2168 = vtanh.f32 %v791_v4  ;;  %v768_v23 = vmul.f32 %v760_v10, %v2693_v54  ;;  %v1262_v24 = vrot.slane %v1229_v11, 1  ;;  %v1300_v25 = vmul.f32 %v2631_v21, %v2662_v2 }
 0x185   : > { %v814_v26 = vmul.f32 0.5, %v806_v15  ;;  %v1260_v28 = vsel %vm930_vm4, %v1258_v12, %v1259_v19  ;;  %v1301_v30 = vmul.f32 %v2631_v21, %v2698_v56  ;;  %v1302_v31 = vmul.f32 %v2631_v21, %v2700_v53 }
 0x186   : > { %v776_v32 = vmul.f32 0.044715, %v768_v23  ;;  %v1263_v33 = vsel %vm930_vm4, %v1261_v17, %v1262_v24  ;;  %v1290_v34 = vadd.f32 %v1260_v28, %v1217_v0  ;;  %v1331_v35 = vrot.slane %v1299_v58, 2 }
 0x187   : > { %v822_v37 = vmul.f32 %v814_v26, %v2627_v16  ;;  %v751_v38 = vpop.f32.mrf.mxu2  ;;  %v1291_v39 = vadd.f32 %v1263_v33, %v1218_v18  ;;  %v1332_v40 = vrot.slane %v1300_v25, 2  ;;  %v1334_v41 = vrot.slane %v1301_v30, 2 }
 0x188   : > { %v784_v44 = vadd.f32 %v776_v32, %v2693_v54  ;;  %v2726_v45 = vadd.f32 %v2567_v9, %v751_v38  ;;  %v1335_v46 = vrot.slane %v1302_v31, 2  ;;  %v883_v48 = vmul.f32 %v2595_v36, %v2660_v1 }
 0x189   : > { %853 = vst.msk [vmem:[#allocation2 + $0x51] sm:$0xff] %vm826_vm2, %v822_v37  ;;  %v1333_v16 = vsel %vm1004_vm5, %v1331_v35, %v1332_v40  ;;  %v884_v49 = vmul.f32 %v2595_v36, %v2698_v56  ;;  %v902_v9 = vmul.f32 %v2584_v22, %v2660_v1  ;;  %v903_v50 = vmul.f32 %v2584_v22, %v2662_v2 }
 0x18a   : > { %v2169_v55 = vpop.eup %2168  ;;  %v792_v57 = vmul.f32 0.7978846, %v784_v44  ;;  %v761_v58 = vmul.f32 %v2726_v45, %v2726_v45  ;;  %v1336_v59 = vsel %vm1004_vm5, %v1334_v41, %v1335_v46  ;;  %v1363_v62 = vadd.f32 %v1333_v16, %v1290_v34 }
 0x18b   : > { %v807_v0 = vadd.f32 1.0, %v2169_v55  ;;  %v1364_v3 = vadd.f32 %v1336_v59, %v1291_v39  ;;  %v904_v29 = vmul.f32 %v2584_v22, %v2698_v56  ;;  %v905_v4 = vmul.f32 %v2584_v22, %v2700_v53 }
 0x18c   : > { %2170 = vtanh.f32 %v792_v57  ;;  %v769_v10 = vmul.f32 %v761_v58, %v2726_v45  ;;  %v2752_v11 = vadd.f32 %v2731_v47, %v1363_v62  ;;  %v937_v12 = vrot.slane %v902_v9, 1 }
 0x18d   : > { %v815_v15 = vmul.f32 0.5, %v807_v0  ;;  %v2755_v18 = vadd.f32 %v2731_v47, %v1364_v3  ;;  %v938_v19 = vrot.slane %v903_v50, 1  ;;  %v940_v17 = vrot.slane %v904_v29, 1  ;;  %v2776_v50 = vld [vmem:[#allocation2 + $0x40] sm:$0xff]  ;;  %v2783_v0 = vld [vmem:[#allocation2 + $0x48] sm:$0x3] }
 0x18e   : > { %v777_v23 = vmul.f32 0.044715, %v769_v10  ;;  %v1383_v24 = vmul.f32 %v2752_v11, %v2752_v11  ;;  %v941_v25 = vrot.slane %v905_v4, 1  ;;  %v976_v26 = vmul.f32 %v2586_v27, %v2660_v1 }
 0x18f   : > { %v823_v28 = vmul.f32 %v815_v15, %v2655_v63  ;;  %v1384_v30 = vmul.f32 %v2755_v18, %v2755_v18  ;;  %v939_v31 = vsel %vm930_vm4, %v937_v12, %v938_v19  ;;  %v977_v32 = vmul.f32 %v2586_v27, %v2662_v2 }
 0x190   : > { %v785_v33 = vadd.f32 %v777_v23, %v2726_v45  ;;  %v1391_v34 = vmul.f32 %v1383_v24, %v2752_v11  ;;  %v942_v35 = vsel %vm930_vm4, %v940_v17, %v941_v25  ;;  %v965_v37 = vadd.f32 %v939_v31, %v883_v48 }
 0x191   : > { %854 = vst.msk [vmem:[#allocation2 + $0x61] sm:$0xff] %vm826_vm2, %v823_v28  ;;  %v1392_v1 = vmul.f32 %v1384_v30, %v2755_v18  ;;  %v966_v63 = vadd.f32 %v942_v35, %v884_v49  ;;  %v978_v38 = vmul.f32 %v2586_v27, %v2698_v56  ;;  %v979_v39 = vmul.f32 %v2586_v27, %v2700_v53 }
 0x192   : > { %v2171_v40 = vpop.eup %2170  ;;  %v793_v2 = vmul.f32 0.7978846, %v785_v33  ;;  %v1399_v41 = vmul.f32 0.044715, %v1391_v34  ;;  %v1011_v44 = vrot.slane %v976_v26, 2  ;;  %v1012_v46 = vrot.slane %v977_v32, 2 }
 0x193   : > { %v808_v16 = vadd.f32 1.0, %v2171_v40  ;;  %v1400_v9 = vmul.f32 0.044715, %v1392_v1  ;;  %v1014_v48 = vrot.slane %v978_v38, 2  ;;  %v1015_v55 = vrot.slane %v979_v39, 2 }
 0x194   : > { %2172 = vtanh.f32 %v793_v2  ;;  %v1407_v49 = vadd.f32 %v1399_v41, %v2752_v11  ;;  %v1013_v57 = vsel %vm1004_vm5, %v1011_v44, %v1012_v46  ;;  %v1048_v58 = vmul.f32 %v2617_v7, %v2698_v56  ;;  %v2811_v46 = vld [vmem:[#allocation2 + $0x58] sm:$0x3] }
 0x195   : > { %v816_v59 = vmul.f32 0.5, %v808_v16  ;;  %v1408_v62 = vadd.f32 %v1400_v9, %v2755_v18  ;;  %v1016_v3 = vsel %vm1004_vm5, %v1014_v48, %v1015_v55  ;;  %v1039_v29 = vadd.f32 %v1013_v57, %v965_v37 }
 0x196   : > { %v1415_v4 = vmul.f32 0.7978846, %v1407_v49  ;;  %v1040_v10 = vadd.f32 %v1016_v3, %v966_v63  ;;  %v1049_v12 = vmul.f32 %v2617_v7, %v2776_v50  ;;  %v1067_v15 = vmul.f32 %v2619_v8, %v2698_v56  ;;  %v2804_v63 = vld [vmem:[#allocation2 + $0x50] sm:$0xff] }
 0x197   : > { %v824_v19 = vmul.f32 %v816_v59, %v2693_v54  ;;  %v1416_v17 = vmul.f32 0.7978846, %v1408_v62  ;;  %v1056_v23 = vadd.f32 %v1048_v58, %v1039_v29  ;;  %v1068_v24 = vmul.f32 %v2619_v8, %v2700_v53 }
 0x198   : > { %2174 = vtanh.f32 %v1415_v4  ;;  %v1057_v25 = vadd.f32 %v1049_v12, %v1040_v10  ;;  %v1069_v26 = vmul.f32 %v2619_v8, %v2776_v50  ;;  %v1070_v28 = vmul.f32 %v2619_v8, %v2783_v0 }
 0x199   : > { %855 = vst.msk [vmem:[#allocation2 + $0x71] sm:$0xff] %vm826_vm2, %v824_v19  ;;  %2176 = vtanh.f32 %v1416_v17  ;;  %v1101_v30 = vrot.slane %v1067_v15, 1  ;;  %v1102_v31 = vrot.slane %v1068_v24, 1  ;;  %v1140_v54 = vmul.f32 %v2621_v13, %v2698_v56 }
 0x19a   : > { %v2173_v32 = vpop.eup %2172  ;;  %v1104_v33 = vrot.slane %v1069_v26, 1  ;;  %v1105_v34 = vrot.slane %v1070_v28, 1  ;;  %v1141_v35 = vmul.f32 %v2621_v13, %v2700_v53  ;;  %v1142_v37 = vmul.f32 %v2621_v13, %v2776_v50 }
 0x19b   : > { %v809_v1 = vadd.f32 1.0, %v2173_v32  ;;  %v1103_v38 = vsel %vm930_vm4, %v1101_v30, %v1102_v31  ;;  %v1143_v39 = vmul.f32 %v2621_v13, %v2783_v0  ;;  %v1174_v40 = vrot.slane %v1140_v54, 2 }
 0x19c   : > { %v1106_v56 = vsel %vm930_vm4, %v1104_v33, %v1105_v34  ;;  %v1129_v2 = vadd.f32 %v1103_v38, %v1056_v23  ;;  %v1175_v41 = vrot.slane %v1141_v35, 2  ;;  %v1177_v44 = vrot.slane %v1142_v37, 2 }
 0x19d   : > { %v817_v53 = vmul.f32 0.5, %v809_v1  ;;  %v1130_v16 = vadd.f32 %v1106_v56, %v1057_v25  ;;  %v1178_v9 = vrot.slane %v1143_v39, 2  ;;  %v1211_v48 = vmul.f32 %v2623_v14, %v2776_v50 }
 0x19e   : > { %v2175_v55 = vpop.eup %2174  ;;  %v1176_v49 = vsel %vm1004_vm5, %v1174_v40, %v1175_v41  ;;  %v1212_v57 = vmul.f32 %v2623_v14, %v2804_v63  ;;  %v1230_v58 = vmul.f32 %v2629_v20, %v2776_v50  ;;  %v1231_v59 = vmul.f32 %v2629_v20, %v2783_v0 }
 0x19f   : > { %v2177_v62 = vpop.eup %2176  ;;  %v825_v3 = vmul.f32 %v817_v53, %v2726_v45  ;;  %v1431_v29 = vadd.f32 1.0, %v2175_v55  ;;  %v1179_v4 = vsel %vm1004_vm5, %v1177_v44, %v1178_v9  ;;  %v1202_v10 = vadd.f32 %v1176_v49, %v1129_v2 }
 0x1a0   : > { %v1432_v12 = vadd.f32 1.0, %v2177_v62  ;;  %v1203_v15 = vadd.f32 %v1179_v4, %v1130_v16  ;;  %v1232_v19 = vmul.f32 %v2629_v20, %v2804_v63  ;;  %v1233_v17 = vmul.f32 %v2629_v20, %v2811_v46 }
 0x1a1   : > { %856 = vst.msk [vmem:[#allocation2 + $0x81] sm:$0xff] %vm826_vm2, %v825_v3  ;;  %v1439_v23 = vmul.f32 0.5, %v1431_v29  ;;  %v1219_v45 = vadd.f32 %v1211_v48, %v1202_v10  ;;  %v1264_v24 = vrot.slane %v1230_v58, 1  ;;  %v1265_v25 = vrot.slane %v1231_v59, 1 }
 0x1a2   : > { %v1440_v26 = vmul.f32 0.5, %v1432_v12  ;;  %v1220_v28 = vadd.f32 %v1212_v57, %v1203_v15  ;;  %v1267_v30 = vrot.slane %v1232_v19, 1  ;;  %v1268_v31 = vrot.slane %v1233_v17, 1  ;;  %v2874_v19 = vld [vmem:[#allocation2 + $0x60] sm:$0xff] }
 0x1a3   : > { %v1447_v54 = vmul.f32 %v1439_v23, %v2752_v11  ;;  %v1266_v32 = vsel %vm930_vm4, %v1264_v24, %v1265_v25  ;;  %v1303_v33 = vmul.f32 %v2631_v21, %v2776_v50  ;;  %v1304_v34 = vmul.f32 %v2631_v21, %v2783_v0 }
 0x1a4   : > { %v1448_v35 = vmul.f32 %v1440_v26, %v2755_v18  ;;  %v1269_v37 = vsel %vm930_vm4, %v1267_v30, %v1268_v31  ;;  %v1292_v1 = vadd.f32 %v1266_v32, %v1219_v45  ;;  %v1305_v38 = vmul.f32 %v2631_v21, %v2804_v63 }
 0x1a5   : > { %1455 = vst.msk [vmem:[%s2844_s26] sm:$0xff] %vm826_vm2, %v1447_v54  ;;  %v1293_v11 = vadd.f32 %v1269_v37, %v1220_v28  ;;  %v1306_v39 = vmul.f32 %v2631_v21, %v2811_v46  ;;  %v1337_v40 = vrot.slane %v1303_v33, 2  ;;  %v1338_v56 = vrot.slane %v1304_v34, 2  ;;  %v2890_v34 = vld [vmem:[#allocation2 + $0x68] sm:$0x3] }
 0x1a6   : > { %1456 = vst.msk [vmem:[%s2844_s26 + $0x8] sm:$0xff] %vm826_vm2, %v1448_v35  ;;  %v1463_v18 = vpack.c.bf16 %v1448_v35, %v1447_v54  ;;  %v1340_v2 = vrot.slane %v1305_v38, 2  ;;  %v885_v41 = vmul.f32 %v2595_v36, %v2776_v50  ;;  %v886_v44 = vmul.f32 %v2595_v36, %v2804_v63 }
 0x1a7   : > { %v1339_v53 = vsel %vm1004_vm5, %v1337_v40, %v1338_v56  ;;  %v1341_v16 = vrot.slane %v1306_v39, 2  ;;  %v906_v9 = vmul.f32 %v2584_v22, %v2776_v50  ;;  %v907_v48 = vmul.f32 %v2584_v22, %v2783_v0 }
 0x1a8   : > { %2042 = vmatmul.msk.bf16.vlgmr.msrb.gmra.mxu3 %vm826_vm2, %v1463_v18  ;;  %v1365_v55 = vadd.f32 %v1339_v53, %v1292_v1  ;;  %v908_v49 = vmul.f32 %v2584_v22, %v2804_v63  ;;  %v909_v57 = vmul.f32 %v2584_v22, %v2811_v46  ;;  %v980_v58 = vmul.f32 %v2586_v27, %v2776_v50 }
 0x1a9   : > { %v1342_v59 = vsel %vm1004_vm5, %v1340_v2, %v1341_v16  ;;  %v943_v62 = vrot.slane %v906_v9, 1  ;;  %v944_v3 = vrot.slane %v907_v48, 1  ;;  %v981_v29 = vmul.f32 %v2586_v27, %v2783_v0 }
 0x1aa   : > { %v1366_v4 = vadd.f32 %v1342_v59, %v1293_v11  ;;  %v2872_v10 = vadd.f32 %v2731_v47, %v1365_v55  ;;  %v946_v12 = vrot.slane %v908_v49, 1  ;;  %v947_v15 = vrot.slane %v909_v57, 1 }
 0x1ab   : > { %v945_v17 = vsel %vm930_vm4, %v943_v62, %v944_v3  ;;  %v982_v50 = vmul.f32 %v2586_v27, %v2804_v63  ;;  %v983_v23 = vmul.f32 %v2586_v27, %v2811_v46  ;;  %v1017_v45 = vrot.slane %v980_v58, 2 }
 0x1ac   : > { %v2882_v24 = vadd.f32 %v2731_v47, %v1366_v4  ;;  %v1385_v0 = vmul.f32 %v2872_v10, %v2872_v10  ;;  %v948_v25 = vsel %vm930_vm4, %v946_v12, %v947_v15  ;;  %v967_v26 = vadd.f32 %v945_v17, %v885_v41  ;;  %v2912_v4 = vld [vmem:[#allocation2 + $0x70] sm:$0xff] }
 0x1ad   : > { %v968_v28 = vadd.f32 %v948_v25, %v886_v44  ;;  %v1018_v30 = vrot.slane %v981_v29, 2  ;;  %v1020_v31 = vrot.slane %v982_v50, 2  ;;  %v1021_v54 = vrot.slane %v983_v23, 2 }
 0x1ae   : > { %v1386_v32 = vmul.f32 %v2882_v24, %v2882_v24  ;;  %v1393_v33 = vmul.f32 %v1385_v0, %v2872_v10  ;;  %v1050_v35 = vmul.f32 %v2617_v7, %v2804_v63  ;;  %v1051_v37 = vmul.f32 %v2617_v7, %v2874_v19 }
 0x1af   : > { %v1019_v1 = vsel %vm1004_vm5, %v1017_v45, %v1018_v30  ;;  %v1022_v38 = vsel %vm1004_vm5, %v1020_v31, %v1021_v54  ;;  %v1071_v11 = vmul.f32 %v2619_v8, %v2804_v63  ;;  %v1072_v39 = vmul.f32 %v2619_v8, %v2811_v46 }
 0x1b0   : > { %v1394_v40 = vmul.f32 %v1386_v32, %v2882_v24  ;;  %v1401_v56 = vmul.f32 0.044715, %v1393_v33  ;;  %v1041_v18 = vadd.f32 %v1019_v1, %v967_v26  ;;  %v1042_v2 = vadd.f32 %v1022_v38, %v968_v28 }
 0x1b1   : > { %v1073_v41 = vmul.f32 %v2619_v8, %v2874_v19  ;;  %v1074_v44 = vmul.f32 %v2619_v8, %v2890_v34  ;;  %v1107_v53 = vrot.slane %v1071_v11, 1  ;;  %v1108_v16 = vrot.slane %v1072_v39, 1 }
 0x1b2   : > { %v1402_v9 = vmul.f32 0.044715, %v1394_v40  ;;  %v1409_v48 = vadd.f32 %v1401_v56, %v2872_v10  ;;  %v1058_v55 = vadd.f32 %v1050_v35, %v1041_v18  ;;  %v1059_v49 = vadd.f32 %v1051_v37, %v1042_v2 }
 0x1b3   : > { %v1109_v57 = vsel %vm930_vm4, %v1107_v53, %v1108_v16  ;;  %v1110_v58 = vrot.slane %v1073_v41, 1  ;;  %v1111_v59 = vrot.slane %v1074_v44, 1  ;;  %v1144_v62 = vmul.f32 %v2621_v13, %v2804_v63  ;;  %v2921_v63 = vld [vmem:[#allocation2 + $0x78] sm:$0x3] }
 0x1b4   : > { %v1410_v3 = vadd.f32 %v1402_v9, %v2882_v24  ;;  %v1417_v29 = vmul.f32 0.7978846, %v1409_v48  ;;  %v1131_v12 = vadd.f32 %v1109_v57, %v1058_v55  ;;  %v1145_v15 = vmul.f32 %v2621_v13, %v2811_v46 }
 0x1b5   : > { %v1112_v17 = vsel %vm930_vm4, %v1110_v58, %v1111_v59  ;;  %v1146_v50 = vmul.f32 %v2621_v13, %v2874_v19  ;;  %v1147_v23 = vmul.f32 %v2621_v13, %v2890_v34  ;;  %v1180_v45 = vrot.slane %v1144_v62, 2 }
 0x1b6   : > { %v1418_v0 = vmul.f32 0.7978846, %v1410_v3  ;;  %2178 = vtanh.f32 %v1417_v29  ;;  %v1132_v25 = vadd.f32 %v1112_v17, %v1059_v49  ;;  %v1181_v26 = vrot.slane %v1145_v15, 2 }
 0x1b7   : > { %v1183_v28 = vrot.slane %v1146_v50, 2  ;;  %v1184_v30 = vrot.slane %v1147_v23, 2  ;;  %v1213_v46 = vmul.f32 %v2623_v14, %v2874_v19  ;;  %v1214_v31 = vmul.f32 %v2623_v14, %v2912_v4 }
 0x1b8   : > { %2180 = vtanh.f32 %v1418_v0  ;;  %v1182_v54 = vsel %vm1004_vm5, %v1180_v45, %v1181_v26  ;;  %v1234_v32 = vmul.f32 %v2629_v20, %v2874_v19  ;;  %v1235_v33 = vmul.f32 %v2629_v20, %v2890_v34 }
 0x1b9   : > { %v1185_v35 = vsel %vm1004_vm5, %v1183_v28, %v1184_v30  ;;  %v1204_v37 = vadd.f32 %v1182_v54, %v1131_v12  ;;  %v1236_v1 = vmul.f32 %v2629_v20, %v2912_v4  ;;  %v1237_v38 = vmul.f32 %v2629_v20, %v2921_v63 }
 0x1ba   : > { %v1205_v11 = vadd.f32 %v1185_v35, %v1132_v25  ;;  %v1270_v39 = vrot.slane %v1234_v32, 1  ;;  %v1271_v40 = vrot.slane %v1235_v33, 1  ;;  %v1307_v56 = vmul.f32 %v2631_v21, %v2874_v19 }
 0x1bb   : > { %v1221_v18 = vadd.f32 %v1213_v46, %v1204_v37  ;;  %v1273_v2 = vrot.slane %v1236_v1, 1  ;;  %v1274_v41 = vrot.slane %v1237_v38, 1  ;;  %v1308_v44 = vmul.f32 %v2631_v21, %v2890_v34 }
 0x1bc   : > { %v2179_v53 = vpop.eup %2178  ;;  %v1222_v16 = vadd.f32 %v1214_v31, %v1205_v11  ;;  %v1272_v9 = vsel %vm930_vm4, %v1270_v39, %v1271_v40  ;;  %v1309_v48 = vmul.f32 %v2631_v21, %v2912_v4  ;;  %v1310_v55 = vmul.f32 %v2631_v21, %v2921_v63 }
 0x1bd   : > { %v1433_v49 = vadd.f32 1.0, %v2179_v53  ;;  %v1275_v57 = vsel %vm930_vm4, %v1273_v2, %v1274_v41  ;;  %v1294_v58 = vadd.f32 %v1272_v9, %v1221_v18  ;;  %v1343_v59 = vrot.slane %v1307_v56, 2  ;;  %v873_v2 = vld [vmem:[#allocation2 + $0x80] sm:$0xff] }
 0x1be   : > { %v2181_v62 = vpop.eup %2180  ;;  %v1295_v3 = vadd.f32 %v1275_v57, %v1222_v16  ;;  %v1344_v29 = vrot.slane %v1308_v44, 2  ;;  %v1346_v12 = vrot.slane %v1309_v48, 2  ;;  %v1347_v15 = vrot.slane %v1310_v55, 2 }
 0x1bf   : > { %v1434_v17 = vadd.f32 1.0, %v2181_v62  ;;  %v1441_v50 = vmul.f32 0.5, %v1433_v49  ;;  %v887_v23 = vmul.f32 %v2595_v36, %v2874_v19  ;;  %v888_v45 = vmul.f32 %v2595_v36, %v2912_v4  ;;  %v874_v49 = vld [vmem:[#allocation2 + $0x88] sm:$0x3] }
 0x1c0   : > { %v1345_v0 = vsel %vm1004_vm5, %v1343_v59, %v1344_v29  ;;  %v1348_v25 = vsel %vm1004_vm5, %v1346_v12, %v1347_v15  ;;  %v910_v26 = vmul.f32 %v2584_v22, %v2874_v19  ;;  %v911_v28 = vmul.f32 %v2584_v22, %v2890_v34 }
 0x1c1   : > { %v1442_v30 = vmul.f32 0.5, %v1434_v17  ;;  %v1449_v46 = vmul.f32 %v1441_v50, %v2872_v10  ;;  %v1367_v31 = vadd.f32 %v1345_v0, %v1294_v58  ;;  %v1368_v54 = vadd.f32 %v1348_v25, %v1295_v3 }
 0x1c2   : > { %v912_v32 = vmul.f32 %v2584_v22, %v2912_v4  ;;  %v913_v36 = vmul.f32 %v2584_v22, %v2921_v63  ;;  %v949_v33 = vrot.slane %v910_v26, 1  ;;  %v950_v35 = vrot.slane %v911_v28, 1 }
 0x1c3   : > { %v1450_v37 = vmul.f32 %v1442_v30, %v2882_v24  ;;  %1457 = vst.msk [vmem:[%s2844_s26 + $0x10] sm:$0xff] %vm826_vm2, %v1449_v46  ;;  %v2966_v1 = vadd.f32 %v2731_v47, %v1367_v31  ;;  %v2969_v10 = vadd.f32 %v2731_v47, %v1368_v54  ;;  %v984_v38 = vmul.f32 %v2586_v27, %v2874_v19 }
 0x1c4   : > { %v951_v11 = vsel %vm930_vm4, %v949_v33, %v950_v35  ;;  %v952_v39 = vrot.slane %v912_v32, 1  ;;  %v953_v40 = vrot.slane %v913_v36, 1  ;;  %v985_v22 = vmul.f32 %v2586_v27, %v2890_v34  ;;  %v875_v33 = vld [vmem:[#allocation2 + $0x90] sm:$0xff] }
 0x1c5   : > { %1458 = vst.msk [vmem:[%s2844_s26 + $0x18] sm:$0xff] %vm826_vm2, %v1450_v37  ;;  %v1464_v24 = vpack.c.bf16 %v1450_v37, %v1449_v46  ;;  %v1387_v56 = vmul.f32 %v2966_v1, %v2966_v1  ;;  %v1388_v18 = vmul.f32 %v2969_v10, %v2969_v10  ;;  %v969_v41 = vadd.f32 %v951_v11, %v887_v23 }
 0x1c6   : > { %v954_v19 = vsel %vm930_vm4, %v952_v39, %v953_v40  ;;  %v986_v44 = vmul.f32 %v2586_v27, %v2912_v4  ;;  %v987_v53 = vmul.f32 %v2586_v27, %v2921_v63  ;;  %v1023_v34 = vrot.slane %v984_v38, 2 }
 0x1c7   : > { %2043 = vmatmul.msk.bf16.gmra.mxu3 %vm826_vm2, %v1464_v24  ;;  %v1395_v16 = vmul.f32 %v1387_v56, %v2966_v1  ;;  %v1396_v9 = vmul.f32 %v1388_v18, %v2969_v10  ;;  %v970_v48 = vadd.f32 %v954_v19, %v888_v45  ;;  %v1024_v55 = vrot.slane %v985_v22, 2  ;;  %v876_v22 = vld [vmem:[#allocation2 + $0x98] sm:$0x3] }
 0x1c8   : > { %v1026_v57 = vrot.slane %v986_v44, 2  ;;  %v1027_v58 = vrot.slane %v987_v53, 2  ;;  %v1052_v59 = vmul.f32 %v2617_v7, %v2912_v4  ;;  %v1053_v62 = vmul.f32 %v2617_v7, %v873_v2 }
 0x1c9   : > { %v1403_v3 = vmul.f32 0.044715, %v1395_v16  ;;  %v1404_v29 = vmul.f32 0.044715, %v1396_v9  ;;  %v1025_v27 = vsel %vm1004_vm5, %v1023_v34, %v1024_v55  ;;  %v1075_v12 = vmul.f32 %v2619_v8, %v2912_v4 }
 0x1ca   : > { %v1028_v15 = vsel %vm1004_vm5, %v1026_v57, %v1027_v58  ;;  %v1043_v17 = vadd.f32 %v1025_v27, %v969_v41  ;;  %v1076_v50 = vmul.f32 %v2619_v8, %v2921_v63  ;;  %v1077_v23 = vmul.f32 %v2619_v8, %v873_v2 }
 0x1cb   : > { %v1411_v45 = vadd.f32 %v1403_v3, %v2966_v1  ;;  %v1412_v0 = vadd.f32 %v1404_v29, %v2969_v10  ;;  %v1044_v7 = vadd.f32 %v1028_v15, %v970_v48  ;;  %v1078_v25 = vmul.f32 %v2619_v8, %v874_v49 }
 0x1cc   : > { %v1060_v26 = vadd.f32 %v1052_v59, %v1043_v17  ;;  %v1113_v28 = vrot.slane %v1075_v12, 1  ;;  %v1114_v30 = vrot.slane %v1076_v50, 1  ;;  %v1116_v46 = vrot.slane %v1077_v23, 1 }
 0x1cd   : > { %v1419_v31 = vmul.f32 0.7978846, %v1411_v45  ;;  %v1420_v54 = vmul.f32 0.7978846, %v1412_v0  ;;  %v1061_v32 = vadd.f32 %v1053_v62, %v1044_v7  ;;  %v1117_v36 = vrot.slane %v1078_v25, 1 }
 0x1ce   : > { %v1115_v35 = vsel %vm930_vm4, %v1113_v28, %v1114_v30  ;;  %v1148_v37 = vmul.f32 %v2621_v13, %v2912_v4  ;;  %v1149_v38 = vmul.f32 %v2621_v13, %v2921_v63  ;;  %v1150_v11 = vmul.f32 %v2621_v13, %v873_v2 }
 0x1cf   : > { %2182 = vtanh.f32 %v1419_v31  ;;  %v1118_v8 = vsel %vm930_vm4, %v1116_v46, %v1117_v36  ;;  %v1133_v39 = vadd.f32 %v1115_v35, %v1060_v26  ;;  %v1151_v40 = vmul.f32 %v2621_v13, %v874_v49 }
 0x1d0   : > { %2184 = vtanh.f32 %v1420_v54  ;;  %v1134_v24 = vadd.f32 %v1118_v8, %v1061_v32  ;;  %v1186_v56 = vrot.slane %v1148_v37, 2  ;;  %v1187_v18 = vrot.slane %v1149_v38, 2 }
 0x1d1   : > { %v1189_v41 = vrot.slane %v1150_v11, 2  ;;  %v1190_v19 = vrot.slane %v1151_v40, 2  ;;  %v1215_v4 = vmul.f32 %v2623_v14, %v873_v2  ;;  %v1216_v44 = vmul.f32 %v2623_v14, %v875_v33 }
 0x1d2   : > { %v1188_v63 = vsel %vm1004_vm5, %v1186_v56, %v1187_v18  ;;  %v1238_v53 = vmul.f32 %v2629_v20, %v873_v2  ;;  %v1239_v34 = vmul.f32 %v2629_v20, %v874_v49  ;;  %v1240_v16 = vmul.f32 %v2629_v20, %v875_v33 }
 0x1d3   : > { %v1191_v13 = vsel %vm1004_vm5, %v1189_v41, %v1190_v19  ;;  %v1206_v9 = vadd.f32 %v1188_v63, %v1133_v39  ;;  %v1241_v48 = vmul.f32 %v2629_v20, %v876_v22  ;;  %v1311_v55 = vmul.f32 %v2631_v21, %v873_v2 }
 0x1d4   : > { %v1207_v57 = vadd.f32 %v1191_v13, %v1134_v24  ;;  %v1276_v58 = vrot.slane %v1238_v53, 1  ;;  %v1277_v59 = vrot.slane %v1239_v34, 1  ;;  %v1279_v62 = vrot.slane %v1240_v16, 1  ;;  %v3044_v13 = vld [vmem:[%s3254_s8] ss:$0 sm:$0xff] }
 0x1d5   : > { %v2183_v14 = vpop.eup %2182  ;;  %v1223_v3 = vadd.f32 %v1215_v4, %v1206_v9  ;;  %v1280_v29 = vrot.slane %v1241_v48, 1  ;;  %v1312_v27 = vmul.f32 %v2631_v21, %v874_v49  ;;  %v1313_v12 = vmul.f32 %v2631_v21, %v875_v33 }
 0x1d6   : > { %v2185_v15 = vpop.eup %2184  ;;  %v1435_v17 = vadd.f32 1.0, %v2183_v14  ;;  %v1224_v50 = vadd.f32 %v1216_v44, %v1207_v57  ;;  %v1278_v23 = vsel %vm930_vm4, %v1276_v58, %v1277_v59  ;;  %v1314_v20 = vmul.f32 %v2631_v21, %v876_v22  ;;  %v2095_v14 = vld [vmem:[%s3223_s9 + $0x8] sm:$0xff] }
 0x1d7   : > { %v1436_v2 = vadd.f32 1.0, %v2185_v15  ;;  %v1281_v45 = vsel %vm930_vm4, %v1279_v62, %v1280_v29  ;;  %v1296_v0 = vadd.f32 %v1278_v23, %v1223_v3  ;;  %v1349_v7 = vrot.slane %v1311_v55, 2  ;;  %1682 = vmatpush.bf16.msrb.mxu1 %v2095_v14 }
 0x1d8   : > { %v1443_v25 = vmul.f32 0.5, %v1435_v17  ;;  %v1297_v26 = vadd.f32 %v1281_v45, %v1224_v50  ;;  %v1350_v28 = vrot.slane %v1312_v27, 2  ;;  %v1352_v49 = vrot.slane %v1313_v12, 2  ;;  %v2094_v17 = vld [vmem:[%s3223_s9] sm:$0xff] }
 0x1d9   : > { %v1444_v30 = vmul.f32 0.5, %v1436_v2  ;;  %v1353_v46 = vrot.slane %v1314_v20, 2 }
 0x1da   : > { %v1451_v31 = vmul.f32 %v1443_v25, %v2966_v1  ;;  %v1351_v54 = vsel %vm1004_vm5, %v1349_v7, %v1350_v28 }
 0x1db   : > { %v1452_v32 = vmul.f32 %v1444_v30, %v2969_v10  ;;  %v1354_v21 = vsel %vm1004_vm5, %v1352_v49, %v1353_v46  ;;  %v1369_v36 = vadd.f32 %v1351_v54, %v1296_v0  ;;  %1683 = vmatpush.bf16.msrb.mxu1 %v2094_v17 }
 0x1dc   : > { %1459 = vst.msk [vmem:[%s2844_s26 + $0x20] sm:$0xff] %vm826_vm2, %v1451_v31  ;;  %v1370_v33 = vadd.f32 %v1354_v21, %v1297_v26 }
 0x1dd   : > { %1460 = vst.msk [vmem:[%s2844_s26 + $0x28] sm:$0xff] %vm826_vm2, %v1452_v32  ;;  %v1465_v35 = vpack.c.bf16 %v1452_v32, %v1451_v31  ;;  %v1381_v37 = vadd.f32 %v2731_v47, %v1369_v36 }
 0x1de   : > { %v1382_v38 = vadd.f32 %v2731_v47, %v1370_v33 }
 0x1df   : > { %2044 = vmatmul.msk.bf16.gmra.mxu3 %vm826_vm2, %v1465_v35  ;;  %v1389_v1 = vmul.f32 %v1381_v37, %v1381_v37 }
 0x1e0   : > { %v1390_v11 = vmul.f32 %v1382_v38, %v1382_v38 }
 0x1e1   : > { %v1397_v8 = vmul.f32 %v1389_v1, %v1381_v37 }
 0x1e2   : > { %v1398_v39 = vmul.f32 %v1390_v11, %v1382_v38 }
 0x1e3   : > { %v1405_v10 = vmul.f32 0.044715, %v1397_v8 }
 0x1e4   : > { %v1406_v40 = vmul.f32 0.044715, %v1398_v39 }
 0x1e5   : > { %v1413_v22 = vadd.f32 %v1405_v10, %v1381_v37 }
 0x1e6   : > { %v1414_v24 = vadd.f32 %v1406_v40, %v1382_v38 }
 0x1e7   : > { %v1421_v56 = vmul.f32 0.7978846, %v1413_v22 }
 0x1e8   : > { %v1422_v18 = vmul.f32 0.7978846, %v1414_v24 }
 0x1e9   : > { %2186 = vtanh.f32 %v1421_v56 }
 0x1ea   : > { %2188 = vtanh.f32 %v1422_v18 }
 0x1ef   : > { %v2187_v41 = vpop.eup %2186 }
 0x1f0   : > { %v2189_v19 = vpop.eup %2188  ;;  %v1437_v47 = vadd.f32 1.0, %v2187_v41 }
 0x1f1   : > { %v1438_v4 = vadd.f32 1.0, %v2189_v19 }
 0x1f2   : > { %v1445_v44 = vmul.f32 0.5, %v1437_v47 }
 0x1f3   : > { %v1446_v63 = vmul.f32 0.5, %v1438_v4 }
 0x1f4   : > { %v1453_v53 = vmul.f32 %v1445_v44, %v1381_v37 }
 0x1f5   : > { %v1454_v34 = vmul.f32 %v1446_v63, %v1382_v38 }
 0x1f6   : > { %1461 = vst.msk [vmem:[%s2844_s26 + $0x30] sm:$0xff] %vm826_vm2, %v1453_v53 }
 0x1f7   : > { %1462 = vst.msk [vmem:[%s2844_s26 + $0x38] sm:$0xff] %vm826_vm2, %v1454_v34  ;;  %v1466_v16 = vpack.c.bf16 %v1454_v34, %v1453_v53 }
 0x1f9   : > { %2045 = vmatmul.msk.bf16.gmra.mxu3 %vm826_vm2, %v1466_v16 }
 0x22b   : > { %v1524_v9 = vpop.f32.mrf.mxu3 }
 0x22c   : > { %v1525_v48 = vadd.f32 %v3044_v13, %v1524_v9 }
 0x22e   : > { %1544 = vst.msk [vmem:[%s3048_s28] sm:$0xff] %vm712_vm1, %v1525_v48  ;;  %v1552_v55 = vadd.f32 %v1525_v48, %v2526_v42 }
 0x230   : > { %v1560_v57 = vmul.f32 %v1552_v55, %v1552_v55 }
 0x232   : > { %v1568_v58 = vmul.f32 %v1560_v57, %v1552_v55 }
 0x233   : > { %v1526_v59 = vpop.f32.mrf.mxu3 }
 0x234   : > { %v1527_v62 = vadd.f32 %v3044_v13, %v1526_v59  ;;  %v1576_v3 = vmul.f32 0.044715, %v1568_v58 }
 0x236   : > { %1545 = vst.msk [vmem:[%s3048_s28 + $0x8] sm:$0xff] %vm712_vm1, %v1527_v62  ;;  %v1553_v29 = vadd.f32 %v1527_v62, %v2528_v43  ;;  %v1584_v12 = vadd.f32 %v1576_v3, %v1552_v55 }
 0x238   : > { %v1561_v27 = vmul.f32 %v1553_v29, %v1553_v29  ;;  %v1592_v50 = vmul.f32 0.7978846, %v1584_v12 }
 0x23a   : > { %v1569_v15 = vmul.f32 %v1561_v27, %v1553_v29  ;;  %2190 = vtanh.f32 %v1592_v50 }
 0x23c   : > { %v1577_v42 = vmul.f32 0.044715, %v1569_v15 }
 0x23e   : > { %v1585_v23 = vadd.f32 %v1577_v42, %v1553_v29 }
 0x240   : > { %v1593_v20 = vmul.f32 0.7978846, %v1585_v23  ;;  %v2191_v2 = vpop.eup %2190 }
 0x241   : > { %v1608_v7 = vadd.f32 1.0, %v2191_v2 }
 0x242   : > { %2192 = vtanh.f32 %v1593_v20 }
 0x243   : > { %v1616_v28 = vmul.f32 0.5, %v1608_v7 }
 0x245   : > { %v1624_v46 = vmul.f32 %v1616_v28, %v1552_v55 }
 0x247   : > { %1632 = vst.msk [vmem:[%s3068_s22] sm:$0xff] %vm712_vm1, %v1624_v46 }
 0x248   : > { %v2193_v45 = vpop.eup %2192 }
 0x249   : > { %v1609_v26 = vadd.f32 1.0, %v2193_v45 }
 0x24a   : > { %v1529_v43 = vpop.f32.mrf.mxu3 }
 0x24b   : > { %v1530_v0 = vadd.f32 %v3044_v13, %v1529_v43  ;;  %v1617_v30 = vmul.f32 0.5, %v1609_v26 }
 0x24d   : > { %1546 = vst.msk [vmem:[%s3048_s28 + $0x10] sm:$0xff] %vm712_vm1, %v1530_v0  ;;  %v1554_v25 = vadd.f32 %v1530_v0, %v2533_v51  ;;  %v1625_v54 = vmul.f32 %v1617_v30, %v1553_v29 }
 0x24f   : > { %v1562_v49 = vmul.f32 %v1554_v25, %v1554_v25  ;;  %1633 = vst.msk [vmem:[%s3068_s22 + $0x8] sm:$0xff] %vm712_vm1, %v1625_v54  ;;  %v1640_v51 = vpack.c.bf16 %v1625_v54, %v1624_v46 }
 0x251   : > { %v1570_v31 = vmul.f32 %v1562_v49, %v1554_v25  ;;  %2054 = vmatmul.msk.bf16.vlgmr.msrb.gmra.mxu1 %vm712_vm1, %v1640_v51 }
 0x252   : > { %v1531_v32 = vpop.f32.mrf.mxu3 }
 0x253   : > { %v1578_v21 = vmul.f32 0.044715, %v1570_v31  ;;  %v1532_v36 = vadd.f32 %v3044_v13, %v1531_v32 }
 0x255   : > { %v1586_v33 = vadd.f32 %v1578_v21, %v1554_v25  ;;  %1547 = vst.msk [vmem:[%s3048_s28 + $0x18] sm:$0xff] %vm712_vm1, %v1532_v36  ;;  %v1555_v35 = vadd.f32 %v1532_v36, %v2535_v52 }
 0x257   : > { %v1563_v37 = vmul.f32 %v1555_v35, %v1555_v35  ;;  %v1594_v38 = vmul.f32 0.7978846, %v1586_v33 }
 0x259   : > { %v1571_v1 = vmul.f32 %v1563_v37, %v1555_v35  ;;  %2194 = vtanh.f32 %v1594_v38 }
 0x25b   : > { %v1579_v11 = vmul.f32 0.044715, %v1571_v1 }
 0x25d   : > { %v1587_v8 = vadd.f32 %v1579_v11, %v1555_v35 }
 0x25f   : > { %v2195_v39 = vpop.eup %2194  ;;  %v1595_v10 = vmul.f32 0.7978846, %v1587_v8 }
 0x260   : > { %v1610_v40 = vadd.f32 1.0, %v2195_v39 }
 0x261   : > { %2196 = vtanh.f32 %v1595_v10 }
 0x262   : > { %v1534_v22 = vpop.f32.mrf.mxu3  ;;  %v1618_v24 = vmul.f32 0.5, %v1610_v40 }
 0x263   : > { %v1535_v56 = vadd.f32 %v3044_v13, %v1534_v22 }
 0x264   : > { %v1626_v52 = vmul.f32 %v1618_v24, %v1554_v25 }
 0x265   : > { %1548 = vst.msk [vmem:[%s3048_s28 + $0x20] sm:$0xff] %vm712_vm1, %v1535_v56  ;;  %v1556_v18 = vadd.f32 %v1535_v56, %v2540_v60 }
 0x266   : > { %1634 = vst.msk [vmem:[%s3068_s22 + $0x10] sm:$0xff] %vm712_vm1, %v1626_v52 }
 0x267   : > { %v2197_v41 = vpop.eup %2196  ;;  %v1564_v19 = vmul.f32 %v1556_v18, %v1556_v18 }
 0x268   : > { %v1611_v47 = vadd.f32 1.0, %v2197_v41 }
 0x269   : > { %v1572_v4 = vmul.f32 %v1564_v19, %v1556_v18 }
 0x26a   : > { %v1536_v44 = vpop.f32.mrf.mxu3  ;;  %v1619_v63 = vmul.f32 0.5, %v1611_v47 }
 0x26b   : > { %v1580_v53 = vmul.f32 0.044715, %v1572_v4  ;;  %v1537_v34 = vadd.f32 %v3044_v13, %v1536_v44 }
 0x26c   : > { %v1627_v16 = vmul.f32 %v1619_v63, %v1555_v35 }
 0x26d   : > { %v1588_v9 = vadd.f32 %v1580_v53, %v1556_v18  ;;  %1549 = vst.msk [vmem:[%s3048_s28 + $0x28] sm:$0xff] %vm712_vm1, %v1537_v34  ;;  %v1557_v48 = vadd.f32 %v1537_v34, %v2542_v61 }
 0x26e   : > { %1635 = vst.msk [vmem:[%s3068_s22 + $0x18] sm:$0xff] %vm712_vm1, %v1627_v16  ;;  %v1641_v60 = vpack.c.bf16 %v1627_v16, %v1626_v52 }
 0x26f   : > { %v1565_v55 = vmul.f32 %v1557_v48, %v1557_v48  ;;  %v1596_v57 = vmul.f32 0.7978846, %v1588_v9 }
 0x270   : > { %2055 = vmatmul.msk.bf16.gmra.mxu1 %vm712_vm1, %v1641_v60 }
 0x271   : > { %v1573_v58 = vmul.f32 %v1565_v55, %v1557_v48  ;;  %2198 = vtanh.f32 %v1596_v57 }
 0x273   : > { %v1581_v59 = vmul.f32 0.044715, %v1573_v58 }
 0x275   : > { %v1589_v62 = vadd.f32 %v1581_v59, %v1557_v48 }
 0x277   : > { %v2199_v14 = vpop.eup %2198  ;;  %v1597_v3 = vmul.f32 0.7978846, %v1589_v62 }
 0x278   : > { %v1612_v29 = vadd.f32 1.0, %v2199_v14 }
 0x279   : > { %2200 = vtanh.f32 %v1597_v3 }
 0x27a   : > { %v1620_v27 = vmul.f32 0.5, %v1612_v29 }
 0x27c   : > { %v1539_v61 = vpop.f32.mrf.mxu3  ;;  %v1628_v12 = vmul.f32 %v1620_v27, %v1556_v18 }
 0x27d   : > { %v1540_v15 = vadd.f32 %v3044_v13, %v1539_v61 }
 0x27e   : > { %1636 = vst.msk [vmem:[%s3068_s22 + $0x20] sm:$0xff] %vm712_vm1, %v1628_v12 }
 0x27f   : > { %v2201_v42 = vpop.eup %2200  ;;  %1550 = vst.msk [vmem:[%s3048_s28 + $0x30] sm:$0xff] %vm712_vm1, %v1540_v15  ;;  %v1558_v17 = vadd.f32 %v1540_v15, %v2547_v5 }
 0x280   : > { %v1613_v50 = vadd.f32 1.0, %v2201_v42 }
 0x281   : > { %v1566_v23 = vmul.f32 %v1558_v17, %v1558_v17 }
 0x282   : > { %v1621_v20 = vmul.f32 0.5, %v1613_v50 }
 0x283   : > { %v1574_v2 = vmul.f32 %v1566_v23, %v1558_v17 }
 0x284   : > { %v1541_v45 = vpop.f32.mrf.mxu3  ;;  %v1629_v43 = vmul.f32 %v1621_v20, %v1557_v48 }
 0x285   : > { %v1582_v0 = vmul.f32 0.044715, %v1574_v2  ;;  %v1542_v7 = vadd.f32 %v3044_v13, %v1541_v45 }
 0x286   : > { %1637 = vst.msk [vmem:[%s3068_s22 + $0x28] sm:$0xff] %vm712_vm1, %v1629_v43  ;;  %v1642_v25 = vpack.c.bf16 %v1629_v43, %v1628_v12 }
 0x287   : > { %v1590_v26 = vadd.f32 %v1582_v0, %v1558_v17  ;;  %1551 = vst.msk [vmem:[%s3048_s28 + $0x38] sm:$0xff] %vm712_vm1, %v1542_v7  ;;  %v1559_v28 = vadd.f32 %v1542_v7, %v2549_v6 }
 0x288   : > { %2056 = vmatmul.msk.bf16.gmra.mxu1 %vm712_vm1, %v1642_v25 }
 0x289   : > { %v1567_v5 = vmul.f32 %v1559_v28, %v1559_v28  ;;  %v1598_v49 = vmul.f32 0.7978846, %v1590_v26 }
 0x28b   : > { %v1575_v30 = vmul.f32 %v1567_v5, %v1559_v28  ;;  %2202 = vtanh.f32 %v1598_v49 }
 0x28d   : > { %v1583_v46 = vmul.f32 0.044715, %v1575_v30 }
 0x28f   : > { %v1591_v31 = vadd.f32 %v1583_v46, %v1559_v28 }
 0x291   : > { %v2203_v13 = vpop.eup %2202  ;;  %v1599_v54 = vmul.f32 0.7978846, %v1591_v31 }
 0x292   : > { %v1614_v32 = vadd.f32 1.0, %v2203_v13 }
 0x293   : > { %2204 = vtanh.f32 %v1599_v54 }
 0x294   : > { %v1622_v21 = vmul.f32 0.5, %v1614_v32 }
 0x296   : > { %v1630_v36 = vmul.f32 %v1622_v21, %v1558_v17 }
 0x298   : > { %1638 = vst.msk [vmem:[%s3068_s22 + $0x30] sm:$0xff] %vm712_vm1, %v1630_v36 }
 0x299   : > { %v2205_v6 = vpop.eup %2204 }
 0x29a   : > { %v1615_v51 = vadd.f32 1.0, %v2205_v6 }
 0x29c   : > { %v1623_v33 = vmul.f32 0.5, %v1615_v51 }
 0x29e   : > { %v1631_v35 = vmul.f32 %v1623_v33, %v1559_v28 }
 0x2a0   : > { %1639 = vst.msk [vmem:[%s3068_s22 + $0x38] sm:$0xff] %vm712_vm1, %v1631_v35  ;;  %v1643_v37 = vpack.c.bf16 %v1631_v35, %v1630_v36 }
 0x2a2   : > { %2057 = vmatmul.msk.bf16.gmra.mxu1 %vm712_vm1, %v1643_v37 }
 0x2a3   : > { %2233 = shalt.err (!%p2230_p3)
}
 0x2a4   : > { %s2331_s21 = smov 128   ;;  %s2332_s28 = smov 8  }
 0x2a5   : > { %2102 = dma.vmem_to_hbm [thread:$0]  (%p2448_p5), %s1759_s0, 1024, %s1761_s1, %s3116_s2, %s2331_s21, %s2331_s21, %s2332_s28  }
 0x2a6   : > { %s1774_s3 = scalar_lea.hbm %s3227_s13, %s2096_s20  ;;  %s1740_s25 = scalar_lea.hbm %s3225_s11, %s2096_s20 }
 0x2a7   : > { %s3138_s27 = sshll.u32 %s1774_s3, 4  ;;  %s1741_s17 = sshll.u32 %s2844_s26, 4  ;;  %s1778_s27 = int_to_ptr.hbm [resolvable:$true] %s3138_s27  ;;  %s1742_s17 = int_to_ptr.vmem [resolvable:$true] %s1741_s17 }
 0x2a8   : > { %s1743_s15 = sshll.u32 %s1740_s25, 4  ;;  %s1775_s8 = sshll.u32 %s3068_s22, 4  ;;  %s1744_s15 = int_to_ptr.hbm [resolvable:$true] %s1743_s15  ;;  %s3143_s8 = int_to_ptr.vmem [resolvable:$true] %s1775_s8 }
 0x2a9   : > { %s3255_s0 = sand.u32 1, %s2320_s30   ;;  %s2248_s5 = sshra.s32 %s1744_s15, 4  ;;  %s2249_s5 = int_to_ptr.hbm [resolvable:$true] %s2248_s5 }
 0x2aa   : > { %s1714_s1 = scalar_lea.sflag [#allocation4], %s3255_s0  ;;  %s2250_s6 = scalar_lea.hbm %s2249_s5, 64 }
 0x2ab   : > { %p2251_p4 = scmp.ne.s32.totalorder %s2249_s5, %s2250_s6  ;;  %s2254_s26 = scalar_lea.hbm %s3225_s11, 128 }
 0x2ac   : > { %p2255_p9 = scmp.lt.s32.totalorder %s2249_s5, %s3225_s11  ;;  %p2256_p10 = scmp.lt.s32.totalorder %s2254_s26, %s2250_s6 }
 0x2ad   : > { %p2252_p7 = pnand %p2251_p4, %p2448_p5 }
 0x2ae   : > { %p2257_p11 = por %p2256_p10, %p2255_p9 }
 0x2af   : > { %p2253_p8 = pneg %p2252_p7 }
 0x2b1   : > { %p2258_p12 = pnand %p2257_p11, %p2253_p8 }
 0x2b3   : > { %2261 = shalt.err (!%p2258_p12)
}
 0x2b4   : > { %2101 = dma.vmem_to_hbm [thread:$0]  (%p2448_p5), %s1742_s17, 1024, %s1744_s15, %s1714_s1, %s2331_s21, %s2331_s21, %s2332_s28  }
 0x2b5   : > { %s2276_s22 = sshra.s32 %s1778_s27, 4  ;;  %s2282_s6 = scalar_lea.hbm %s3227_s13, 128  ;;  %s2277_s22 = int_to_ptr.hbm [resolvable:$true] %s2276_s22 }
 0x2b6   : > { %s2278_s25 = scalar_lea.hbm %s2277_s22, 64  ;;  %p2283_p2 = scmp.lt.s32.totalorder %s2277_s22, %s3227_s13 }
 0x2b7   : > { %p2279_p13 = scmp.ne.s32.totalorder %s2277_s22, %s2278_s25  ;;  %p2284_p3 = scmp.lt.s32.totalorder %s2282_s6, %s2278_s25 }
 0x2b9   : > { %p2280_p0 = pnand %p2279_p13, %p2448_p5  ;;  %p2285_p4 = por %p2284_p3, %p2283_p2 }
 0x2bb   : > { %p2281_p1 = pneg %p2280_p0 }
 0x2bd   : > { %p2286_p7 = pnand %p2285_p4, %p2281_p1 }
 0x2bf   : > { %2289 = shalt.err (!%p2286_p7)
}
 0x2c0   : > { %2103 = dma.vmem_to_hbm [thread:$0]  (%p2448_p5), %s3143_s8, 1024, %s1778_s27, %s3116_s2, %s2331_s21, %s2331_s21, %s2332_s28  }
 0x2c1   : > { %v2157_v38 = vld [vmem:[%s3224_s10] ss:$0 sm:$0xff]  ;;  %s3256_s1 = sshll.u32 %s2469_s18, 6 }
 0x2c2   : > { %s495_s7 = scalar_lea.vmem %s3228_s14, %s3256_s1 }
 0x2ce   : > { %v1685_v1 = vpop.f32.mrf.mxu1 }
 0x2cf   : > { %v1686_v11 = vadd.f32 %v2157_v38, %v1685_v1 }
 0x2d1   : > { %1705 = vst.msk [vmem:[%s495_s7] sm:$0xff] %vm712_vm1, %v1686_v11 }
 0x2d6   : > { %v1687_v8 = vpop.f32.mrf.mxu1 }
 0x2d7   : > { %v1688_v39 = vadd.f32 %v2157_v38, %v1687_v8 }
 0x2d9   : > { %1706 = vst.msk [vmem:[%s495_s7 + $0x8] sm:$0xff] %vm712_vm1, %v1688_v39 }
 0x2ed   : > { %v1690_v10 = vpop.f32.mrf.mxu1 }
 0x2ee   : > { %v1691_v40 = vadd.f32 %v2157_v38, %v1690_v10 }
 0x2f0   : > { %1707 = vst.msk [vmem:[%s495_s7 + $0x10] sm:$0xff] %vm712_vm1, %v1691_v40 }
 0x2f5   : > { %v1692_v22 = vpop.f32.mrf.mxu1 }
 0x2f6   : > { %v1693_v24 = vadd.f32 %v2157_v38, %v1692_v22 }
 0x2f8   : > { %1708 = vst.msk [vmem:[%s495_s7 + $0x18] sm:$0xff] %vm712_vm1, %v1693_v24 }
 0x305   : > { %v1695_v56 = vpop.f32.mrf.mxu1 }
 0x306   : > { %v1696_v52 = vadd.f32 %v2157_v38, %v1695_v56 }
 0x308   : > { %1709 = vst.msk [vmem:[%s495_s7 + $0x20] sm:$0xff] %vm712_vm1, %v1696_v52 }
 0x30d   : > { %v1697_v18 = vpop.f32.mrf.mxu1 }
 0x30e   : > { %v1698_v41 = vadd.f32 %v2157_v38, %v1697_v18 }
 0x310   : > { %1710 = vst.msk [vmem:[%s495_s7 + $0x28] sm:$0xff] %vm712_vm1, %v1698_v41 }
 0x31f   : > { %v1700_v19 = vpop.f32.mrf.mxu1 }
 0x320   : > { %v1701_v47 = vadd.f32 %v2157_v38, %v1700_v19 }
 0x322   : > { %1711 = vst.msk [vmem:[%s495_s7 + $0x30] sm:$0xff] %vm712_vm1, %v1701_v47 }
 0x327   : > { %v1702_v4 = vpop.f32.mrf.mxu1 }
 0x328   : > { %v1703_v44 = vadd.f32 %v2157_v38, %v1702_v4 }
 0x32a   : > { %1712 = vst.msk [vmem:[%s495_s7 + $0x38] sm:$0xff] %vm712_vm1, %v1703_v44 }
 0x32b PF: > { %p2117_p5 = scmp.ge.s32.totalorder %s2328_s16, 2  ;;  %s1795_s2 = sand.u32 1, %s2316_s29  }
 0x32c   : > { %s1796_s8 = scalar_lea.sflag [#allocation4], %s1795_s2 }
 0x32d   : > { %p2108_p8 = pnand %p2117_p5, %p2452_p6 }
 0x32f   : > { %p2109_p9 = pneg %p2108_p8 }
 0x331   : > { %2307 = dma.done.wait (%p2109_p9), %s1796_s8, 1024  }
 0x332   : > { %2309 = vsyncadd (%p2109_p9), %s1796_s8, 4294966272  ;;  %s3257_s18 = sadd.s32 4294967294, %s2328_s16  }
 0x333   : > { %s1805_s23 = sand.u32 1, %s3257_s18  }
 0x334   : > { %s1806_s21 = scalar_lea.sflag [#allocation6], %s1805_s23 }
 0x335   : > { %2311 = dma.done.wait (%p2109_p9), %s1806_s21, 2048  }
 0x336   : > { %2313 = vsyncadd (%p2109_p9), %s1806_s21, 4294965248  ;;  %s3258_s28 = sld [smem:[#allocation10_spill]]  ;;  %p28_p10 = scmp.ge.s32.totalorder %s2433_s19, 4  }
 0x337   : > { %s3259_s15 = sld [smem:[#allocation11_spill]]  ;;  %s3260_s29 = smov %s2320_s30 }
 0x338   : > { %s3262_s16 = smov %s2433_s19  ;;  %30 = sbr.rel (!%p28_p10) target bundleno = 15 (0xf), region = 144 }
 0x33c   : > { %s3261_s30 = smov %s3258_s28 }
 0x33d   :  { %1830 = vsyncpa [#allocation4], 1 }
 0x33e   :  { %1832 = vsyncpa [#allocation4 + $0x1], 1 }
 0x33f   :  { %1833 = vsyncpa [#allocation6], 1 }
 0x340   :  { %1835 = vsyncpa [#allocation6 + $0x1], 1 }

// kernel: mobile_sam_forward.7
= control target key start
LH: loop header
LB: loop body
LE: loop exit
PB: predicated region body
PF: predicated region fallthrough
CT: control target
= control target key end

     0   :  { %s2753_s0 = inlined_call_operand.vmem [shape: f32[2,64,32], index: 0, kind: input, shape index: {}]   ;;  %s2754_s1 = inlined_call_operand.vmem [shape: f32[2,64,32], index: 1, kind: input, shape index: {}]   ;;  %s2755_s2 = inlined_call_operand.vmem [shape: f32[3,3,32], index: 2, kind: input, shape index: {}]   ;;  %s2756_s3 = inlined_call_operand.vmem [shape: f32[1,32], index: 3, kind: input, shape index: {}]   ;;  %s2757_s4 = inlined_call_operand.vmem [shape: f32[1,32], index: 4, kind: input, shape index: {}]   ;;  %s2758_s5 = inlined_call_operand.vmem [shape: f32[1,32], index: 5, kind: input, shape index: {}]   ;;  %s2759_s6 = inlined_call_operand.vmem [shape: bf16[32,64], index: 6, kind: input, shape index: {}]   ;;  %s2760_s7 = inlined_call_operand.vmem [shape: f32[1,64], index: 7, kind: input, shape index: {}]   ;;  %s2761_s8 = inlined_call_operand.vmem [shape: bf16[64,32], index: 8, kind: input, shape index: {}]   ;;  %s2762_s9 = inlined_call_operand.vmem [shape: f32[1,32], index: 9, kind: input, shape index: {}]   ;;  %s2763_s10 = inlined_call_operand.hbm [shape: f32[2,64,32], index: 10, kind: output, shape index: {0}]   ;;  %s2764_s11 = inlined_call_operand.hbm [shape: f32[2,64,32], index: 11, kind: output, shape index: {1}]  }
   0x1   :  { %2765 = sst [smem:[#allocation9_spill]] %s2753_s0 }
   0x2   :  { %2766 = sst [smem:[#allocation10_spill]] %s2754_s1 }
   0x3   :  { %2767 = sst [smem:[#allocation11_spill]] %s2755_s2 }
   0x4   :  { %2768 = sst [smem:[#allocation12_spill]] %s2756_s3 }
   0x5   :  { %2769 = sst [smem:[#allocation13_spill]] %s2757_s4 }
   0x6   :  { %2770 = sst [smem:[#allocation14_spill]] %s2758_s5 }
   0x7   :  { %17 = vsyncpa [#allocation4], 0 }
   0x8   :  { %19 = vsyncpa [#allocation4 + $0x1], 0 }
   0x9   :  { %20 = vsyncpa [#allocation6], 0 }
   0xa   :  { %22 = vsyncpa [#allocation6 + $0x1], 0  ;;  %s1906_s17 = smov 0   ;;  %s1908_s18 = smov 0  }
   0xb   :  { %s1910_s19 = smov 0   ;;  %s1912_s20 = smov 0  }
   0xc LB: > { %s1927_s21 = sadd.s32 4294967295, %s1840_s20   ;;  %s1593_s22 = sadd.s32 4294967294, %s1840_s20   ;;  %s1840_s20 = sphi %s1912_s20, %s2786_s20   ;;  %s1836_s19 = sphi %s1910_s19, %s2785_s19   ;;  %s1832_s18 = sphi %s1908_s18, %s2784_s18   ;;  %s1828_s17 = sphi %s1906_s17, %s2783_s17  }
   0xd   : > { %s1931_s23 = sadd.s32 1, %s1840_s20   ;;  %s255_s24 = sadd.s32 1, %s1836_s19 }
   0xe   : > { %s252_s25 = ssub.s32 %s1840_s20, %s1931_s23  ;;  %p265_p0 = scmp.ne.s32.totalorder %s1836_s19, %s1832_s18 }
   0xf   : > { %p253_p1 = scmp.eq.s32.totalorder %s252_s25, 0  ;;  %p266_p2 = scmp.eq.s32.totalorder %s1927_s21, 1 }
  0x10   : > { %p271_p3 = scmp.ne.s32.totalorder %s1832_s18, %s1828_s17  ;;  %p272_p4 = scmp.eq.s32.totalorder %s1593_s22, 1 }
  0x11   : > { %s1942_s26 = scalar_select %p253_p1, %s1836_s19, %s255_s24  }
  0x12   : > { %p1944_p5 = por %p266_p2, %p265_p0  ;;  %p1948_p6 = por %p272_p4, %p271_p3 }
  0x13   : > { %p1596_p7 = scmp.ge.s32.totalorder %s1840_s20, 1  ;;  %p356_p8 = scmp.lt.s32.totalorder %s1840_s20, 3 }
  0x15   : > { %p357_p9 = pnand %p1596_p7, %p356_p8 }
  0x16   : > { %p406_p10 = scmp.lt.s32.totalorder (!%p357_p9), %s1927_s21, 1  ;;  %s2773_s0 = sld [smem:[#allocation9_spill]] (!%p357_p9) }
  0x17   : > { %360 = sbr.rel (%p357_p9) target bundleno = 736 (0x2e0), region = 60  ;;  %s2774_s1 = sld [smem:[#allocation10_spill]] (!%p357_p9) }
  0x18   : > { %s2775_s2 = sld [smem:[#allocation11_spill]] (!%p357_p9)  ;;  %s2645_s15 = sand.u32 (!%p357_p9), 1, %s1832_s18  }
  0x19   : > { %s2776_s3 = sld [smem:[#allocation12_spill]] (!%p357_p9)  ;;  %s1597_s16 = sshll.u32 (!%p357_p9), %s2645_s15, 6 }
  0x1a   : > { %s2777_s4 = sld [smem:[#allocation13_spill]] (!%p357_p9)  ;;  %s2651_s24 = scalar_lea.vmem (!%p357_p9), [#allocation3], %s1597_s16 }
  0x1b   : > { %s2778_s5 = sld [smem:[#allocation14_spill]] (!%p357_p9)  ;;  %s2656_s25 = scalar_lea.vmem (!%p357_p9), [#allocation5], %s1597_s16 }
  0x1c   : > { %vm441_vm0 = vcmask 261120   ;;  %vm443_vm1 = vcmask 254976   ;;  %v1842_v0 = vmov 0.0   ;;  %s407_s29 = scalar_select %p406_p10, %s1927_s21, 1  ;;  %vm545_vm2 = vcmask 1046528  }
  0x1d   : > { %451 = vst.msk [vmem:[#allocation2 + $0x40] sm:$0xff] %vm441_vm0, %v1842_v0  ;;  %vm619_vm3 = vcmask 1045504   ;;  %s1466_s16 = sshll.u32 %s2651_s24, 4  ;;  %s2698_s16 = int_to_ptr.vmem [resolvable:$true] %s1466_s16 }
  0x1e   : > { %452 = vst.msk [vmem:[#allocation2 + $0x48] sm:$0x3] %vm443_vm1, %v1842_v0  ;;  %s1643_s30 = sshll.u32 %s407_s29, 6  ;;  %v492_v1 = vld [vmem:[%s2775_s2] sm:$0x7]  ;;  %s1651_s29 = sshll.u32 %s1927_s21, 6 }
  0x1f   : > { %453 = vst.msk [vmem:[#allocation2 + $0x50] sm:$0xff] %vm441_vm0, %v1842_v0  ;;  %s1967_s14 = scalar_lea.vmem %s2773_s0, %s1643_s30  ;;  %s1972_s22 = scalar_lea.vmem %s2774_s1, %s1643_s30  ;;  %v493_v11 = vld [vmem:[%s2775_s2 + $0x4] sm:$0x7]  ;;  %v494_v12 = vld [vmem:[%s2775_s2 + $0x8] sm:$0x7]  ;;  %v1997_v13 = vperm.slane %v492_v1, 0 }
  0x20   : > { %454 = vst.msk [vmem:[#allocation2 + $0x58] sm:$0x3] %vm443_vm1, %v1842_v0  ;;  %v420_v2 = vld [vmem:[%s1967_s14 + $0x18] sm:$0xff]  ;;  %v421_v3 = vld [vmem:[%s1967_s14 + $0x20] sm:$0xff]  ;;  %v422_v4 = vld [vmem:[%s1967_s14 + $0x28] sm:$0xff]  ;;  %v1999_v14 = vperm.slane %v492_v1, 1  ;;  %s1465_s13 = scalar_lea.hbm %s2763_s10, %s1651_s29  ;;  %s1482_s0 = scalar_lea.hbm %s2764_s11, %s1651_s29 }
  0x21   : > { %455 = vst.msk [vmem:[#allocation2 + $0x60] sm:$0xff] %vm441_vm0, %v1842_v0  ;;  %v428_v5 = vld [vmem:[%s1972_s22 + $0x18] sm:$0xff]  ;;  %v429_v6 = vld [vmem:[%s1972_s22 + $0x20] sm:$0xff]  ;;  %v430_v7 = vld [vmem:[%s1972_s22 + $0x28] sm:$0xff]  ;;  %v2009_v18 = vperm.slane %v492_v1, 2  ;;  %v2018_v24 = vperm.slane %v493_v11, 0 }
  0x22   : > { %456 = vst.msk [vmem:[#allocation2 + $0x68] sm:$0x3] %vm443_vm1, %v1842_v0  ;;  %v436_v8 = vadd.f32 %v428_v5, %v420_v2  ;;  %v437_v9 = vadd.f32 %v429_v6, %v421_v3  ;;  %v438_v10 = vadd.f32 %v430_v7, %v422_v4  ;;  %v418_v15 = vld [vmem:[%s1967_s14 + $0x8] sm:$0xff]  ;;  %v419_v16 = vld [vmem:[%s1967_s14 + $0x10] sm:$0xff]  ;;  %v417_v20 = vld [vmem:[%s1967_s14] sm:$0xff]  ;;  %v2020_v25 = vperm.slane %v493_v11, 1 }
  0x23   : > { %442 = vst.msk [vmem:[#allocation2] sm:$0xff] %vm441_vm0, %v1842_v0  ;;  %v426_v17 = vld [vmem:[%s1972_s22 + $0x8] sm:$0xff]  ;;  %v427_v19 = vld [vmem:[%s1972_s22 + $0x10] sm:$0xff]  ;;  %v425_v21 = vld [vmem:[%s1972_s22] sm:$0xff]  ;;  %v2022_v26 = vperm.slane %v493_v11, 2  ;;  %v2024_v27 = vperm.slane %v494_v12, 0 }
  0x24   : > { %444 = vst.msk [vmem:[#allocation2 + $0x8] sm:$0x3] %vm443_vm1, %v1842_v0  ;;  %v423_v22 = vld [vmem:[%s1967_s14 + $0x30] sm:$0xff]  ;;  %v2028_v29 = vperm.slane %v494_v12, 1  ;;  %v2030_v30 = vperm.slane %v494_v12, 2  ;;  %v434_v31 = vadd.f32 %v426_v17, %v418_v15  ;;  %v435_v34 = vadd.f32 %v427_v19, %v419_v16  ;;  %s1468_s1 = sshll.u32 %s1465_s13, 4  ;;  %s1469_s1 = int_to_ptr.hbm [resolvable:$true] %s1468_s1 }
  0x25   : > { %445 = vst.msk [vmem:[#allocation2 + $0x10] sm:$0xff] %vm441_vm0, %v1842_v0  ;;  %v431_v23 = vld [vmem:[%s1972_s22 + $0x30] sm:$0xff]  ;;  %v433_v35 = vadd.f32 %v425_v21, %v417_v20  ;;  %s1483_s21 = sshll.u32 %s2656_s25, 4  ;;  %s1485_s2 = sshll.u32 %s1482_s0, 4  ;;  %s2704_s21 = int_to_ptr.vmem [resolvable:$true] %s1483_s21  ;;  %s2706_s2 = int_to_ptr.hbm [resolvable:$true] %s1485_s2 }
  0x26   : > { %467 = vst.msk [vmem:[#allocation2 + $0x41] sm:$0xff] %vm441_vm0, %v436_v8  ;;  %v439_v37 = vadd.f32 %v431_v23, %v423_v22  ;;  %s1449_s30 = scalar_lea.sflag [#allocation4], %s2645_s15  ;;  %s1760_s12 = sshra.s32 %s1469_s1, 4  ;;  %s1761_s12 = int_to_ptr.hbm [resolvable:$true] %s1760_s12 }
  0x27   : > { %468 = vst.msk [vmem:[#allocation2 + $0x51] sm:$0xff] %vm441_vm0, %v437_v9  ;;  %s1762_s29 = scalar_lea.hbm %s1761_s12, 64  ;;  %p1767_p0 = scmp.lt.s32.totalorder %s1761_s12, %s2763_s10 }
  0x28   : > { %469 = vst.msk [vmem:[#allocation2 + $0x61] sm:$0xff] %vm441_vm0, %v438_v10  ;;  %p1763_p11 = scmp.ne.s32.totalorder %s1761_s12, %s1762_s29 }
  0x29   : > { %446 = vst.msk [vmem:[#allocation2 + $0x18] sm:$0x3] %vm443_vm1, %v1842_v0 }
  0x2a   : > { %447 = vst.msk [vmem:[#allocation2 + $0x20] sm:$0xff] %vm441_vm0, %v1842_v0  ;;  %v472_v28 = vld [vmem:[#allocation2] sm:$0xff]  ;;  %p1764_p12 = pnand %p1763_p11, %p1944_p5 }
  0x2b   : > { %448 = vst.msk [vmem:[#allocation2 + $0x28] sm:$0x3] %vm443_vm1, %v1842_v0  ;;  %v473_v32 = vld [vmem:[#allocation2 + $0x8] sm:$0x3]  ;;  %v2035_v33 = vmul.f32 %v1999_v14, %v472_v28  ;;  %v2040_v36 = vmul.f32 %v1997_v13, %v472_v28  ;;  %v2053_v42 = vmul.f32 %v2009_v18, %v472_v28 }
  0x2c   : > { %449 = vst.msk [vmem:[#allocation2 + $0x30] sm:$0xff] %vm441_vm0, %v1842_v0  ;;  %v2049_v40 = vmul.f32 %v1999_v14, %v473_v32  ;;  %v2056_v43 = vmul.f32 %v2009_v18, %v473_v32  ;;  %p1765_p13 = pneg %p1764_p12 }
  0x2d   : > { %v2042_v38 = vld [vmem:[#allocation2 + $0x40] sm:$0xff]  ;;  %v2044_v39 = vld [vmem:[#allocation2 + $0x48] sm:$0x3]  ;;  %450 = vst.msk [vmem:[#allocation2 + $0x38] sm:$0x3] %vm443_vm1, %v1842_v0  ;;  %v546_v41 = vrot.slane %v2035_v33, 1 }
  0x2e   : > { %v2058_v44 = vld [vmem:[#allocation2 + $0x50] sm:$0xff]  ;;  %v2060_v45 = vld [vmem:[#allocation2 + $0x58] sm:$0x3]  ;;  %v500_v46 = vmul.f32 %v1997_v13, %v2042_v38  ;;  %v521_v47 = vmul.f32 %v1999_v14, %v2042_v38  ;;  %v522_v48 = vmul.f32 %v1999_v14, %v2044_v39  ;;  %v595_v49 = vmul.f32 %v2009_v18, %v2042_v38  ;;  %457 = vst.msk [vmem:[#allocation2 + $0x70] sm:$0xff] %vm441_vm0, %v1842_v0 }
  0x2f   : > { %v2072_v50 = vld [vmem:[#allocation2 + $0x60] sm:$0xff]  ;;  %v596_v51 = vmul.f32 %v2009_v18, %v2044_v39  ;;  %v665_v52 = vmul.f32 %v2018_v24, %v2058_v44  ;;  %v686_v53 = vmul.f32 %v2020_v25, %v2058_v44  ;;  %v687_v54 = vmul.f32 %v2020_v25, %v2060_v45  ;;  %458 = vst.msk [vmem:[#allocation2 + $0x78] sm:$0x3] %vm443_vm1, %v1842_v0  ;;  %v2084_v55 = vld [vmem:[#allocation2 + $0x68] sm:$0x3] }
  0x30   : > { %v558_v56 = vrot.slane %v521_v47, 1  ;;  %v559_v57 = vrot.slane %v522_v48, 1  ;;  %v632_v58 = vrot.slane %v595_v49, 2  ;;  %v759_v59 = vmul.f32 %v2022_v26, %v2058_v44  ;;  %459 = vst.msk [vmem:[#allocation2 + $0x80] sm:$0xff] %vm441_vm0, %v1842_v0 }
  0x31   : > { %v633_v60 = vrot.slane %v596_v51, 2  ;;  %v722_v61 = vrot.slane %v686_v53, 1  ;;  %v723_v62 = vrot.slane %v687_v54, 1  ;;  %v760_v63 = vmul.f32 %v2022_v26, %v2060_v45  ;;  %460 = vst.msk [vmem:[#allocation2 + $0x88] sm:$0x3] %vm443_vm1, %v1842_v0 }
  0x32   : > { %v560_v1 = vsel %vm545_vm2, %v558_v56, %v559_v57  ;;  %v795_v2 = vrot.slane %v759_v59, 2  ;;  %v828_v3 = vmul.f32 %v2024_v27, %v2072_v50  ;;  %v849_v4 = vmul.f32 %v2028_v29, %v2072_v50  ;;  %461 = vst.msk [vmem:[#allocation2 + $0x90] sm:$0xff] %vm441_vm0, %v1842_v0 }
  0x33   : > { %v582_v5 = vadd.f32 %v560_v1, %v500_v46  ;;  %v634_v6 = vsel %vm619_vm3, %v632_v58, %v633_v60  ;;  %v724_v7 = vsel %vm545_vm2, %v722_v61, %v723_v62  ;;  %v796_v8 = vrot.slane %v760_v63, 2  ;;  %462 = vst.msk [vmem:[#allocation2 + $0x98] sm:$0x3] %vm443_vm1, %v1842_v0 }
  0x34   : > { %v850_v9 = vmul.f32 %v2028_v29, %v2084_v55  ;;  %v885_v10 = vrot.slane %v849_v4, 1  ;;  %v922_v11 = vmul.f32 %v2030_v30, %v2072_v50  ;;  %v923_v12 = vmul.f32 %v2030_v30, %v2084_v55  ;;  %465 = vst.msk [vmem:[#allocation2 + $0x21] sm:$0xff] %vm441_vm0, %v434_v31 }
  0x35   : > { %v656_v15 = vadd.f32 %v634_v6, %v582_v5  ;;  %v797_v16 = vsel %vm619_vm3, %v795_v2, %v796_v8  ;;  %466 = vst.msk [vmem:[#allocation2 + $0x31] sm:$0xff] %vm441_vm0, %v435_v34  ;;  %v2116_v0 = vmul.f32 %v2024_v27, %v2042_v38  ;;  %v845_v17 = vmul.f32 %v2028_v29, %v2042_v38  ;;  %v2176_v5 = vld [vmem:[%s2776_s3] ss:$0 sm:$0xff] }
  0x36   : > { %v886_v19 = vrot.slane %v850_v9, 1  ;;  %v958_v20 = vrot.slane %v922_v11, 2  ;;  %v959_v21 = vrot.slane %v923_v12, 2  ;;  %v846_v22 = vmul.f32 %v2028_v29, %v2044_v39  ;;  %464 = vst.msk [vmem:[#allocation2 + $0x11] sm:$0xff] %vm441_vm0, %v433_v35 }
  0x37   : > { %v673_v23 = vadd.f32 %v665_v52, %v656_v15  ;;  %v879_v28 = vrot.slane %v845_v17, 1  ;;  %v918_v31 = vmul.f32 %v2030_v30, %v2042_v38  ;;  %v919_v32 = vmul.f32 %v2030_v30, %v2044_v39  ;;  %470 = vst.msk [vmem:[#allocation2 + $0x71] sm:$0xff] %vm441_vm0, %v439_v37 }
  0x38   : > { %v887_v34 = vsel %vm545_vm2, %v885_v10, %v886_v19  ;;  %v960_v46 = vsel %vm619_vm3, %v958_v20, %v959_v21  ;;  %v880_v47 = vrot.slane %v846_v22, 1  ;;  %v547_v48 = vrot.slane %v2049_v40, 1 }
  0x39   : > { %v746_v49 = vadd.f32 %v724_v7, %v673_v23  ;;  %v952_v51 = vrot.slane %v918_v31, 2  ;;  %v953_v35 = vrot.slane %v919_v32, 2  ;;  %v620_v52 = vrot.slane %v2053_v42, 2 }
  0x3a   : > { %v2133_v53 = vsel %vm545_vm2, %v879_v28, %v880_v47  ;;  %v548_v54 = vsel %vm545_vm2, %v546_v41, %v547_v48  ;;  %v621_v37 = vrot.slane %v2056_v43, 2  ;;  %v2141_v56 = vmul.f32 %v1997_v13, %v2058_v44 }
  0x3b   : > { %v819_v57 = vadd.f32 %v797_v16, %v746_v49  ;;  %v2143_v40 = vld [vmem:[#allocation2 + $0x20] sm:$0xff]  ;;  %v2145_v58 = vld [vmem:[#allocation2 + $0x28] sm:$0x3]  ;;  %v2148_v42 = vsel %vm619_vm3, %v952_v51, %v953_v35  ;;  %v578_v59 = vadd.f32 %v548_v54, %v2040_v36  ;;  %v2153_v33 = vmul.f32 %v1999_v14, %v2058_v44 }
  0x3c   : > { %v2155_v41 = vld [vmem:[#allocation2 + $0x30] sm:$0xff]  ;;  %v2157_v43 = vld [vmem:[#allocation2 + $0x38] sm:$0x3]  ;;  %v498_v60 = vmul.f32 %v1997_v13, %v2143_v40  ;;  %v517_v61 = vmul.f32 %v1999_v14, %v2143_v40  ;;  %v518_v62 = vmul.f32 %v1999_v14, %v2145_v58  ;;  %v591_v36 = vmul.f32 %v2009_v18, %v2143_v40 }
  0x3d   : > { %v836_v63 = vadd.f32 %v828_v3, %v819_v57  ;;  %v592_v1 = vmul.f32 %v2009_v18, %v2145_v58  ;;  %v663_v2 = vmul.f32 %v2018_v24, %v2155_v41  ;;  %v682_v4 = vmul.f32 %v2020_v25, %v2155_v41  ;;  %v2182_v15 = vld [vmem:[#allocation2 + $0x10] sm:$0xff]  ;;  %v2184_v16 = vld [vmem:[#allocation2 + $0x18] sm:$0x3] }
  0x3e   : > { %v552_v6 = vrot.slane %v517_v61, 1  ;;  %v553_v7 = vrot.slane %v518_v62, 1  ;;  %v626_v8 = vrot.slane %v591_v36, 2  ;;  %v683_v3 = vmul.f32 %v2020_v25, %v2157_v43 }
  0x3f   : > { %v909_v9 = vadd.f32 %v887_v34, %v836_v63  ;;  %v627_v10 = vrot.slane %v592_v1, 2  ;;  %v716_v11 = vrot.slane %v682_v4, 1  ;;  %v755_v12 = vmul.f32 %v2022_v26, %v2155_v41 }
  0x40   : > { %v554_v17 = vsel %vm545_vm2, %v552_v6, %v553_v7  ;;  %v717_v19 = vrot.slane %v683_v3, 1  ;;  %v756_v20 = vmul.f32 %v2022_v26, %v2157_v43  ;;  %v2191_v21 = vmul.f32 %v1999_v14, %v2184_v16 }
  0x41   : > { %v982_v22 = vadd.f32 %v960_v46, %v909_v9  ;;  %v580_v23 = vadd.f32 %v554_v17, %v498_v60  ;;  %v628_v28 = vsel %vm619_vm3, %v626_v8, %v627_v10  ;;  %v789_v31 = vrot.slane %v755_v12, 2 }
  0x42   : > { %v718_v32 = vsel %vm545_vm2, %v716_v11, %v717_v19  ;;  %v790_v34 = vrot.slane %v756_v20, 2  ;;  %v622_v47 = vsel %vm619_vm3, %v620_v52, %v621_v37  ;;  %v661_v48 = vmul.f32 %v2018_v24, %v2182_v15 }
  0x43   : > { %v2199_v49 = vadd.f32 %v2176_v5, %v982_v22  ;;  %v654_v51 = vadd.f32 %v628_v28, %v580_v23  ;;  %v652_v35 = vadd.f32 %v622_v47, %v578_v59  ;;  %v678_v46 = vmul.f32 %v2020_v25, %v2182_v15 }
  0x44   : > { %v791_v54 = vsel %vm619_vm3, %v789_v31, %v790_v34  ;;  %v679_v57 = vmul.f32 %v2020_v25, %v2184_v16  ;;  %v751_v60 = vmul.f32 %v2022_v26, %v2182_v15  ;;  %v752_v52 = vmul.f32 %v2022_v26, %v2184_v16 }
  0x45   : > { %v1010_v37 = vsel %vm441_vm0, %v2199_v49, 0.0  ;;  %v671_v61 = vadd.f32 %v663_v2, %v654_v51  ;;  %v669_v62 = vadd.f32 %v661_v48, %v652_v35  ;;  %v710_v59 = vrot.slane %v678_v46, 1  ;;  %v2232_v35 = vld [vmem:[#allocation2 + $0x70] sm:$0xff] }
  0x46   : > { %1011 = vadd.xlane.f32.xlu1 %v1010_v37  ;;  %v711_v36 = vrot.slane %v679_v57, 1  ;;  %v783_v63 = vrot.slane %v751_v60, 2  ;;  %v784_v1 = vrot.slane %v752_v52, 2  ;;  %v824_v4 = vmul.f32 %v2024_v27, %v2143_v40 }
  0x47   : > { %v744_v6 = vadd.f32 %v718_v32, %v671_v61  ;;  %v841_v7 = vmul.f32 %v2028_v29, %v2143_v40  ;;  %v842_v8 = vmul.f32 %v2028_v29, %v2145_v58  ;;  %v914_v3 = vmul.f32 %v2030_v30, %v2143_v40 }
  0x48   : > { %v712_v2 = vsel %vm545_vm2, %v710_v59, %v711_v36  ;;  %v785_v9 = vsel %vm619_vm3, %v783_v63, %v784_v1  ;;  %v915_v10 = vmul.f32 %v2030_v30, %v2145_v58  ;;  %v524_v11 = vmul.f32 %v1999_v14, %v2060_v45  ;;  %v2248_v1 = vld [vmem:[#allocation2 + $0x78] sm:$0x3] }
  0x49   : > { %v817_v12 = vadd.f32 %v791_v54, %v744_v6  ;;  %v742_v17 = vadd.f32 %v712_v2, %v669_v62  ;;  %v873_v19 = vrot.slane %v841_v7, 1  ;;  %v874_v20 = vrot.slane %v842_v8, 1 }
  0x4a   : > { %v946_v22 = vrot.slane %v914_v3, 2  ;;  %v947_v23 = vrot.slane %v915_v10, 2  ;;  %v561_v28 = vrot.slane %v2153_v33, 1  ;;  %v562_v31 = vrot.slane %v524_v11, 1 }
  0x4b   : > { %v834_v32 = vadd.f32 %v2116_v0, %v817_v12  ;;  %v815_v34 = vadd.f32 %v785_v9, %v742_v17  ;;  %v875_v47 = vsel %vm545_vm2, %v873_v19, %v874_v20  ;;  %v597_v48 = vmul.f32 %v2009_v18, %v2058_v44 }
  0x4c   : > { %v948_v51 = vsel %vm619_vm3, %v946_v22, %v947_v23  ;;  %v563_v46 = vsel %vm545_vm2, %v561_v28, %v562_v31  ;;  %v598_v54 = vmul.f32 %v2009_v18, %v2060_v45  ;;  %v666_v33 = vmul.f32 %v2018_v24, %v2072_v50 }
  0x4d   : > { %v907_v0 = vadd.f32 %v2133_v53, %v834_v32  ;;  %v832_v57 = vadd.f32 %v824_v4, %v815_v34  ;;  %v583_v60 = vadd.f32 %v563_v46, %v2141_v56  ;;  %v635_v52 = vrot.slane %v597_v48, 2 }
  0x4e   : > { %v636_v37 = vrot.slane %v598_v54, 2  ;;  %v688_v61 = vmul.f32 %v2020_v25, %v2072_v50  ;;  %v689_v62 = vmul.f32 %v2020_v25, %v2084_v55  ;;  %v761_v59 = vmul.f32 %v2022_v26, %v2072_v50 }
  0x4f   : > { %v980_v36 = vadd.f32 %v2148_v42, %v907_v0  ;;  %v905_v63 = vadd.f32 %v875_v47, %v832_v57  ;;  %v762_v53 = vmul.f32 %v2022_v26, %v2084_v55  ;;  %v829_v56 = vmul.f32 %v2024_v27, %v2232_v35 }
  0x50   : > { %v637_v4 = vsel %vm619_vm3, %v635_v52, %v636_v37  ;;  %v725_v6 = vrot.slane %v688_v61, 1  ;;  %v726_v7 = vrot.slane %v689_v62, 1  ;;  %v798_v8 = vrot.slane %v761_v59, 2 }
  0x51   : > { %v2256_v3 = vadd.f32 %v2176_v5, %v980_v36  ;;  %v978_v2 = vadd.f32 %v948_v51, %v905_v63  ;;  %v657_v9 = vadd.f32 %v637_v4, %v583_v60  ;;  %v799_v42 = vrot.slane %v762_v53, 2 }
  0x52   : > { %v727_v10 = vsel %vm545_vm2, %v725_v6, %v726_v7  ;;  %v851_v11 = vmul.f32 %v2028_v29, %v2232_v35  ;;  %v852_v12 = vmul.f32 %v2028_v29, %v2248_v1  ;;  %v924_v17 = vmul.f32 %v2030_v30, %v2232_v35 }
  0x53   : > { %v1004_v19 = vsel %vm441_vm0, %v2256_v3, 0.0  ;;  %v2268_v20 = vadd.f32 %v2176_v5, %v978_v2  ;;  %v674_v22 = vadd.f32 %v666_v33, %v657_v9  ;;  %v800_v23 = vsel %vm619_vm3, %v798_v8, %v799_v42 }
  0x54   : > { %1005 = vadd.xlane.f32.xlu0 %v1004_v19  ;;  %v888_v28 = vrot.slane %v851_v11, 1  ;;  %v889_v31 = vrot.slane %v852_v12, 1  ;;  %v925_v32 = vmul.f32 %v2030_v30, %v2248_v1  ;;  %v961_v34 = vrot.slane %v924_v17, 2 }
  0x55   : > { %v998_v47 = vsel %vm441_vm0, %v2268_v20, 0.0  ;;  %v747_v48 = vadd.f32 %v727_v10, %v674_v22  ;;  %v499_v51 = vmul.f32 %v1997_v13, %v2155_v41  ;;  %v519_v46 = vmul.f32 %v1999_v14, %v2155_v41 }
  0x56   : > { %999 = vadd.xlane.f32.xlu2 %v998_v47  ;;  %v890_v54 = vsel %vm545_vm2, %v888_v28, %v889_v31  ;;  %v962_v33 = vrot.slane %v925_v32, 2  ;;  %v520_v0 = vmul.f32 %v1999_v14, %v2157_v43  ;;  %v593_v57 = vmul.f32 %v2009_v18, %v2155_v41 }
  0x57   : > { %v820_v60 = vadd.f32 %v800_v23, %v747_v48  ;;  %v555_v52 = vrot.slane %v519_v46, 1  ;;  %v594_v37 = vmul.f32 %v2009_v18, %v2157_v43  ;;  %v664_v61 = vmul.f32 %v2018_v24, %v2042_v38 }
  0x58   : > { %v963_v62 = vsel %vm619_vm3, %v961_v34, %v962_v33  ;;  %v556_v59 = vrot.slane %v520_v0, 1  ;;  %v629_v36 = vrot.slane %v593_v57, 2  ;;  %v684_v63 = vmul.f32 %v2020_v25, %v2042_v38 }
  0x59   : > { %v837_v53 = vadd.f32 %v829_v56, %v820_v60  ;;  %v630_v4 = vrot.slane %v594_v37, 2  ;;  %v685_v6 = vmul.f32 %v2020_v25, %v2044_v39  ;;  %v757_v7 = vmul.f32 %v2022_v26, %v2042_v38 }
  0x5a   : > { %v557_v8 = vsel %vm545_vm2, %v555_v52, %v556_v59  ;;  %v719_v2 = vrot.slane %v684_v63, 1  ;;  %v758_v9 = vmul.f32 %v2022_v26, %v2044_v39  ;;  %v827_v42 = vmul.f32 %v2024_v27, %v2058_v44 }
  0x5b   : > { %v910_v10 = vadd.f32 %v890_v54, %v837_v53  ;;  %v581_v11 = vadd.f32 %v557_v8, %v499_v51  ;;  %v631_v56 = vsel %vm619_vm3, %v629_v36, %v630_v4  ;;  %v720_v12 = vrot.slane %v685_v6, 1 }
  0x5c   : > { %v792_v17 = vrot.slane %v757_v7, 2  ;;  %v793_v19 = vrot.slane %v758_v9, 2  ;;  %v847_v22 = vmul.f32 %v2028_v29, %v2058_v44  ;;  %v848_v38 = vmul.f32 %v2028_v29, %v2060_v45 }
  0x5d   : > { %v983_v23 = vadd.f32 %v963_v62, %v910_v10  ;;  %v655_v28 = vadd.f32 %v631_v56, %v581_v11  ;;  %v721_v39 = vsel %vm545_vm2, %v719_v2, %v720_v12  ;;  %v920_v31 = vmul.f32 %v2030_v30, %v2058_v44 }
  0x5e   : > { %v794_v32 = vsel %vm619_vm3, %v792_v17, %v793_v19  ;;  %v882_v34 = vrot.slane %v847_v22, 1  ;;  %v883_v47 = vrot.slane %v848_v38, 1  ;;  %v921_v48 = vmul.f32 %v2030_v30, %v2060_v45  ;;  %v424_v22 = vld [vmem:[%s1967_s14 + $0x38] sm:$0xff]  ;;  %s1766_s14 = scalar_lea.hbm %s2763_s10, 128 }
  0x5f   : > { %v2312_v51 = vadd.f32 %v2176_v5, %v983_v23  ;;  %v672_v46 = vadd.f32 %v664_v61, %v655_v28  ;;  %v955_v54 = vrot.slane %v920_v31, 2  ;;  %v497_v33 = vmul.f32 %v1997_v13, %v2182_v15  ;;  %v432_v38 = vld [vmem:[%s1972_s22 + $0x38] sm:$0xff]  ;;  %p1768_p1 = scmp.lt.s32.totalorder %s1766_s14, %s1762_s29 }
  0x60   : > { %v884_v0 = vsel %vm545_vm2, %v882_v34, %v883_v47  ;;  %v956_v57 = vrot.slane %v921_v48, 2  ;;  %v515_v44 = vmul.f32 %v1999_v14, %v2182_v15  ;;  %v550_v60 = vrot.slane %v2191_v21, 1 }
  0x61   : > { %v1013_v52 = vsel %vm441_vm0, %v2312_v51, 0.0  ;;  %v745_v45 = vadd.f32 %v721_v39, %v672_v46  ;;  %v589_v37 = vmul.f32 %v2009_v18, %v2182_v15  ;;  %v590_v61 = vmul.f32 %v2009_v18, %v2184_v16  ;;  %p1769_p2 = por %p1768_p1, %p1767_p0 }
  0x62   : > { %1014 = vadd.xlane.f32.xlu1 %v1013_v52  ;;  %v957_v62 = vsel %vm619_vm3, %v955_v54, %v956_v57  ;;  %v549_v59 = vrot.slane %v515_v44, 1  ;;  %v662_v36 = vmul.f32 %v2018_v24, %v2143_v40  ;;  %v680_v21 = vmul.f32 %v2020_v25, %v2143_v40 }
  0x63   : > { %v818_v63 = vadd.f32 %v794_v32, %v745_v45  ;;  %v623_v53 = vrot.slane %v589_v37, 2  ;;  %v624_v4 = vrot.slane %v590_v61, 2  ;;  %v681_v15 = vmul.f32 %v2020_v25, %v2145_v58  ;;  %p1770_p3 = pnand %p1769_p2, %p1765_p13 }
  0x64   : > { %v551_v16 = vsel %vm545_vm2, %v549_v59, %v550_v60  ;;  %v713_v6 = vrot.slane %v680_v21, 1  ;;  %v753_v7 = vmul.f32 %v2022_v26, %v2143_v40  ;;  %v754_v8 = vmul.f32 %v2022_v26, %v2145_v58 }
  0x65   : > { %v835_v2 = vadd.f32 %v827_v42, %v818_v63  ;;  %v579_v9 = vadd.f32 %v551_v16, %v497_v33  ;;  %v625_v10 = vsel %vm619_vm3, %v623_v53, %v624_v4  ;;  %v714_v11 = vrot.slane %v681_v15, 1 }
  0x66   : > { %v786_v56 = vrot.slane %v753_v7, 2  ;;  %v787_v12 = vrot.slane %v754_v8, 2  ;;  %v825_v17 = vmul.f32 %v2024_v27, %v2155_v41  ;;  %v843_v19 = vmul.f32 %v2028_v29, %v2155_v41 }
  0x67   : > { %v908_v23 = vadd.f32 %v884_v0, %v835_v2  ;;  %v653_v40 = vadd.f32 %v625_v10, %v579_v9  ;;  %v715_v28 = vsel %vm545_vm2, %v713_v6, %v714_v11  ;;  %v844_v58 = vmul.f32 %v2028_v29, %v2157_v43 }
  0x68   : > { %v788_v42 = vsel %vm619_vm3, %v786_v56, %v787_v12  ;;  %v876_v39 = vrot.slane %v843_v19, 1  ;;  %v916_v31 = vmul.f32 %v2030_v30, %v2155_v41  ;;  %v917_v32 = vmul.f32 %v2030_v30, %v2157_v43 }
  0x69   : > { %v981_v34 = vadd.f32 %v957_v62, %v908_v23  ;;  %v670_v47 = vadd.f32 %v662_v36, %v653_v40  ;;  %v877_v48 = vrot.slane %v844_v58, 1  ;;  %v440_v46 = vadd.f32 %v432_v38, %v424_v22 }
  0x6a   : > { %v949_v54 = vrot.slane %v916_v31, 2  ;;  %v950_v33 = vrot.slane %v917_v32, 2  ;;  %v502_v0 = vmul.f32 %v1997_v13, %v2072_v50  ;;  %v525_v57 = vmul.f32 %v1999_v14, %v2072_v50 }
  0x6b   : > { %v2358_v44 = vadd.f32 %v2176_v5, %v981_v34  ;;  %v743_v60 = vadd.f32 %v715_v28, %v670_v47  ;;  %v878_v41 = vsel %vm545_vm2, %v876_v39, %v877_v48  ;;  %471 = vst.msk [vmem:[#allocation2 + $0x81] sm:$0xff] %vm441_vm0, %v440_v46  ;;  %v526_v43 = vmul.f32 %v1999_v14, %v2084_v55 }
  0x6c   : > { %v951_v52 = vsel %vm619_vm3, %v949_v54, %v950_v33  ;;  %v564_v45 = vrot.slane %v525_v57, 1  ;;  %v599_v37 = vmul.f32 %v2009_v18, %v2072_v50  ;;  %v600_v61 = vmul.f32 %v2009_v18, %v2084_v55 }
  0x6d   : > { %v1007_v62 = vsel %vm441_vm0, %v2358_v44, 0.0  ;;  %v816_v59 = vadd.f32 %v788_v42, %v743_v60  ;;  %v565_v36 = vrot.slane %v526_v43, 1  ;;  %v667_v21 = vmul.f32 %v2018_v24, %v2232_v35 }
  0x6e   : > { %1008 = vadd.xlane.f32.xlu0 %v1007_v62  ;;  %v638_v63 = vrot.slane %v599_v37, 2  ;;  %v639_v53 = vrot.slane %v600_v61, 2  ;;  %v690_v4 = vmul.f32 %v2020_v25, %v2232_v35  ;;  %v691_v50 = vmul.f32 %v2020_v25, %v2248_v1  ;;  %v490_v61 = vld [vmem:[#allocation2 + $0x90] sm:$0xff] }
  0x6f   : > { %v833_v15 = vadd.f32 %v825_v17, %v816_v59  ;;  %v566_v55 = vsel %vm545_vm2, %v564_v45, %v565_v36  ;;  %v763_v16 = vmul.f32 %v2022_v26, %v2232_v35  ;;  %v764_v6 = vmul.f32 %v2022_v26, %v2248_v1 }
  0x70   : > { %v584_v7 = vadd.f32 %v566_v55, %v502_v0  ;;  %v640_v8 = vsel %vm619_vm3, %v638_v63, %v639_v53  ;;  %v728_v2 = vrot.slane %v690_v4, 1  ;;  %v729_v9 = vrot.slane %v691_v50, 1  ;;  %v491_v4 = vld [vmem:[#allocation2 + $0x98] sm:$0x3] }
  0x71   : > { %v906_v10 = vadd.f32 %v878_v41, %v833_v15  ;;  %v801_v11 = vrot.slane %v763_v16, 2  ;;  %v802_v56 = vrot.slane %v764_v6, 2  ;;  %v503_v12 = vmul.f32 %v1997_v13, %v2232_v35 }
  0x72   : > { %v488_v17 = vld [vmem:[#allocation2 + $0x80] sm:$0xff]  ;;  %v489_v19 = vld [vmem:[#allocation2 + $0x88] sm:$0x3]  ;;  %v658_v22 = vadd.f32 %v640_v8, %v584_v7  ;;  %v730_v38 = vsel %vm545_vm2, %v728_v2, %v729_v9  ;;  %v527_v23 = vmul.f32 %v1999_v14, %v2232_v35  ;;  %v528_v40 = vmul.f32 %v1999_v14, %v2248_v1 }
  0x73   : > { %v979_v28 = vadd.f32 %v951_v52, %v906_v10  ;;  %v803_v58 = vsel %vm619_vm3, %v801_v11, %v802_v56  ;;  %v830_v42 = vmul.f32 %v2024_v27, %v488_v17  ;;  %v853_v39 = vmul.f32 %v2028_v29, %v488_v17 }
  0x74   : > { %v675_v31 = vadd.f32 %v667_v21, %v658_v22  ;;  %v854_v13 = vmul.f32 %v2028_v29, %v489_v19  ;;  %v926_v32 = vmul.f32 %v2030_v30, %v488_v17  ;;  %v927_v34 = vmul.f32 %v2030_v30, %v489_v19 }
  0x75   : > { %v2397_v47 = vadd.f32 %v2176_v5, %v979_v28  ;;  %v891_v48 = vrot.slane %v853_v39, 1  ;;  %v567_v46 = vrot.slane %v527_v23, 1  ;;  %v568_v14 = vrot.slane %v528_v40, 1 }
  0x76   : > { %v748_v54 = vadd.f32 %v730_v38, %v675_v31  ;;  %v892_v33 = vrot.slane %v854_v13, 1  ;;  %v964_v0 = vrot.slane %v926_v32, 2  ;;  %v965_v57 = vrot.slane %v927_v34, 2 }
  0x77   : > { %v1001_v60 = vsel %vm441_vm0, %v2397_v47, 0.0  ;;  %v569_v41 = vsel %vm545_vm2, %v567_v46, %v568_v14  ;;  %v601_v43 = vmul.f32 %v2009_v18, %v2232_v35  ;;  %v602_v52 = vmul.f32 %v2009_v18, %v2248_v1 }
  0x78   : > { %1002 = vadd.xlane.f32.xlu2 %v1001_v60  ;;  %v821_v45 = vadd.f32 %v803_v58, %v748_v54  ;;  %v893_v37 = vsel %vm545_vm2, %v891_v48, %v892_v33  ;;  %v585_v62 = vadd.f32 %v569_v41, %v503_v12  ;;  %v668_v21 = vmul.f32 %v2018_v24, %v488_v17 }
  0x79   : > { %v641_v59 = vrot.slane %v601_v43, 2  ;;  %v642_v36 = vrot.slane %v602_v52, 2  ;;  %v692_v63 = vmul.f32 %v2020_v25, %v488_v17  ;;  %v693_v50 = vmul.f32 %v2020_v25, %v489_v19 }
  0x7a   : > { %v838_v53 = vadd.f32 %v830_v42, %v821_v45  ;;  %v765_v35 = vmul.f32 %v2022_v26, %v488_v17  ;;  %v766_v18 = vmul.f32 %v2022_v26, %v489_v19  ;;  %v966_v1 = vsel %vm619_vm3, %v964_v0, %v965_v57 }
  0x7b   : > { %v643_v15 = vsel %vm619_vm3, %v641_v59, %v642_v36  ;;  %v731_v55 = vrot.slane %v692_v63, 1  ;;  %v855_v16 = vmul.f32 %v2028_v29, %v490_v61  ;;  %v732_v24 = vrot.slane %v693_v50, 1 }
  0x7c   : > { %v911_v6 = vadd.f32 %v893_v37, %v838_v53  ;;  %v659_v7 = vadd.f32 %v643_v15, %v585_v62  ;;  %v804_v8 = vrot.slane %v765_v35, 2  ;;  %v805_v2 = vrot.slane %v766_v18, 2 }
  0x7d   : > { %v856_v9 = vmul.f32 %v2028_v29, %v491_v4  ;;  %v928_v25 = vmul.f32 %v2030_v30, %v490_v61  ;;  %v733_v26 = vsel %vm545_vm2, %v731_v55, %v732_v24  ;;  %v929_v56 = vmul.f32 %v2030_v30, %v491_v4 }
  0x7e   : > { %v984_v10 = vadd.f32 %v966_v1, %v911_v6  ;;  %v676_v11 = vadd.f32 %v668_v21, %v659_v7  ;;  %v806_v12 = vsel %vm619_vm3, %v804_v8, %v805_v2  ;;  %v894_v17 = vrot.slane %v855_v16, 1 }
  0x7f   : > { %v895_v19 = vrot.slane %v856_v9, 1  ;;  %v831_v23 = vmul.f32 %v2024_v27, %v490_v61  ;;  %v967_v40 = vrot.slane %v928_v25, 2  ;;  %v968_v29 = vrot.slane %v929_v56, 2 }
  0x80   : > { %v2421_v22 = vadd.f32 %v2176_v5, %v984_v10  ;;  %v749_v38 = vadd.f32 %v733_v26, %v676_v11  ;;  %v1843_v34 = vmov 32.0  }
  0x81   : > { %v896_v42 = vsel %vm545_vm2, %v894_v17, %v895_v19  ;;  %v969_v39 = vsel %vm619_vm3, %v967_v40, %v968_v29  ;;  %1712 = vrcp.f32 %v1843_v34 }
  0x82   : > { %v1016_v28 = vsel %vm441_vm0, %v2421_v22, 0.0  ;;  %v822_v58 = vadd.f32 %v806_v12, %v749_v38 }
  0x83   : > { %1017 = vadd.xlane.f32.xlu0 %v1016_v28 }
  0x84   : > { %v839_v30 = vadd.f32 %v831_v23, %v822_v58 }
  0x86   : > { %v912_v31 = vadd.f32 %v896_v42, %v839_v30 }
  0x87   : > { %v1713_v48 = vpop.eup %1712 }
  0x88   : > { %v985_v13 = vadd.f32 %v969_v39, %v912_v31  ;;  %v1023_v46 = vmul.f32 32.0, %v1713_v48  ;;  %vm1027_vm4 = vweird.f32 %v1713_v48 }
  0x8a   : > { %v2429_v32 = vadd.f32 %v2176_v5, %v985_v13  ;;  %v1024_v14 = vsub.f32 1.0, %v1023_v46 }
  0x8c   : > { %v1019_v27 = vsel %vm441_vm0, %v2429_v32, 0.0  ;;  %v1025_v54 = vmul.f32 %v1713_v48, %v1024_v14 }
  0x8d   : > { %1020 = vadd.xlane.f32.xlu1 %v1019_v27 }
  0x8e   : > { %v1026_v33 = vadd.f32 %v1713_v48, %v1025_v54 }
  0x90   : > { %v2433_v0 = vsel %vm1027_vm4, %v1713_v48, %v1026_v33 }
  0xb9   : > { %v1012_v57 = vpop.xlane.xlu1 %1011 }
  0xba   : > { %v1033_v60 = vmul.f32 %v2433_v0, %v1012_v57 }
  0xbc   : > { %v2437_v5 = vsub.f32 %v2199_v49, %v1033_v60 }
  0xbe   : > { %v1049_v41 = vmul.f32 %v2437_v5, %v2437_v5 }
  0xc0   : > { %v1065_v43 = vsel %vm441_vm0, %v1049_v41, 0.0  ;;  %v1646_v41 = vld [vmem:[%s2759_s6 + $0x8] sm:$0xff] }
  0xc1   : > { %1066 = vadd.xlane.f32.xlu1 %v1065_v43  ;;  %1653 = vmatpush.bf16.msra.mxu3 %v1646_v41 }
  0xc2   : > { %1247 = vmatpush.bf16.msra.mxu0 %v1646_v41 }
  0xc7   : > { %v1006_v52 = vpop.xlane.xlu0 %1005 }
  0xc8   : > { %v1031_v45 = vmul.f32 %v2433_v0, %v1006_v52 }
  0xc9   : > { %v1000_v4 = vpop.xlane.xlu2 %999 }
  0xca   : > { %v2444_v37 = vsub.f32 %v2256_v3, %v1031_v45  ;;  %v1029_v35 = vmul.f32 %v2433_v0, %v1000_v4 }
  0xcc   : > { %v1047_v61 = vmul.f32 %v2444_v37, %v2444_v37  ;;  %v2462_v15 = vsub.f32 %v2268_v20, %v1029_v35 }
  0xce   : > { %v1059_v62 = vsel %vm441_vm0, %v1047_v61, 0.0  ;;  %v1045_v6 = vmul.f32 %v2462_v15, %v2462_v15 }
  0xcf   : > { %1060 = vadd.xlane.f32.xlu2 %v1059_v62 }
  0xd0   : > { %v1053_v2 = vsel %vm441_vm0, %v1045_v6, 0.0 }
  0xd5   : > { %v1015_v59 = vpop.xlane.xlu1 %1014 }
  0xd6   : > { %v1034_v36 = vmul.f32 %v2433_v0, %v1015_v59  ;;  %v1645_v59 = vld [vmem:[%s2759_s6] sm:$0xff] }
  0xd7   : > { %1654 = vmatpush.bf16.msra.mxu3 %v1645_v59  ;;  %1248 = vmatpush.bf16.msra.mxu0 %v1645_v59 }
  0xd8   : > { %v2451_v21 = vsub.f32 %v2312_v51, %v1034_v36 }
  0xda   : > { %v1050_v63 = vmul.f32 %v2451_v21, %v2451_v21 }
  0xdc   : > { %v1068_v53 = vsel %vm441_vm0, %v1050_v63, 0.0 }
  0xdd   : > { %1069 = vadd.xlane.f32.xlu2 %v1068_v53 }
  0xe1   : > { %v1009_v50 = vpop.xlane.xlu0 %1008 }
  0xe2   : > { %v1032_v18 = vmul.f32 %v2433_v0, %v1009_v50 }
  0xe4   : > { %v2459_v1 = vsub.f32 %v2358_v44, %v1032_v18 }
  0xe6   : > { %v1048_v55 = vmul.f32 %v2459_v1, %v2459_v1 }
  0xe8   : > { %v1062_v16 = vsel %vm441_vm0, %v1048_v55, 0.0 }
  0xe9   : > { %1063 = vadd.xlane.f32.xlu0 %v1062_v16 }
  0xeb   : > { %v1003_v7 = vpop.xlane.xlu2 %1002 }
  0xec   : > { %v1030_v24 = vmul.f32 %v2433_v0, %v1003_v7 }
  0xee   : > { %v2471_v8 = vsub.f32 %v2397_v47, %v1030_v24 }
  0xf0   : > { %v1046_v9 = vmul.f32 %v2471_v8, %v2471_v8 }
  0xf1   : > { %1054 = vadd.xlane.f32.xlu0 %v1053_v2 }
  0xf2   : > { %v1056_v25 = vsel %vm441_vm0, %v1046_v9, 0.0 }
  0xf3   : > { %1057 = vadd.xlane.f32.xlu1 %v1056_v25 }
  0xf6   : > { %v1018_v10 = vpop.xlane.xlu0 %1017 }
  0xf7   : > { %v1035_v11 = vmul.f32 %v2433_v0, %v1018_v10 }
  0xf9   : > { %v2479_v26 = vsub.f32 %v2421_v22, %v1035_v11 }
  0xfb   : > { %v1051_v56 = vmul.f32 %v2479_v26, %v2479_v26 }
  0xfd   : > { %v1071_v12 = vsel %vm441_vm0, %v1051_v56, 0.0 }
  0xfe   : > { %1072 = vadd.xlane.f32.xlu2 %v1071_v12  ;;  %v2523_v12 = vld [vmem:[%s2777_s4] ss:$0 sm:$0xff] }
 0x100   : > { %v1021_v17 = vpop.xlane.xlu1 %1020 }
 0x101   : > { %v1036_v19 = vmul.f32 %v2433_v0, %v1021_v17 }
 0x103   : > { %v2486_v38 = vsub.f32 %v2429_v32, %v1036_v19 }
 0x105   : > { %v1052_v23 = vmul.f32 %v2486_v38, %v2486_v38 }
 0x107   : > { %v1074_v40 = vsel %vm441_vm0, %v1052_v23, 0.0 }
 0x108   : > { %1075 = vadd.xlane.f32.xlu0 %v1074_v40 }
 0x134   : > { %v1067_v30 = vpop.xlane.xlu1 %1066 }
 0x135   : > { %v1081_v13 = vmul.f32 %v1067_v30, %v2433_v0 }
 0x137   : > { %v2496_v48 = vadd.f32 1e-05, %v1081_v13  ;;  %v2534_v13 = vld [vmem:[%s2778_s5] ss:$0 sm:$0xff] }
 0x139   : > { %vm1139_vm10 = vweird.f32 %v2496_v48 }
 0x142   : > { %v1061_v29 = vpop.xlane.xlu2 %1060 }
 0x143   : > { %v1079_v28 = vmul.f32 %v1061_v29, %v2433_v0 }
 0x145   : > { %v1087_v58 = vadd.f32 1e-05, %v1079_v28 }
 0x147   : > { %1714 = vrsqrt.f32 %v1087_v58  ;;  %vm1119_vm6 = vweird.f32 %v1087_v58 }
 0x14d   : > { %v1715_v31 = vpop.eup %1714 }
 0x14e   : > { %v1114_v34 = vmul.f32 %v1715_v31, %v1087_v58  ;;  %vm1120_vm5 = vweird.f32 %v1715_v31 }
 0x14f   : > { %vm1121_vm7 = vmor %vm1119_vm6, %vm1120_vm5 }
 0x150   : > { %v1070_v42 = vpop.xlane.xlu2 %1069  ;;  %v1115_v46 = vmul.f32 %v1715_v31, %v1114_v34 }
 0x151   : > { %v1082_v39 = vmul.f32 %v1070_v42, %v2433_v0 }
 0x152   : > { %v1116_v57 = vmul.f32 0.5, %v1115_v46 }
 0x153   : > { %v2494_v27 = vadd.f32 1e-05, %v1082_v39 }
 0x154   : > { %v1117_v52 = vsub.f32 1.5, %v1116_v57 }
 0x155   : > { %1716 = vrsqrt.f32 %v2494_v27  ;;  %vm1149_vm13 = vweird.f32 %v2494_v27 }
 0x156   : > { %1718 = vrsqrt.f32 %v2496_v48  ;;  %v1118_v35 = vmul.f32 %v1715_v31, %v1117_v52 }
 0x158   : > { %v1122_v24 = vsel %vm1121_vm7, %v1715_v31, %v1118_v35 }
 0x159   : > { %v1175_v56 = vmul.f32 %v1122_v24, %v2444_v37 }
 0x15b   : > { %v2501_v60 = vpop.eup %1716  ;;  %v1187_v31 = vmul.f32 %v2523_v12, %v1175_v56 }
 0x15c   : > { %v1064_v14 = vpop.xlane.xlu0 %1063  ;;  %v2506_v43 = vpop.eup %1718  ;;  %v1144_v45 = vmul.f32 %v2501_v60, %v2494_v27  ;;  %vm1150_vm14 = vweird.f32 %v2501_v60 }
 0x15d   : > { %v1080_v54 = vmul.f32 %v1064_v14, %v2433_v0  ;;  %v1134_v36 = vmul.f32 %v2506_v43, %v2496_v48  ;;  %vm1140_vm11 = vweird.f32 %v2506_v43  ;;  %vm2549_vm5 = vmor %vm1149_vm13, %vm1150_vm14  ;;  %vm1382_vm14 = vcmask 523264  }
 0x15e   : > { %v1145_v55 = vmul.f32 %v2501_v60, %v1144_v45  ;;  %vm2543_vm2 = vmor %vm1139_vm10, %vm1140_vm11  ;;  %v1199_v45 = vadd.f32 %v2534_v13, %v1187_v31 }
 0x15f   : > { %v1088_v33 = vadd.f32 1e-05, %v1080_v54  ;;  %v1135_v6 = vmul.f32 %v2506_v43, %v1134_v36 }
 0x160   : > { %v1146_v9 = vmul.f32 0.5, %v1145_v55 }
 0x161   : > { %1720 = vrsqrt.f32 %v1088_v33  ;;  %v1136_v25 = vmul.f32 0.5, %v1135_v6  ;;  %vm1129_vm9 = vweird.f32 %v1088_v33 }
 0x162   : > { %v1147_v19 = vsub.f32 1.5, %v1146_v9 }
 0x163   : > { %v1137_v28 = vsub.f32 1.5, %v1136_v25 }
 0x164   : > { %v1055_v61 = vpop.xlane.xlu0 %1054  ;;  %v1148_v46 = vmul.f32 %v2501_v60, %v1147_v19 }
 0x165   : > { %v1077_v62 = vmul.f32 %v1055_v61, %v2433_v0  ;;  %v1138_v48 = vmul.f32 %v2506_v43, %v1137_v28 }
 0x166   : > { %v1058_v63 = vpop.xlane.xlu1 %1057  ;;  %v1152_v27 = vsel %vm2549_vm5, %v2501_v60, %v1148_v46 }
 0x167   : > { %v1721_v53 = vpop.eup %1720  ;;  %v1078_v4 = vmul.f32 %v1058_v63, %v2433_v0  ;;  %v1085_v50 = vadd.f32 1e-05, %v1077_v62 }
 0x168   : > { %v1124_v18 = vmul.f32 %v1721_v53, %v1088_v33  ;;  %vm1130_vm8 = vweird.f32 %v1721_v53 }
 0x169   : > { %v1086_v16 = vadd.f32 1e-05, %v1078_v4  ;;  %1722 = vrsqrt.f32 %v1085_v50  ;;  %vm1131_vm12 = vmor %vm1129_vm9, %vm1130_vm8  ;;  %vm1099_vm15 = vweird.f32 %v1085_v50 }
 0x16a   : > { %v1125_v7 = vmul.f32 %v1721_v53, %v1124_v18  ;;  %v1142_v18 = vsel %vm2543_vm2, %v2506_v43, %v1138_v48 }
 0x16b   : > { %1724 = vrsqrt.f32 %v1086_v16  ;;  %vm1109_vm3 = vweird.f32 %v1086_v16 }
 0x16c   : > { %v1126_v2 = vmul.f32 0.5, %v1125_v7  ;;  %v1178_v7 = vmul.f32 %v1152_v27, %v2451_v21 }
 0x16e   : > { %v1127_v10 = vsub.f32 1.5, %v1126_v2 }
 0x16f   : > { %v1723_v11 = vpop.eup %1722 }
 0x170   : > { %v1128_v17 = vmul.f32 %v1721_v53, %v1127_v10  ;;  %v1094_v23 = vmul.f32 %v1723_v11, %v1085_v50  ;;  %vm1100_vm1 = vweird.f32 %v1723_v11 }
 0x171   : > { %v1725_v40 = vpop.eup %1724  ;;  %v1073_v29 = vpop.xlane.xlu2 %1072  ;;  %vm1101_vm6 = vmor %vm1099_vm15, %vm1100_vm1 }
 0x172   : > { %v1132_v58 = vsel %vm1131_vm12, %v1721_v53, %v1128_v17  ;;  %v1104_v42 = vmul.f32 %v1725_v40, %v1086_v16  ;;  %v1095_v37 = vmul.f32 %v1723_v11, %v1094_v23  ;;  %v1083_v39 = vmul.f32 %v1073_v29, %v2433_v0 }
 0x173   : > { %v1176_v30 = vmul.f32 %v1132_v58, %v2459_v1  ;;  %vm1110_vm4 = vweird.f32 %v1725_v40 }
 0x174   : > { %v1105_v34 = vmul.f32 %v1725_v40, %v1104_v42  ;;  %v1096_v14 = vmul.f32 0.5, %v1095_v37  ;;  %v1091_v1 = vadd.f32 1e-05, %v1083_v39  ;;  %vm1111_vm7 = vmor %vm1109_vm3, %vm1110_vm4 }
 0x175   : > { %v1188_v54 = vmul.f32 %v2523_v12, %v1176_v30 }
 0x176   : > { %v1106_v57 = vmul.f32 0.5, %v1105_v34  ;;  %v1097_v41 = vsub.f32 1.5, %v1096_v14  ;;  %1726 = vrsqrt.f32 %v1091_v1  ;;  %vm1159_vm8 = vweird.f32 %v1091_v1 }
 0x177   : > { %v1200_v61 = vadd.f32 %v2534_v13, %v1188_v54 }
 0x178   : > { %v1107_v62 = vsub.f32 1.5, %v1106_v57  ;;  %v1098_v59 = vmul.f32 %v1723_v11, %v1097_v41  ;;  %v1650_v57 = vld [vmem:[%s2761_s8 + $0x18] sm:$0xff] }
 0x179   : > { %v1206_v36 = vpack.c.bf16 %v1200_v61, %v1199_v45  ;;  %1399 = vmatpush.bf16.msra.mxu1 %v1650_v57  ;;  %1655 = vmatpush.bf16.msra.mxu2 %v1650_v57  ;;  %v1648_v45 = vld [vmem:[%s2761_s8 + $0x8] sm:$0xff] }
 0x17a   : > { %v1108_v63 = vmul.f32 %v1725_v40, %v1107_v62  ;;  %v1102_v53 = vsel %vm1101_vm6, %v1723_v11, %v1098_v59 }
 0x17b   : > { %v1173_v4 = vmul.f32 %v1102_v53, %v2462_v15  ;;  %v1076_v35 = vpop.xlane.xlu0 %1075  ;;  %1612 = vmatmul.msk.bf16.vlgmr.msra.gmra.mxu3 %vm441_vm0, %v1206_v36  ;;  %v1177_v15 = vmul.f32 %v1142_v18, %v2437_v5 }
 0x17c   : > { %v1112_v55 = vsel %vm1111_vm7, %v1725_v40, %v1108_v63  ;;  %v1084_v50 = vmul.f32 %v1076_v35, %v2433_v0  ;;  %v1727_v16 = vpop.eup %1726  ;;  %v1190_v0 = vmul.f32 %v2523_v12, %v1178_v7  ;;  %v1647_v35 = vld [vmem:[%s2761_s8] sm:$0xff] }
 0x17d   : > { %v1174_v6 = vmul.f32 %v1112_v55, %v2471_v8  ;;  %v1185_v60 = vmul.f32 %v2523_v12, %v1173_v4  ;;  %v1154_v24 = vmul.f32 %v1727_v16, %v1091_v1  ;;  %v1189_v21 = vmul.f32 %v2523_v12, %v1177_v15 }
 0x17e   : > { %v1092_v2 = vadd.f32 1e-05, %v1084_v50  ;;  %v1202_v17 = vadd.f32 %v2534_v13, %v1190_v0  ;;  %vm1160_vm9 = vweird.f32 %v1727_v16 }
 0x17f   : > { %v1186_v9 = vmul.f32 %v2523_v12, %v1174_v6  ;;  %v1197_v25 = vadd.f32 %v2534_v13, %v1185_v60  ;;  %v1155_v10 = vmul.f32 %v1727_v16, %v1154_v24  ;;  %v1201_v23 = vadd.f32 %v2534_v13, %v1189_v21  ;;  %vm1161_vm10 = vmor %vm1159_vm8, %vm1160_vm9 }
 0x180   : > { %1728 = vrsqrt.f32 %v1092_v2  ;;  %vm1169_vm11 = vweird.f32 %v1092_v2 }
 0x181   : > { %v1198_v43 = vadd.f32 %v2534_v13, %v1186_v9  ;;  %v1156_v11 = vmul.f32 0.5, %v1155_v10  ;;  %v1207_v28 = vpack.c.bf16 %v1202_v17, %v1201_v23 }
 0x183   : > { %v1205_v8 = vpack.c.bf16 %v1198_v43, %v1197_v25  ;;  %v1157_v56 = vsub.f32 1.5, %v1156_v11 }
 0x185   : > { %1611 = vmatmul.msk.bf16.vlgmr.msra.gmra.mxu0 %vm441_vm0, %v1205_v8  ;;  %v1158_v40 = vmul.f32 %v1727_v16, %v1157_v56 }
 0x186   : > { %v1729_v5 = vpop.eup %1728 }
 0x187   : > { %v1164_v19 = vmul.f32 %v1729_v5, %v1092_v2  ;;  %vm1170_vm12 = vweird.f32 %v1729_v5  ;;  %v1162_v42 = vsel %vm1161_vm10, %v1727_v16, %v1158_v40 }
 0x188   : > { %vm1171_vm13 = vmor %vm1169_vm11, %vm1170_vm12  ;;  %v1179_v30 = vmul.f32 %v1162_v42, %v2479_v26 }
 0x189   : > { %v1165_v29 = vmul.f32 %v1729_v5, %v1164_v19 }
 0x18a   : > { %v1191_v46 = vmul.f32 %v2523_v12, %v1179_v30 }
 0x18b   : > { %v1166_v58 = vmul.f32 0.5, %v1165_v29  ;;  %1613 = vmatmul.msk.bf16.gmra.mxu3 %vm441_vm0, %v1207_v28 }
 0x18c   : > { %v1203_v54 = vadd.f32 %v2534_v13, %v1191_v46 }
 0x18d   : > { %v1167_v37 = vsub.f32 1.5, %v1166_v58 }
 0x18f   : > { %v1168_v39 = vmul.f32 %v1729_v5, %v1167_v37 }
 0x191   : > { %v1172_v31 = vsel %vm1171_vm13, %v1729_v5, %v1168_v39 }
 0x192   : > { %v1180_v34 = vmul.f32 %v1172_v31, %v2486_v38  ;;  %v2593_v38 = vld [vmem:[%s2760_s7] ss:$0 sm:$0xff] }
 0x194   : > { %v1192_v14 = vmul.f32 %v2523_v12, %v1180_v34 }
 0x196   : > { %v1204_v1 = vadd.f32 %v2534_v13, %v1192_v14  ;;  %v1649_v13 = vld [vmem:[%s2761_s8 + $0x10] sm:$0xff] }
 0x197   : > { %1400 = vmatpush.bf16.msra.mxu1 %v1649_v13  ;;  %1656 = vmatpush.bf16.msra.mxu2 %v1649_v13 }
 0x198   : > { %v1208_v33 = vpack.c.bf16 %v1204_v1, %v1203_v54 }
 0x19b   : > { %1614 = vmatmul.msk.bf16.gmra.mxu3 %vm441_vm0, %v1208_v33  ;;  %1401 = vmatpush.bf16.msra.mxu1 %v1648_v45 }
 0x19c   : > { %1657 = vmatpush.bf16.msra.mxu2 %v1648_v45 }
 0x19f   : > { %1402 = vmatpush.bf16.msra.mxu1 %v1647_v35 }
 0x1a0   : > { %1658 = vmatpush.bf16.msra.mxu2 %v1647_v35 }
 0x1fe   : > { %v1255_v26 = vpop.f32.mrf.mxu3 }
 0x1ff   : > { %v2611_v59 = vadd.f32 %v2593_v38, %v1255_v26 }
 0x201   : > { %v1272_v18 = vmul.f32 %v2611_v59, %v2611_v59 }
 0x202   : > { %v1250_v12 = vpop.f32.mrf.mxu0 }
 0x203   : > { %v2596_v41 = vadd.f32 %v2593_v38, %v1250_v12  ;;  %v1280_v24 = vmul.f32 %v1272_v18, %v2611_v59 }
 0x205   : > { %v1270_v52 = vmul.f32 %v2596_v41, %v2596_v41  ;;  %v1288_v43 = vmul.f32 0.044715, %v1280_v24 }
 0x206   : > { %v1257_v61 = vpop.f32.mrf.mxu3 }
 0x207   : > { %v1278_v48 = vmul.f32 %v1270_v52, %v2596_v41  ;;  %v2608_v62 = vadd.f32 %v2593_v38, %v1257_v61  ;;  %v1296_v19 = vadd.f32 %v1288_v43, %v2611_v59 }
 0x209   : > { %v1286_v36 = vmul.f32 0.044715, %v1278_v48  ;;  %v1273_v53 = vmul.f32 %v2608_v62, %v2608_v62  ;;  %v1304_v37 = vmul.f32 0.7978846, %v1296_v19 }
 0x20a   : > { %v1252_v63 = vpop.f32.mrf.mxu0 }
 0x20b   : > { %v1294_v27 = vadd.f32 %v1286_v36, %v2596_v41  ;;  %v1253_v4 = vadd.f32 %v2593_v38, %v1252_v63  ;;  %v1281_v6 = vmul.f32 %v1273_v53, %v2608_v62 }
 0x20d   : > { %v1302_v55 = vmul.f32 0.7978846, %v1294_v27  ;;  %v1271_v50 = vmul.f32 %v1253_v4, %v1253_v4  ;;  %v1289_v9 = vmul.f32 0.044715, %v1281_v6 }
 0x20e   : > { %v1260_v16 = vpop.f32.mrf.mxu3 }
 0x20f   : > { %v1279_v7 = vmul.f32 %v1271_v50, %v1253_v4  ;;  %v2624_v60 = vadd.f32 %v2593_v38, %v1260_v16  ;;  %1730 = vtanh.f32 %v1302_v55  ;;  %v1297_v56 = vadd.f32 %v1289_v9, %v2608_v62 }
 0x211   : > { %v1287_v2 = vmul.f32 0.044715, %v1279_v7  ;;  %v1274_v15 = vmul.f32 %v2624_v60, %v2624_v60  ;;  %v1305_v28 = vmul.f32 0.7978846, %v1297_v56 }
 0x213   : > { %v1295_v25 = vadd.f32 %v1287_v2, %v1253_v4  ;;  %v1282_v10 = vmul.f32 %v1274_v15, %v2624_v60 }
 0x215   : > { %v1303_v0 = vmul.f32 0.7978846, %v1295_v25  ;;  %v1290_v11 = vmul.f32 0.044715, %v1282_v10  ;;  %v1731_v21 = vpop.eup %1730 }
 0x216   : > { %v1262_v8 = vpop.f32.mrf.mxu3  ;;  %v1318_v29 = vadd.f32 1.0, %v1731_v21 }
 0x217   : > { %1732 = vtanh.f32 %v1303_v0  ;;  %v1298_v17 = vadd.f32 %v1290_v11, %v2624_v60  ;;  %v1263_v5 = vadd.f32 %v2593_v38, %v1262_v8 }
 0x218   : > { %v1326_v34 = vmul.f32 0.5, %v1318_v29 }
 0x219   : > { %v1306_v23 = vmul.f32 0.7978846, %v1298_v17  ;;  %v1275_v40 = vmul.f32 %v1263_v5, %v1263_v5 }
 0x21a   : > { %v1334_v57 = vmul.f32 %v1326_v34, %v2596_v41 }
 0x21b   : > { %v1283_v58 = vmul.f32 %v1275_v40, %v1263_v5  ;;  %1734 = vtanh.f32 %v1306_v23 }
 0x21c   : > { %1736 = vtanh.f32 %v1305_v28 }
 0x21d   : > { %v1733_v42 = vpop.eup %1732  ;;  %v1291_v30 = vmul.f32 0.044715, %v1283_v58  ;;  %1738 = vtanh.f32 %v1304_v37 }
 0x21e   : > { %v1265_v39 = vpop.f32.mrf.mxu3  ;;  %v1319_v31 = vadd.f32 1.0, %v1733_v42 }
 0x21f   : > { %v1299_v46 = vadd.f32 %v1291_v30, %v1263_v5  ;;  %v1266_v14 = vadd.f32 %v2593_v38, %v1265_v39 }
 0x220   : > { %v1327_v1 = vmul.f32 0.5, %v1319_v31 }
 0x221   : > { %v1307_v54 = vmul.f32 0.7978846, %v1299_v46  ;;  %v1276_v33 = vmul.f32 %v1266_v14, %v1266_v14  ;;  %v1735_v12 = vpop.eup %1734 }
 0x222   : > { %v1335_v26 = vmul.f32 %v1327_v1, %v1253_v4  ;;  %v1737_v45 = vpop.eup %1736  ;;  %v1322_v36 = vadd.f32 1.0, %v1735_v12 }
 0x223   : > { %1740 = vtanh.f32 %v1307_v54  ;;  %v1284_v13 = vmul.f32 %v1276_v33, %v1266_v14  ;;  %v1739_v63 = vpop.eup %1738  ;;  %v1321_v35 = vadd.f32 1.0, %v1737_v45 }
 0x224   : > { %v1342_v52 = vpack.c.bf16 %v1335_v26, %v1334_v57  ;;  %v1330_v50 = vmul.f32 0.5, %v1322_v36  ;;  %v1320_v16 = vadd.f32 1.0, %v1739_v63 }
 0x225   : > { %v1292_v61 = vmul.f32 0.044715, %v1284_v13  ;;  %v1329_v24 = vmul.f32 0.5, %v1321_v35 }
 0x226   : > { %1631 = vmatmul.msk.bf16.vlgmr.msra.gmra.mxu1 %vm1382_vm14, %v1342_v52  ;;  %v1267_v48 = vpop.f32.mrf.mxu3  ;;  %v1338_v15 = vmul.f32 %v1330_v50, %v2624_v60  ;;  %v1328_v25 = vmul.f32 0.5, %v1320_v16 }
 0x227   : > { %v1300_v27 = vadd.f32 %v1292_v61, %v1266_v14  ;;  %v1268_v53 = vadd.f32 %v2593_v38, %v1267_v48  ;;  %v1337_v38 = vmul.f32 %v1329_v24, %v2608_v62  ;;  %v1711_v62 = vld [vmem:[%s2762_s9] ss:$0 sm:$0xff] }
 0x228   : > { %v1336_v11 = vmul.f32 %v1328_v25, %v2611_v59 }
 0x229   : > { %v1741_v18 = vpop.eup %1740  ;;  %v1308_v55 = vmul.f32 0.7978846, %v1300_v27  ;;  %v1277_v41 = vmul.f32 %v1268_v53, %v1268_v53 }
 0x22a   : > { %v1323_v4 = vadd.f32 1.0, %v1741_v18  ;;  %v1343_v21 = vpack.c.bf16 %v1337_v38, %v1336_v11 }
 0x22b   : > { %v1285_v6 = vmul.f32 %v1277_v41, %v1268_v53  ;;  %1742 = vtanh.f32 %v1308_v55 }
 0x22c   : > { %v1331_v7 = vmul.f32 0.5, %v1323_v4 }
 0x22d   : > { %v1293_v2 = vmul.f32 0.044715, %v1285_v6 }
 0x22e   : > { %v1339_v9 = vmul.f32 %v1331_v7, %v1263_v5 }
 0x22f   : > { %v1301_v10 = vadd.f32 %v1293_v2, %v1268_v53 }
 0x230   : > { %v1344_v43 = vpack.c.bf16 %v1339_v9, %v1338_v15 }
 0x231   : > { %v1309_v0 = vmul.f32 0.7978846, %v1301_v10  ;;  %v1743_v8 = vpop.eup %1742 }
 0x232   : > { %1633 = vmatmul.msk.bf16.vlgmr.msra.gmra.mxu2 %vm1382_vm14, %v1344_v43  ;;  %v1324_v56 = vadd.f32 1.0, %v1743_v8 }
 0x233   : > { %1744 = vtanh.f32 %v1309_v0 }
 0x234   : > { %v1332_v5 = vmul.f32 0.5, %v1324_v56 }
 0x236   : > { %1632 = vmatmul.msk.bf16.gmra.mxu1 %vm1382_vm14, %v1343_v21  ;;  %v1340_v23 = vmul.f32 %v1332_v5, %v1266_v14 }
 0x239   : > { %v1745_v17 = vpop.eup %1744 }
 0x23a   : > { %v1325_v60 = vadd.f32 1.0, %v1745_v17 }
 0x23c   : > { %v1333_v19 = vmul.f32 0.5, %v1325_v60 }
 0x23e   : > { %v1341_v40 = vmul.f32 %v1333_v19, %v1268_v53 }
 0x240   : > { %v1345_v29 = vpack.c.bf16 %v1341_v40, %v1340_v23 }
 0x242   : > { %1634 = vmatmul.msk.bf16.gmra.mxu2 %vm1382_vm14, %v1345_v29 }
 0x2a3   : > { %v1404_v59 = vpop.f32.mrf.mxu1 }
 0x2a4   : > { %v1405_v28 = vadd.f32 %v1711_v62, %v1404_v59 }
 0x2a6   : > { %1424 = vst.msk [vmem:[%s2651_s24] sm:$0xff] %vm441_vm0, %v1405_v28  ;;  %v1432_v58 = vadd.f32 %v1405_v28, %v2268_v20 }
 0x2a8   : > { %1440 = vst.msk [vmem:[%s2656_s25] sm:$0xff] %vm441_vm0, %v1432_v58 }
 0x2ab   : > { %v1406_v42 = vpop.f32.mrf.mxu1 }
 0x2ac   : > { %v1407_v37 = vadd.f32 %v1711_v62, %v1406_v42 }
 0x2ae   : > { %1425 = vst.msk [vmem:[%s2651_s24 + $0x8] sm:$0xff] %vm441_vm0, %v1407_v37  ;;  %v1433_v30 = vadd.f32 %v1407_v37, %v2397_v47 }
 0x2b0   : > { %1441 = vst.msk [vmem:[%s2656_s25 + $0x8] sm:$0xff] %vm441_vm0, %v1433_v30 }
 0x2b3   : > { %v1409_v39 = vpop.f32.mrf.mxu1 }
 0x2b4   : > { %v1410_v20 = vadd.f32 %v1711_v62, %v1409_v39 }
 0x2b5   : > { %v1414_v31 = vpop.f32.mrf.mxu2 }
 0x2b6   : > { %1426 = vst.msk [vmem:[%s2651_s24 + $0x10] sm:$0xff] %vm441_vm0, %v1410_v20  ;;  %v1434_v34 = vadd.f32 %v1410_v20, %v2256_v3  ;;  %v1415_v46 = vadd.f32 %v1711_v62, %v1414_v31 }
 0x2b8   : > { %1442 = vst.msk [vmem:[%s2656_s25 + $0x10] sm:$0xff] %vm441_vm0, %v1434_v34  ;;  %v1436_v14 = vadd.f32 %v1415_v46, %v2199_v49 }
 0x2b9   : > { %1428 = vst.msk [vmem:[%s2651_s24 + $0x20] sm:$0xff] %vm441_vm0, %v1415_v46 }
 0x2ba   : > { %1444 = vst.msk [vmem:[%s2656_s25 + $0x20] sm:$0xff] %vm441_vm0, %v1436_v14 }
 0x2bb   : > { %v1411_v47 = vpop.f32.mrf.mxu1 }
 0x2bc   : > { %v1412_v1 = vadd.f32 %v1711_v62, %v1411_v47 }
 0x2bd   : > { %v1416_v54 = vpop.f32.mrf.mxu2 }
 0x2be   : > { %1427 = vst.msk [vmem:[%s2651_s24 + $0x18] sm:$0xff] %vm441_vm0, %v1412_v1  ;;  %v1435_v3 = vadd.f32 %v1412_v1, %v2358_v44  ;;  %v1417_v33 = vadd.f32 %v1711_v62, %v1416_v54 }
 0x2c0   : > { %1443 = vst.msk [vmem:[%s2656_s25 + $0x18] sm:$0xff] %vm441_vm0, %v1435_v3  ;;  %v1437_v49 = vadd.f32 %v1417_v33, %v2312_v51 }
 0x2c1   : > { %1429 = vst.msk [vmem:[%s2651_s24 + $0x28] sm:$0xff] %vm441_vm0, %v1417_v33 }
 0x2c2   : > { %1445 = vst.msk [vmem:[%s2656_s25 + $0x28] sm:$0xff] %vm441_vm0, %v1437_v49 }
 0x2c5   : > { %v1419_v57 = vpop.f32.mrf.mxu2 }
 0x2c6   : > { %v1420_v26 = vadd.f32 %v1711_v62, %v1419_v57 }
 0x2c8   : > { %1430 = vst.msk [vmem:[%s2651_s24 + $0x30] sm:$0xff] %vm441_vm0, %v1420_v26  ;;  %v1438_v12 = vadd.f32 %v1420_v26, %v2421_v22 }
 0x2ca   : > { %1446 = vst.msk [vmem:[%s2656_s25 + $0x30] sm:$0xff] %vm441_vm0, %v1438_v12 }
 0x2cd   : > { %v1421_v51 = vpop.f32.mrf.mxu2 }
 0x2ce   : > { %v1422_v44 = vadd.f32 %v1711_v62, %v1421_v51 }
 0x2d0   : > { %1431 = vst.msk [vmem:[%s2651_s24 + $0x38] sm:$0xff] %vm441_vm0, %v1422_v44  ;;  %v1439_v22 = vadd.f32 %v1422_v44, %v2429_v32 }
 0x2d1   : > { %1773 = shalt.err (!%p1770_p3)
}
 0x2d2   : > { %s1844_s3 = smov 128   ;;  %s1845_s4 = smov 8   ;;  %1447 = vst.msk [vmem:[%s2656_s25 + $0x38] sm:$0xff] %vm441_vm0, %v1439_v22 }
 0x2d3   : > { %1659 = dma.vmem_to_hbm [thread:$0]  (%p1944_p5), %s2698_s16, 1024, %s1469_s1, %s1449_s30, %s1844_s3, %s1844_s3, %s1845_s4  }
 0x2d4   : > { %s1454_s13 = scalar_lea.sflag [#allocation6], %s2645_s15  ;;  %s1788_s0 = sshra.s32 %s2706_s2, 4  ;;  %s1789_s0 = int_to_ptr.hbm [resolvable:$true] %s1788_s0 }
 0x2d5   : > { %s1790_s12 = scalar_lea.hbm %s1789_s0, 64  ;;  %s1794_s22 = scalar_lea.hbm %s2764_s11, 128 }
 0x2d6   : > { %p1791_p4 = scmp.ne.s32.totalorder %s1789_s0, %s1790_s12  ;;  %p1795_p9 = scmp.lt.s32.totalorder %s1789_s0, %s2764_s11 }
 0x2d7   : > { %p1796_p10 = scmp.lt.s32.totalorder %s1794_s22, %s1790_s12 }
 0x2d8   : > { %p1792_p7 = pnand %p1791_p4, %p1944_p5 }
 0x2d9   : > { %p1797_p11 = por %p1796_p10, %p1795_p9 }
 0x2da   : > { %p1793_p8 = pneg %p1792_p7 }
 0x2dc   : > { %p1798_p12 = pnand %p1797_p11, %p1793_p8 }
 0x2de   : > { %1801 = shalt.err (!%p1798_p12)
}
 0x2df   : > { %1660 = dma.vmem_to_hbm [thread:$0]  (%p1944_p5), %s2704_s21, 1024, %s2706_s2, %s1454_s13, %s1844_s3, %s1844_s3, %s1845_s4  }
 0x2e0 PF: > { %p1670_p13 = scmp.ge.s32.totalorder %s1840_s20, 2  ;;  %s1500_s1 = sand.u32 1, %s1828_s17  }
 0x2e1   : > { %s1501_s5 = scalar_lea.sflag [#allocation4], %s1500_s1 }
 0x2e2   : > { %p1664_p0 = pnand %p1670_p13, %p1948_p6 }
 0x2e4   : > { %p1665_p1 = pneg %p1664_p0 }
 0x2e6   : > { %1819 = dma.done.wait (%p1665_p1), %s1501_s5, 1024  }
 0x2e7   : > { %1821 = vsyncadd (%p1665_p1), %s1501_s5, 4294966272  ;;  %s1511_s15 = scalar_lea.sflag [#allocation6], %s1500_s1 }
 0x2e8   : > { %1823 = dma.done.wait (%p1665_p1), %s1511_s15, 1024  }
 0x2e9   : > { %1825 = vsyncadd (%p1665_p1), %s1511_s15, 4294966272  ;;  %p25_p5 = scmp.ge.s32.totalorder %s1931_s23, 4   ;;  %s2783_s17 = smov %s1832_s18 }
 0x2ea   : > { %s2784_s18 = smov %s1836_s19  ;;  %s2785_s19 = smov %s1942_s26 }
 0x2eb   : > { %s2786_s20 = smov %s1931_s23  ;;  %27 = sbr.rel (!%p25_p5) target bundleno = 12 (0xc), region = 116 }
 0x2f0   :  { %1517 = vsyncpa [#allocation4], 1 }
 0x2f1   :  { %1519 = vsyncpa [#allocation4 + $0x1], 1 }
 0x2f2   :  { %1520 = vsyncpa [#allocation6], 1 }
 0x2f3   :  { %1522 = vsyncpa [#allocation6 + $0x1], 1 }

</bundles_post_ra>
